<compile_context>
chip_gen: v6e
topology: v6e:2x2x1
jax: 0.10.0
libtpu: 0.0.40
codegen_flags: <defaults>
</compile_context>

<pallas_src>
import jax
import jax.numpy as jnp
from jax import lax
from jax.experimental import pallas as pl
from jax.experimental.pallas import tpu as pltpu


# ----------------------------------------------------------------------------
# Pallas kernel 1: fused bidirectional LSTM over a full sequence.
#   x_ref   : (L, N, E)    time-major input (q and a stacked along N)
#   wih_ref : (2, E, 4H)   input->gates weights, [0]=fwd, [1]=bwd
#   whh_ref : (2, H, 4H)   hidden->gates weights
#   b_ref   : (2, 1, 4H)   combined bias (b_ih + b_hh)
#   o_ref   : (L, N, H)    0.5 * (h_fwd + h_bwd)   (mean over directions)
#
# Gate order is (i, f, o, g): weights are randomly initialised, so this is a
# pure packing convention chosen so activations hit contiguous lane slices.
#
# TODO(synk): for v7x one could instead use grid=(2,) over the directions with
# dimension_semantics=("parallel",) to shard fwd/bwd across the two
# TensorCores; kept a single invocation here (interleaved directions already
# give ILP, and 1 launch beats 2 at these toy sizes).
# ----------------------------------------------------------------------------
def bilstm_kernel(x_ref, wih_ref, whh_ref, b_ref, o_ref,
                  gf_scr, gb_scr, bwd_scr, hf_scr, cf_scr, hb_scr, cb_scr):
    L, N, E = x_ref.shape
    H = hf_scr.shape[-1]

    # ---- Hoisted input projections: one big matmul per direction -----------
    x_flat = x_ref[...].reshape(L * N, E)
    gf_scr[...] = (jnp.dot(x_flat, wih_ref[0],
                           preferred_element_type=jnp.float32)
                   + b_ref[0]).reshape(L, N, 4 * H)
    gb_scr[...] = (jnp.dot(x_flat, wih_ref[1],
                           preferred_element_type=jnp.float32)
                   + b_ref[1]).reshape(L, N, 4 * H)

    hf_scr[...] = jnp.zeros_like(hf_scr)
    cf_scr[...] = jnp.zeros_like(cf_scr)
    hb_scr[...] = jnp.zeros_like(hb_scr)
    cb_scr[...] = jnp.zeros_like(cb_scr)

    whh_f = whh_ref[0]
    whh_b = whh_ref[1]

    def cell(gates, c):
        # (i, f, o, g) packing: one contiguous sigmoid slice + one tanh slice.
        s = jax.nn.sigmoid(gates[:, 0:3 * H])
        g = jnp.tanh(gates[:, 3 * H:4 * H])
        i, f, o = s[:, 0:H], s[:, H:2 * H], s[:, 2 * H:3 * H]
        c_new = f * c + i * g
        h_new = o * jnp.tanh(c_new)
        return h_new, c_new

    def step(t, carry):
        # forward direction, time t
        gf = gf_scr[t] + jnp.dot(hf_scr[...], whh_f,
                                 preferred_element_type=jnp.float32)
        h_f, c_f = cell(gf, cf_scr[...])
        hf_scr[...] = h_f
        cf_scr[...] = c_f
        o_ref[t] = h_f

        # backward direction, time L-1-t (interleaved with fwd for ILP)
        tb = L - 1 - t
        gb = gb_scr[tb] + jnp.dot(hb_scr[...], whh_b,
                                  preferred_element_type=jnp.float32)
        h_b, c_b = cell(gb, cb_scr[...])
        hb_scr[...] = h_b
        cb_scr[...] = c_b
        bwd_scr[tb] = h_b
        return carry

    lax.fori_loop(0, L, step, 0, unroll=True)

    # mean over the 2 directions (matches `mean(view(B, L, 2, H), 2)`).
    o_ref[...] = 0.5 * (o_ref[...] + bwd_scr[...])


def run_bilstm(x_tme, p):
    """x_tme: (L, N, E) -> (L, N, H) mean of fwd/bwd hidden states."""
    L, N, E = x_tme.shape
    H = p["whh"].shape[1]
    return pl.pallas_call(
        bilstm_kernel,
        out_shape=jax.ShapeDtypeStruct((L, N, H), jnp.float32),
        scratch_shapes=[pltpu.VMEM((L, N, 4 * H), jnp.float32),   # gf
                        pltpu.VMEM((L, N, 4 * H), jnp.float32),   # gb
                        pltpu.VMEM((L, N, H), jnp.float32),       # bwd states
                        pltpu.VMEM((N, H), jnp.float32),          # h fwd
                        pltpu.VMEM((N, H), jnp.float32),          # c fwd
                        pltpu.VMEM((N, H), jnp.float32),          # h bwd
                        pltpu.VMEM((N, H), jnp.float32)],         # c bwd
        compiler_params=pltpu.CompilerParams(vmem_limit_bytes=8 * 1024 * 1024),
    )(x_tme, p["wih"], p["whh"], p["b"])


def bilstm_q_a(q_embed, a_embed, p):
    """Shared biLSTM for the question and answer sequences.

    When the sequence lengths match (the common case), q and a are stacked
    along the batch axis so a single pallas_call (and bigger MXU LHS) handles
    both; otherwise fall back to two calls.
    """
    N, Lq, _ = q_embed.shape
    La = a_embed.shape[1]
    if Lq == La:
        x = jnp.concatenate([q_embed, a_embed], axis=0)        # (2N, L, E)
        out = run_bilstm(jnp.transpose(x, (1, 0, 2)), p)       # (L, 2N, H)
        out = jnp.transpose(out, (1, 0, 2))                    # (2N, L, H)
        return out[:N], out[N:]
    q = jnp.transpose(run_bilstm(jnp.transpose(q_embed, (1, 0, 2)), p), (1, 0, 2))
    a = jnp.transpose(run_bilstm(jnp.transpose(a_embed, (1, 0, 2)), p), (1, 0, 2))
    return q, a


# ----------------------------------------------------------------------------
# Pallas kernel 2: user generation + self attention + hybrid attention +
# ratio fusion + final linear + log_softmax.  (argmax is done in the wrapper.)
# ----------------------------------------------------------------------------
def hybrid_attention_kernel(q_ref, a_ref, u_embed_ref,
                            wug_ref, bug_ref,
                            wsq_ref, bsq_ref, vsq_ref,
                            wsa_ref, bsa_ref, vsa_ref,
                            wqa_ref, wqu_ref,
                            wq_ref, wa_ref, wu_ref,
                            wf_ref, bf_ref,
                            res_ref):
    q = q_ref[...]          # (N, Lq, H)
    a = a_ref[...]          # (N, La, H)
    u_e = u_embed_ref[...]  # (N, Lu, E)
    N, Lq, H = q.shape
    La = a.shape[1]

    # --- UserGeneration ------------------------------------------------------
    # TODO(synk): original UserGeneration source not provided; use mean-pool of
    # the user document followed by a tanh projection to the LSTM hidden size.
    u_mean = jnp.mean(u_e, axis=1)                                       # (N, E)
    u_vec = jnp.tanh(jnp.dot(u_mean, wug_ref[...],
                             preferred_element_type=jnp.float32) + bug_ref[...])

    # --- SelfAttention (alpha) ----------------------------------------------
    # TODO(synk): SelfAttention source not provided; use score = v^T tanh(Wx+b),
    # softmax over the sequence length.  Batch is flattened so the projection
    # is one (N*L, H) x (H, H) dot; the score is a VPU mul + lane reduction.
    def self_attn(x, w, b, v):
        n, l, h = x.shape
        proj = jnp.tanh(jnp.dot(x.reshape(n * l, h), w,
                                preferred_element_type=jnp.float32) + b)
        score = jnp.sum(proj.reshape(n, l, h) * v[None], axis=-1)        # (n, l)
        return jax.nn.softmax(score, axis=-1)

    q_alpha = self_attn(q, wsq_ref[...], bsq_ref[...], vsq_ref[...])     # (N, Lq)
    a_alpha = self_attn(a, wsa_ref[...], bsa_ref[...], vsa_ref[...])     # (N, La)

    # --- HybridAttentionLayer (beta / lambda) --------------------------------
    # TODO(synk): HybridAttentionLayer source not provided; bilinear scores
    # M = x W y^T, flag 0/1 -> softmax over the first argument's tokens (after
    # max-pooling over the other sequence), flag 2 -> softmax over the second
    # argument's tokens (user vector attends over the question).
    wqa = wqa_ref[...]
    qW = jnp.dot(q.reshape(N * Lq, H), wqa,
                 preferred_element_type=jnp.float32).reshape(N, Lq, H)
    Mqa = jnp.einsum('nlk,nmk->nlm', qW, a, preferred_element_type=jnp.float32)
    q_beta = jax.nn.softmax(jnp.max(Mqa, axis=-1), axis=-1)              # (N, Lq)

    aW = jnp.dot(a.reshape(N * La, H), wqa,
                 preferred_element_type=jnp.float32).reshape(N, La, H)
    Maq = jnp.einsum('nmk,nlk->nml', aW, q, preferred_element_type=jnp.float32)
    a_beta = jax.nn.softmax(jnp.max(Maq, axis=-1), axis=-1)              # (N, La)

    uW = jnp.dot(u_vec, wqu_ref[...], preferred_element_type=jnp.float32)  # (N, H)
    s_u = jnp.sum(uW[:, None, :] * q, axis=-1)                           # (N, Lq)
    u_lambda = jax.nn.softmax(s_u, axis=-1)

    # --- RatioLayer -----------------------------------------------------------
    # TODO(synk): RatioLayer source not provided; use renormalised elementwise
    # product of the attention distributions.
    def ratio(alpha, beta, lam=None):
        w = alpha * beta
        if lam is not None:
            w = w * lam
        return w / (jnp.sum(w, axis=-1, keepdims=True) + 1e-9)

    q_yi = ratio(q_alpha, q_beta)
    a_yi = ratio(a_alpha, a_beta)
    u_theta = ratio(q_alpha, q_beta, u_lambda)

    # --- Weighted pooling -----------------------------------------------------
    q_h = jnp.sum(q_yi[:, :, None] * q, axis=1)                          # (N, H)
    a_h = jnp.sum(a_yi[:, :, None] * a, axis=1)                          # (N, H)
    u_h = jnp.sum(u_theta[:, :, None] * q, axis=1)                       # (N, H)

    h = jnp.tanh(jnp.dot(q_h, wq_ref[...], preferred_element_type=jnp.float32)
                 + jnp.dot(a_h, wa_ref[...], preferred_element_type=jnp.float32)
                 + jnp.dot(u_h, wu_ref[...], preferred_element_type=jnp.float32))

    logits = jnp.dot(h, wf_ref[...], preferred_element_type=jnp.float32) + bf_ref[...]

    # log_softmax
    m = jnp.max(logits, axis=-1, keepdims=True)
    lse = m + jnp.log(jnp.sum(jnp.exp(logits - m), axis=-1, keepdims=True))
    res_ref[...] = logits - lse


def run_hybrid_attention(q_lstm, a_lstm, u_embed, params):
    N, Lq, H = q_lstm.shape
    La = a_lstm.shape[1]
    E = u_embed.shape[2]
    C = params["w_final"].shape[1]

    flops = 2 * N * (E * H                      # user projection
                     + 2 * (Lq + La) * H * H    # self-attn + bilinear projections
                     + 2 * Lq * La * H          # Mqa / Maq scores
                     + H * H                    # u_vec @ w_qu
                     + 3 * H * H + H * C)       # final projections + classifier
    transcendentals = N * ((Lq + La) * (H + 1) + Lq + La + H + C)
    bytes_accessed = 4 * (q_lstm.size + a_lstm.size + u_embed.size + N * C
                          + 8 * H * H + 4 * H + H * C + C)

    res = pl.pallas_call(
        hybrid_attention_kernel,
        out_shape=jax.ShapeDtypeStruct((N, C), jnp.float32),
        compiler_params=pltpu.CompilerParams(vmem_limit_bytes=8 * 1024 * 1024),
        cost_estimate=pl.CostEstimate(flops=flops,
                                      transcendentals=transcendentals,
                                      bytes_accessed=bytes_accessed),
    )(q_lstm, a_lstm, u_embed,
      params["w_ug"], params["b_ug"],
      params["w_sq"], params["b_sq"], params["v_sq"],
      params["w_sa"], params["b_sa"], params["v_sa"],
      params["w_qa"], params["w_qu"],
      params["w_q"], params["w_a"], params["w_u"],
      params["w_final"], params["b_final"])
    return res


# ----------------------------------------------------------------------------
# Parameter init (deterministic, xavier-style) and full forward wrapper.
# ----------------------------------------------------------------------------
def xavier(key, shape):
    fan_in, fan_out = shape[-2], shape[-1]
    scale = jnp.sqrt(2.0 / (fan_in + fan_out))
    return scale * jax.random.normal(key, shape, dtype=jnp.float32)


def init_params(key, vocab, E, H, C):
    keys = jax.random.split(key, 24)
    p = {}
    p["embed"] = 0.1 * jax.random.normal(keys[0], (vocab, E), dtype=jnp.float32)
    # Bidirectional LSTM (1 layer), weights stacked [fwd, bwd].
    # Gate packing order is (i, f, o, g) — a free relabelling of random init —
    # so in-kernel activations hit contiguous lane slices.
    p["wih"] = jnp.stack([xavier(keys[1], (E, 4 * H)),
                          xavier(keys[3], (E, 4 * H))])           # (2, E, 4H)
    p["whh"] = jnp.stack([xavier(keys[2], (H, 4 * H)),
                          xavier(keys[4], (H, 4 * H))])           # (2, H, 4H)
    p["b"] = jnp.zeros((2, 1, 4 * H), jnp.float32)
    # UserGeneration
    p["w_ug"] = xavier(keys[5], (E, H))
    p["b_ug"] = jnp.zeros((1, H), jnp.float32)
    # SelfAttention (q and a); score vector stored as (1, H) for broadcast use
    p["w_sq"] = xavier(keys[6], (H, H))
    p["b_sq"] = jnp.zeros((1, H), jnp.float32)
    p["v_sq"] = xavier(keys[7], (1, H))
    p["w_sa"] = xavier(keys[8], (H, H))
    p["b_sa"] = jnp.zeros((1, H), jnp.float32)
    p["v_sa"] = xavier(keys[9], (1, H))
    # HybridAttention bilinear weights
    p["w_qa"] = xavier(keys[10], (H, H))
    p["w_qu"] = xavier(keys[11], (H, H))
    # final projections
    p["w_q"] = xavier(keys[12], (H, H))
    p["w_a"] = xavier(keys[13], (H, H))
    p["w_u"] = xavier(keys[14], (H, H))
    p["w_final"] = xavier(keys[15], (H, C))
    p["b_final"] = jnp.zeros((1, C), jnp.float32)
    return p


@jax.jit
def forward(params, question, answer, user):
    # Embedding lookup (glue, outside the kernels)
    q_embed = jnp.take(params["embed"], question, axis=0)   # (N, Lq, E)
    a_embed = jnp.take(params["embed"], answer, axis=0)     # (N, La, E)
    u_embed = jnp.take(params["embed"], user, axis=0)       # (N, Lu, E)

    # Shared bidirectional LSTM (one fused Pallas kernel), mean over directions
    q_lstm, a_lstm = bilstm_q_a(q_embed, a_embed, params)   # (N, Lq, H), (N, La, H)

    # Attention / fusion / classifier (Pallas kernel) + argmax in the wrapper
    result = run_hybrid_attention(q_lstm, a_lstm, u_embed, params)
    predict = jnp.argmax(result, axis=-1)
    return result, predict


if __name__ == "__main__":
    N, Lq, La, Lu = 2, 8, 8, 8
    VOCAB, E, H, C = 50, 32, 32, 3

    key = jax.random.PRNGKey(0)
    k_p, k_q, k_a, k_u = jax.random.split(key, 4)
    params = init_params(k_p, VOCAB, E, H, C)

    question = jax.random.randint(k_q, (N, Lq), 0, VOCAB, dtype=jnp.int32)
    answer = jax.random.randint(k_a, (N, La), 0, VOCAB, dtype=jnp.int32)
    user = jax.random.randint(k_u, (N, Lu), 0, VOCAB, dtype=jnp.int32)

    result, predict = forward(params, question, answer, user)
    jax.block_until_ready((result, predict))

    assert result.shape == (N, C) and predict.shape == (N,)
    assert bool(jnp.all(jnp.isfinite(result)))
    print("KERNEL_OK")
</pallas_src>

<mosaic_0001>
module attributes {stable_mosaic.version = 11 : i64} {
  func.func @bilstm_kernel(%arg0: memref<8x4x32xf32, #tpu.memory_space<vmem>>, %arg1: memref<2x32x128xf32, #tpu.memory_space<vmem>>, %arg2: memref<2x32x128xf32, #tpu.memory_space<vmem>>, %arg3: memref<2x1x128xf32, #tpu.memory_space<vmem>>, %arg4: memref<8x4x32xf32, #tpu.memory_space<vmem>>, %arg5: memref<8x4x128xf32, #tpu.memory_space<vmem>>, %arg6: memref<8x4x128xf32, #tpu.memory_space<vmem>>, %arg7: memref<8x4x32xf32, #tpu.memory_space<vmem>>, %arg8: memref<4x32xf32, #tpu.memory_space<vmem>>, %arg9: memref<4x32xf32, #tpu.memory_space<vmem>>, %arg10: memref<4x32xf32, #tpu.memory_space<vmem>>, %arg11: memref<4x32xf32, #tpu.memory_space<vmem>>) attributes {dimension_semantics = [], scalar_prefetch = 0 : i64, scratch_operands = 7 : i64, tpu.core_type = #tpu.core_type<tc>} {
    %c0 = arith.constant 0 : index
    %c0_0 = arith.constant 0 : index
    %c0_1 = arith.constant 0 : index
    %0 = vector.load %arg0[%c0, %c0_0, %c0_1] : memref<8x4x32xf32, #tpu.memory_space<vmem>>, vector<8x4x32xf32>
    %1 = vector.shape_cast %0 : vector<8x4x32xf32> to vector<32x32xf32>
    %c0_2 = arith.constant 0 : index
    %c0_3 = arith.constant 0 : index
    %c0_4 = arith.constant 0 : index
    %2 = vector.load %arg1[%c0_2, %c0_3, %c0_4] : memref<2x32x128xf32, #tpu.memory_space<vmem>>, vector<1x32x128xf32>
    %3 = vector.shape_cast %2 : vector<1x32x128xf32> to vector<32x128xf32>
    %cst = arith.constant dense<0.000000e+00> : vector<32x128xf32>
    %4 = tpu.matmul %1, %3, %cst {dimension_numbers = #tpu.dot_dimension_numbers<[1], [0], [0], [1], [0, 0, 1, 1], [], []>} : vector<32x32xf32>, vector<32x128xf32>, vector<32x128xf32> -> vector<32x128xf32>
    %c0_5 = arith.constant 0 : index
    %c0_6 = arith.constant 0 : index
    %c0_7 = arith.constant 0 : index
    %5 = vector.load %arg3[%c0_5, %c0_6, %c0_7] : memref<2x1x128xf32, #tpu.memory_space<vmem>>, vector<1x1x128xf32>
    %6 = vector.shape_cast %5 : vector<1x1x128xf32> to vector<1x128xf32>
    %7 = vector.broadcast %6 : vector<1x128xf32> to vector<32x128xf32>
    %8 = arith.addf %4, %7 : vector<32x128xf32>
    %9 = vector.shape_cast %8 : vector<32x128xf32> to vector<8x4x128xf32>
    %c0_8 = arith.constant 0 : index
    %c0_9 = arith.constant 0 : index
    %c0_10 = arith.constant 0 : index
    %10 = vector.load %arg5[%c0_8, %c0_9, %c0_10] : memref<8x4x128xf32, #tpu.memory_space<vmem>>, vector<8x4x128xf32>
    tpu.vector_store %arg5[%c0_8, %c0_9, %c0_10], %9 {strides = array<i32>} : memref<8x4x128xf32, #tpu.memory_space<vmem>>, vector<8x4x128xf32>,
    %c1 = arith.constant 1 : index
    %c0_11 = arith.constant 0 : index
    %c0_12 = arith.constant 0 : index
    %11 = vector.load %arg1[%c1, %c0_11, %c0_12] : memref<2x32x128xf32, #tpu.memory_space<vmem>>, vector<1x32x128xf32>
    %12 = vector.shape_cast %11 : vector<1x32x128xf32> to vector<32x128xf32>
    %cst_13 = arith.constant dense<0.000000e+00> : vector<32x128xf32>
    %13 = tpu.matmul %1, %12, %cst_13 {dimension_numbers = #tpu.dot_dimension_numbers<[1], [0], [0], [1], [0, 0, 1, 1], [], []>} : vector<32x32xf32>, vector<32x128xf32>, vector<32x128xf32> -> vector<32x128xf32>
    %c1_14 = arith.constant 1 : index
    %c0_15 = arith.constant 0 : index
    %c0_16 = arith.constant 0 : index
    %14 = vector.load %arg3[%c1_14, %c0_15, %c0_16] : memref<2x1x128xf32, #tpu.memory_space<vmem>>, vector<1x1x128xf32>
    %15 = vector.shape_cast %14 : vector<1x1x128xf32> to vector<1x128xf32>
    %16 = vector.broadcast %15 : vector<1x128xf32> to vector<32x128xf32>
    %17 = arith.addf %13, %16 : vector<32x128xf32>
    %18 = vector.shape_cast %17 : vector<32x128xf32> to vector<8x4x128xf32>
    %c0_17 = arith.constant 0 : index
    %c0_18 = arith.constant 0 : index
    %c0_19 = arith.constant 0 : index
    %19 = vector.load %arg6[%c0_17, %c0_18, %c0_19] : memref<8x4x128xf32, #tpu.memory_space<vmem>>, vector<8x4x128xf32>
    tpu.vector_store %arg6[%c0_17, %c0_18, %c0_19], %18 {strides = array<i32>} : memref<8x4x128xf32, #tpu.memory_space<vmem>>, vector<8x4x128xf32>,
    %cst_20 = arith.constant 0.000000e+00 : f32
    %20 = vector.broadcast %cst_20 : f32 to vector<4x32xf32>
    %c0_21 = arith.constant 0 : index
    %c0_22 = arith.constant 0 : index
    %21 = vector.load %arg8[%c0_21, %c0_22] : memref<4x32xf32, #tpu.memory_space<vmem>>, vector<4x32xf32>
    tpu.vector_store %arg8[%c0_21, %c0_22], %20 {strides = array<i32>} : memref<4x32xf32, #tpu.memory_space<vmem>>, vector<4x32xf32>,
    %cst_23 = arith.constant 0.000000e+00 : f32
    %22 = vector.broadcast %cst_23 : f32 to vector<4x32xf32>
    %c0_24 = arith.constant 0 : index
    %c0_25 = arith.constant 0 : index
    %23 = vector.load %arg9[%c0_24, %c0_25] : memref<4x32xf32, #tpu.memory_space<vmem>>, vector<4x32xf32>
    tpu.vector_store %arg9[%c0_24, %c0_25], %22 {strides = array<i32>} : memref<4x32xf32, #tpu.memory_space<vmem>>, vector<4x32xf32>,
    %cst_26 = arith.constant 0.000000e+00 : f32
    %24 = vector.broadcast %cst_26 : f32 to vector<4x32xf32>
    %c0_27 = arith.constant 0 : index
    %c0_28 = arith.constant 0 : index
    %25 = vector.load %arg10[%c0_27, %c0_28] : memref<4x32xf32, #tpu.memory_space<vmem>>, vector<4x32xf32>
    tpu.vector_store %arg10[%c0_27, %c0_28], %24 {strides = array<i32>} : memref<4x32xf32, #tpu.memory_space<vmem>>, vector<4x32xf32>,
    %cst_29 = arith.constant 0.000000e+00 : f32
    %26 = vector.broadcast %cst_29 : f32 to vector<4x32xf32>
    %c0_30 = arith.constant 0 : index
    %c0_31 = arith.constant 0 : index
    %27 = vector.load %arg11[%c0_30, %c0_31] : memref<4x32xf32, #tpu.memory_space<vmem>>, vector<4x32xf32>
    tpu.vector_store %arg11[%c0_30, %c0_31], %26 {strides = array<i32>} : memref<4x32xf32, #tpu.memory_space<vmem>>, vector<4x32xf32>,
    %c0_32 = arith.constant 0 : index
    %c0_33 = arith.constant 0 : index
    %c0_34 = arith.constant 0 : index
    %28 = vector.load %arg2[%c0_32, %c0_33, %c0_34] : memref<2x32x128xf32, #tpu.memory_space<vmem>>, vector<1x32x128xf32>
    %29 = vector.shape_cast %28 : vector<1x32x128xf32> to vector<32x128xf32>
    %c1_35 = arith.constant 1 : index
    %c0_36 = arith.constant 0 : index
    %c0_37 = arith.constant 0 : index
    %30 = vector.load %arg2[%c1_35, %c0_36, %c0_37] : memref<2x32x128xf32, #tpu.memory_space<vmem>>, vector<1x32x128xf32>
    %31 = vector.shape_cast %30 : vector<1x32x128xf32> to vector<32x128xf32>
    %c0_i32 = arith.constant 0 : i32
    %32 = arith.index_cast %c0_i32 : i32 to index
    %c0_38 = arith.constant 0 : index
    %c0_39 = arith.constant 0 : index
    %33 = vector.load %arg5[%32, %c0_38, %c0_39] : memref<8x4x128xf32, #tpu.memory_space<vmem>>, vector<1x4x128xf32>
    %34 = vector.shape_cast %33 : vector<1x4x128xf32> to vector<4x128xf32>
    %c0_40 = arith.constant 0 : index
    %c0_41 = arith.constant 0 : index
    %35 = vector.load %arg8[%c0_40, %c0_41] : memref<4x32xf32, #tpu.memory_space<vmem>>, vector<4x32xf32>
    %cst_42 = arith.constant dense<0.000000e+00> : vector<4x128xf32>
    %36 = tpu.matmul %35, %29, %cst_42 {dimension_numbers = #tpu.dot_dimension_numbers<[1], [0], [0], [1], [0, 0, 1, 1], [], []>} : vector<4x32xf32>, vector<32x128xf32>, vector<4x128xf32> -> vector<4x128xf32>
    %37 = arith.addf %34, %36 : vector<4x128xf32>
    %c0_43 = arith.constant 0 : index
    %c0_44 = arith.constant 0 : index
    %38 = vector.load %arg9[%c0_43, %c0_44] : memref<4x32xf32, #tpu.memory_space<vmem>>, vector<4x32xf32>
    %39 = vector.extract_strided_slice %37 {offsets = [0, 0], sizes = [4, 96], strides = [1, 1]} : vector<4x128xf32> to vector<4x96xf32>
    %40 = arith.negf %39 : vector<4x96xf32>
    %41 = math.exp %40 : vector<4x96xf32>
    %cst_45 = arith.constant 1.000000e+00 : f32
    %42 = vector.broadcast %cst_45 : f32 to vector<4x96xf32>
    %43 = arith.addf %42, %41 : vector<4x96xf32>
    %44 = arith.divf %42, %43 : vector<4x96xf32>
    %45 = vector.extract_strided_slice %37 {offsets = [0, 96], sizes = [4, 32], strides = [1, 1]} : vector<4x128xf32> to vector<4x32xf32>
    %46 = math.tanh %45 : vector<4x32xf32>
    %47 = vector.extract_strided_slice %44 {offsets = [0, 0], sizes = [4, 32], strides = [1, 1]} : vector<4x96xf32> to vector<4x32xf32>
    %48 = vector.extract_strided_slice %44 {offsets = [0, 32], sizes = [4, 32], strides = [1, 1]} : vector<4x96xf32> to vector<4x32xf32>
    %49 = vector.extract_strided_slice %44 {offsets = [0, 64], sizes = [4, 32], strides = [1, 1]} : vector<4x96xf32> to vector<4x32xf32>
    %50 = arith.mulf %48, %38 : vector<4x32xf32>
    %51 = arith.mulf %47, %46 : vector<4x32xf32>
    %52 = arith.addf %50, %51 : vector<4x32xf32>
    %53 = math.tanh %52 : vector<4x32xf32>
    %54 = arith.mulf %49, %53 : vector<4x32xf32>
    %c0_46 = arith.constant 0 : index
    %c0_47 = arith.constant 0 : index
    %55 = vector.load %arg8[%c0_46, %c0_47] : memref<4x32xf32, #tpu.memory_space<vmem>>, vector<4x32xf32>
    tpu.vector_store %arg8[%c0_46, %c0_47], %54 {strides = array<i32>} : memref<4x32xf32, #tpu.memory_space<vmem>>, vector<4x32xf32>,
    %c0_48 = arith.constant 0 : index
    %c0_49 = arith.constant 0 : index
    %56 = vector.load %arg9[%c0_48, %c0_49] : memref<4x32xf32, #tpu.memory_space<vmem>>, vector<4x32xf32>
    tpu.vector_store %arg9[%c0_48, %c0_49], %52 {strides = array<i32>} : memref<4x32xf32, #tpu.memory_space<vmem>>, vector<4x32xf32>,
    %57 = arith.index_cast %c0_i32 : i32 to index
    %c0_50 = arith.constant 0 : index
    %c0_51 = arith.constant 0 : index
    %58 = vector.load %arg4[%57, %c0_50, %c0_51] : memref<8x4x32xf32, #tpu.memory_space<vmem>>, vector<1x4x32xf32>
    %59 = vector.shape_cast %58 : vector<1x4x32xf32> to vector<4x32xf32>
    %60 = vector.shape_cast %54 : vector<4x32xf32> to vector<1x4x32xf32>
    tpu.vector_store %arg4[%57, %c0_50, %c0_51], %60 {strides = array<i32>} : memref<8x4x32xf32, #tpu.memory_space<vmem>>, vector<1x4x32xf32>,
    %c7_i32 = arith.constant 7 : i32
    %61 = arith.subi %c7_i32, %c0_i32 : i32
    %62 = arith.index_cast %61 : i32 to index
    %c0_52 = arith.constant 0 : index
    %c0_53 = arith.constant 0 : index
    %63 = vector.load %arg6[%62, %c0_52, %c0_53] : memref<8x4x128xf32, #tpu.memory_space<vmem>>, vector<1x4x128xf32>
    %64 = vector.shape_cast %63 : vector<1x4x128xf32> to vector<4x128xf32>
    %c0_54 = arith.constant 0 : index
    %c0_55 = arith.constant 0 : index
    %65 = vector.load %arg10[%c0_54, %c0_55] : memref<4x32xf32, #tpu.memory_space<vmem>>, vector<4x32xf32>
    %cst_56 = arith.constant dense<0.000000e+00> : vector<4x128xf32>
    %66 = tpu.matmul %65, %31, %cst_56 {dimension_numbers = #tpu.dot_dimension_numbers<[1], [0], [0], [1], [0, 0, 1, 1], [], []>} : vector<4x32xf32>, vector<32x128xf32>, vector<4x128xf32> -> vector<4x128xf32>
    %67 = arith.addf %64, %66 : vector<4x128xf32>
    %c0_57 = arith.constant 0 : index
    %c0_58 = arith.constant 0 : index
    %68 = vector.load %arg11[%c0_57, %c0_58] : memref<4x32xf32, #tpu.memory_space<vmem>>, vector<4x32xf32>
    %69 = vector.extract_strided_slice %67 {offsets = [0, 0], sizes = [4, 96], strides = [1, 1]} : vector<4x128xf32> to vector<4x96xf32>
    %70 = arith.negf %69 : vector<4x96xf32>
    %71 = math.exp %70 : vector<4x96xf32>
    %cst_59 = arith.constant 1.000000e+00 : f32
    %72 = vector.broadcast %cst_59 : f32 to vector<4x96xf32>
    %73 = arith.addf %72, %71 : vector<4x96xf32>
    %74 = arith.divf %72, %73 : vector<4x96xf32>
    %75 = vector.extract_strided_slice %67 {offsets = [0, 96], sizes = [4, 32], strides = [1, 1]} : vector<4x128xf32> to vector<4x32xf32>
    %76 = math.tanh %75 : vector<4x32xf32>
    %77 = vector.extract_strided_slice %74 {offsets = [0, 0], sizes = [4, 32], strides = [1, 1]} : vector<4x96xf32> to vector<4x32xf32>
    %78 = vector.extract_strided_slice %74 {offsets = [0, 32], sizes = [4, 32], strides = [1, 1]} : vector<4x96xf32> to vector<4x32xf32>
    %79 = vector.extract_strided_slice %74 {offsets = [0, 64], sizes = [4, 32], strides = [1, 1]} : vector<4x96xf32> to vector<4x32xf32>
    %80 = arith.mulf %78, %68 : vector<4x32xf32>
    %81 = arith.mulf %77, %76 : vector<4x32xf32>
    %82 = arith.addf %80, %81 : vector<4x32xf32>
    %83 = math.tanh %82 : vector<4x32xf32>
    %84 = arith.mulf %79, %83 : vector<4x32xf32>
    %c0_60 = arith.constant 0 : index
    %c0_61 = arith.constant 0 : index
    %85 = vector.load %arg10[%c0_60, %c0_61] : memref<4x32xf32, #tpu.memory_space<vmem>>, vector<4x32xf32>
    tpu.vector_store %arg10[%c0_60, %c0_61], %84 {strides = array<i32>} : memref<4x32xf32, #tpu.memory_space<vmem>>, vector<4x32xf32>,
    %c0_62 = arith.constant 0 : index
    %c0_63 = arith.constant 0 : index
    %86 = vector.load %arg11[%c0_62, %c0_63] : memref<4x32xf32, #tpu.memory_space<vmem>>, vector<4x32xf32>
    tpu.vector_store %arg11[%c0_62, %c0_63], %82 {strides = array<i32>} : memref<4x32xf32, #tpu.memory_space<vmem>>, vector<4x32xf32>,
    %87 = arith.index_cast %61 : i32 to index
    %c0_64 = arith.constant 0 : index
    %c0_65 = arith.constant 0 : index
    %88 = vector.load %arg7[%87, %c0_64, %c0_65] : memref<8x4x32xf32, #tpu.memory_space<vmem>>, vector<1x4x32xf32>
    %89 = vector.shape_cast %88 : vector<1x4x32xf32> to vector<4x32xf32>
    %90 = vector.shape_cast %84 : vector<4x32xf32> to vector<1x4x32xf32>
    tpu.vector_store %arg7[%87, %c0_64, %c0_65], %90 {strides = array<i32>} : memref<8x4x32xf32, #tpu.memory_space<vmem>>, vector<1x4x32xf32>,
    %c1_i32 = arith.constant 1 : i32
    %91 = arith.index_cast %c1_i32 : i32 to index
    %c0_66 = arith.constant 0 : index
    %c0_67 = arith.constant 0 : index
    %92 = vector.load %arg5[%91, %c0_66, %c0_67] : memref<8x4x128xf32, #tpu.memory_space<vmem>>, vector<1x4x128xf32>
    %93 = vector.shape_cast %92 : vector<1x4x128xf32> to vector<4x128xf32>
    %c0_68 = arith.constant 0 : index
    %c0_69 = arith.constant 0 : index
    %94 = vector.load %arg8[%c0_68, %c0_69] : memref<4x32xf32, #tpu.memory_space<vmem>>, vector<4x32xf32>
    %cst_70 = arith.constant dense<0.000000e+00> : vector<4x128xf32>
    %95 = tpu.matmul %94, %29, %cst_70 {dimension_numbers = #tpu.dot_dimension_numbers<[1], [0], [0], [1], [0, 0, 1, 1], [], []>} : vector<4x32xf32>, vector<32x128xf32>, vector<4x128xf32> -> vector<4x128xf32>
    %96 = arith.addf %93, %95 : vector<4x128xf32>
    %c0_71 = arith.constant 0 : index
    %c0_72 = arith.constant 0 : index
    %97 = vector.load %arg9[%c0_71, %c0_72] : memref<4x32xf32, #tpu.memory_space<vmem>>, vector<4x32xf32>
    %98 = vector.extract_strided_slice %96 {offsets = [0, 0], sizes = [4, 96], strides = [1, 1]} : vector<4x128xf32> to vector<4x96xf32>
    %99 = arith.negf %98 : vector<4x96xf32>
    %100 = math.exp %99 : vector<4x96xf32>
    %cst_73 = arith.constant 1.000000e+00 : f32
    %101 = vector.broadcast %cst_73 : f32 to vector<4x96xf32>
    %102 = arith.addf %101, %100 : vector<4x96xf32>
    %103 = arith.divf %101, %102 : vector<4x96xf32>
    %104 = vector.extract_strided_slice %96 {offsets = [0, 96], sizes = [4, 32], strides = [1, 1]} : vector<4x128xf32> to vector<4x32xf32>
    %105 = math.tanh %104 : vector<4x32xf32>
    %106 = vector.extract_strided_slice %103 {offsets = [0, 0], sizes = [4, 32], strides = [1, 1]} : vector<4x96xf32> to vector<4x32xf32>
    %107 = vector.extract_strided_slice %103 {offsets = [0, 32], sizes = [4, 32], strides = [1, 1]} : vector<4x96xf32> to vector<4x32xf32>
    %108 = vector.extract_strided_slice %103 {offsets = [0, 64], sizes = [4, 32], strides = [1, 1]} : vector<4x96xf32> to vector<4x32xf32>
    %109 = arith.mulf %107, %97 : vector<4x32xf32>
    %110 = arith.mulf %106, %105 : vector<4x32xf32>
    %111 = arith.addf %109, %110 : vector<4x32xf32>
    %112 = math.tanh %111 : vector<4x32xf32>
    %113 = arith.mulf %108, %112 : vector<4x32xf32>
    %c0_74 = arith.constant 0 : index
    %c0_75 = arith.constant 0 : index
    %114 = vector.load %arg8[%c0_74, %c0_75] : memref<4x32xf32, #tpu.memory_space<vmem>>, vector<4x32xf32>
    tpu.vector_store %arg8[%c0_74, %c0_75], %113 {strides = array<i32>} : memref<4x32xf32, #tpu.memory_space<vmem>>, vector<4x32xf32>,
    %c0_76 = arith.constant 0 : index
    %c0_77 = arith.constant 0 : index
    %115 = vector.load %arg9[%c0_76, %c0_77] : memref<4x32xf32, #tpu.memory_space<vmem>>, vector<4x32xf32>
    tpu.vector_store %arg9[%c0_76, %c0_77], %111 {strides = array<i32>} : memref<4x32xf32, #tpu.memory_space<vmem>>, vector<4x32xf32>,
    %116 = arith.index_cast %c1_i32 : i32 to index
    %c0_78 = arith.constant 0 : index
    %c0_79 = arith.constant 0 : index
    %117 = vector.load %arg4[%116, %c0_78, %c0_79] : memref<8x4x32xf32, #tpu.memory_space<vmem>>, vector<1x4x32xf32>
    %118 = vector.shape_cast %117 : vector<1x4x32xf32> to vector<4x32xf32>
    %119 = vector.shape_cast %113 : vector<4x32xf32> to vector<1x4x32xf32>
    tpu.vector_store %arg4[%116, %c0_78, %c0_79], %119 {strides = array<i32>} : memref<8x4x32xf32, #tpu.memory_space<vmem>>, vector<1x4x32xf32>,
    %c7_i32_80 = arith.constant 7 : i32
    %120 = arith.subi %c7_i32_80, %c1_i32 : i32
    %121 = arith.index_cast %120 : i32 to index
    %c0_81 = arith.constant 0 : index
    %c0_82 = arith.constant 0 : index
    %122 = vector.load %arg6[%121, %c0_81, %c0_82] : memref<8x4x128xf32, #tpu.memory_space<vmem>>, vector<1x4x128xf32>
    %123 = vector.shape_cast %122 : vector<1x4x128xf32> to vector<4x128xf32>
    %c0_83 = arith.constant 0 : index
    %c0_84 = arith.constant 0 : index
    %124 = vector.load %arg10[%c0_83, %c0_84] : memref<4x32xf32, #tpu.memory_space<vmem>>, vector<4x32xf32>
    %cst_85 = arith.constant dense<0.000000e+00> : vector<4x128xf32>
    %125 = tpu.matmul %124, %31, %cst_85 {dimension_numbers = #tpu.dot_dimension_numbers<[1], [0], [0], [1], [0, 0, 1, 1], [], []>} : vector<4x32xf32>, vector<32x128xf32>, vector<4x128xf32> -> vector<4x128xf32>
    %126 = arith.addf %123, %125 : vector<4x128xf32>
    %c0_86 = arith.constant 0 : index
    %c0_87 = arith.constant 0 : index
    %127 = vector.load %arg11[%c0_86, %c0_87] : memref<4x32xf32, #tpu.memory_space<vmem>>, vector<4x32xf32>
    %128 = vector.extract_strided_slice %126 {offsets = [0, 0], sizes = [4, 96], strides = [1, 1]} : vector<4x128xf32> to vector<4x96xf32>
    %129 = arith.negf %128 : vector<4x96xf32>
    %130 = math.exp %129 : vector<4x96xf32>
    %cst_88 = arith.constant 1.000000e+00 : f32
    %131 = vector.broadcast %cst_88 : f32 to vector<4x96xf32>
    %132 = arith.addf %131, %130 : vector<4x96xf32>
    %133 = arith.divf %131, %132 : vector<4x96xf32>
    %134 = vector.extract_strided_slice %126 {offsets = [0, 96], sizes = [4, 32], strides = [1, 1]} : vector<4x128xf32> to vector<4x32xf32>
    %135 = math.tanh %134 : vector<4x32xf32>
    %136 = vector.extract_strided_slice %133 {offsets = [0, 0], sizes = [4, 32], strides = [1, 1]} : vector<4x96xf32> to vector<4x32xf32>
    %137 = vector.extract_strided_slice %133 {offsets = [0, 32], sizes = [4, 32], strides = [1, 1]} : vector<4x96xf32> to vector<4x32xf32>
    %138 = vector.extract_strided_slice %133 {offsets = [0, 64], sizes = [4, 32], strides = [1, 1]} : vector<4x96xf32> to vector<4x32xf32>
    %139 = arith.mulf %137, %127 : vector<4x32xf32>
    %140 = arith.mulf %136, %135 : vector<4x32xf32>
    %141 = arith.addf %139, %140 : vector<4x32xf32>
    %142 = math.tanh %141 : vector<4x32xf32>
    %143 = arith.mulf %138, %142 : vector<4x32xf32>
    %c0_89 = arith.constant 0 : index
    %c0_90 = arith.constant 0 : index
    %144 = vector.load %arg10[%c0_89, %c0_90] : memref<4x32xf32, #tpu.memory_space<vmem>>, vector<4x32xf32>
    tpu.vector_store %arg10[%c0_89, %c0_90], %143 {strides = array<i32>} : memref<4x32xf32, #tpu.memory_space<vmem>>, vector<4x32xf32>,
    %c0_91 = arith.constant 0 : index
    %c0_92 = arith.constant 0 : index
    %145 = vector.load %arg11[%c0_91, %c0_92] : memref<4x32xf32, #tpu.memory_space<vmem>>, vector<4x32xf32>
    tpu.vector_store %arg11[%c0_91, %c0_92], %141 {strides = array<i32>} : memref<4x32xf32, #tpu.memory_space<vmem>>, vector<4x32xf32>,
    %146 = arith.index_cast %120 : i32 to index
    %c0_93 = arith.constant 0 : index
    %c0_94 = arith.constant 0 : index
    %147 = vector.load %arg7[%146, %c0_93, %c0_94] : memref<8x4x32xf32, #tpu.memory_space<vmem>>, vector<1x4x32xf32>
    %148 = vector.shape_cast %147 : vector<1x4x32xf32> to vector<4x32xf32>
    %149 = vector.shape_cast %143 : vector<4x32xf32> to vector<1x4x32xf32>
    tpu.vector_store %arg7[%146, %c0_93, %c0_94], %149 {strides = array<i32>} : memref<8x4x32xf32, #tpu.memory_space<vmem>>, vector<1x4x32xf32>,
    %c2_i32 = arith.constant 2 : i32
    %150 = arith.index_cast %c2_i32 : i32 to index
    %c0_95 = arith.constant 0 : index
    %c0_96 = arith.constant 0 : index
    %151 = vector.load %arg5[%150, %c0_95, %c0_96] : memref<8x4x128xf32, #tpu.memory_space<vmem>>, vector<1x4x128xf32>
    %152 = vector.shape_cast %151 : vector<1x4x128xf32> to vector<4x128xf32>
    %c0_97 = arith.constant 0 : index
    %c0_98 = arith.constant 0 : index
    %153 = vector.load %arg8[%c0_97, %c0_98] : memref<4x32xf32, #tpu.memory_space<vmem>>, vector<4x32xf32>
    %cst_99 = arith.constant dense<0.000000e+00> : vector<4x128xf32>
    %154 = tpu.matmul %153, %29, %cst_99 {dimension_numbers = #tpu.dot_dimension_numbers<[1], [0], [0], [1], [0, 0, 1, 1], [], []>} : vector<4x32xf32>, vector<32x128xf32>, vector<4x128xf32> -> vector<4x128xf32>
    %155 = arith.addf %152, %154 : vector<4x128xf32>
    %c0_100 = arith.constant 0 : index
    %c0_101 = arith.constant 0 : index
    %156 = vector.load %arg9[%c0_100, %c0_101] : memref<4x32xf32, #tpu.memory_space<vmem>>, vector<4x32xf32>
    %157 = vector.extract_strided_slice %155 {offsets = [0, 0], sizes = [4, 96], strides = [1, 1]} : vector<4x128xf32> to vector<4x96xf32>
    %158 = arith.negf %157 : vector<4x96xf32>
    %159 = math.exp %158 : vector<4x96xf32>
    %cst_102 = arith.constant 1.000000e+00 : f32
    %160 = vector.broadcast %cst_102 : f32 to vector<4x96xf32>
    %161 = arith.addf %160, %159 : vector<4x96xf32>
    %162 = arith.divf %160, %161 : vector<4x96xf32>
    %163 = vector.extract_strided_slice %155 {offsets = [0, 96], sizes = [4, 32], strides = [1, 1]} : vector<4x128xf32> to vector<4x32xf32>
    %164 = math.tanh %163 : vector<4x32xf32>
    %165 = vector.extract_strided_slice %162 {offsets = [0, 0], sizes = [4, 32], strides = [1, 1]} : vector<4x96xf32> to vector<4x32xf32>
    %166 = vector.extract_strided_slice %162 {offsets = [0, 32], sizes = [4, 32], strides = [1, 1]} : vector<4x96xf32> to vector<4x32xf32>
    %167 = vector.extract_strided_slice %162 {offsets = [0, 64], sizes = [4, 32], strides = [1, 1]} : vector<4x96xf32> to vector<4x32xf32>
    %168 = arith.mulf %166, %156 : vector<4x32xf32>
    %169 = arith.mulf %165, %164 : vector<4x32xf32>
    %170 = arith.addf %168, %169 : vector<4x32xf32>
    %171 = math.tanh %170 : vector<4x32xf32>
    %172 = arith.mulf %167, %171 : vector<4x32xf32>
    %c0_103 = arith.constant 0 : index
    %c0_104 = arith.constant 0 : index
    %173 = vector.load %arg8[%c0_103, %c0_104] : memref<4x32xf32, #tpu.memory_space<vmem>>, vector<4x32xf32>
    tpu.vector_store %arg8[%c0_103, %c0_104], %172 {strides = array<i32>} : memref<4x32xf32, #tpu.memory_space<vmem>>, vector<4x32xf32>,
    %c0_105 = arith.constant 0 : index
    %c0_106 = arith.constant 0 : index
    %174 = vector.load %arg9[%c0_105, %c0_106] : memref<4x32xf32, #tpu.memory_space<vmem>>, vector<4x32xf32>
    tpu.vector_store %arg9[%c0_105, %c0_106], %170 {strides = array<i32>} : memref<4x32xf32, #tpu.memory_space<vmem>>, vector<4x32xf32>,
    %175 = arith.index_cast %c2_i32 : i32 to index
    %c0_107 = arith.constant 0 : index
    %c0_108 = arith.constant 0 : index
    %176 = vector.load %arg4[%175, %c0_107, %c0_108] : memref<8x4x32xf32, #tpu.memory_space<vmem>>, vector<1x4x32xf32>
    %177 = vector.shape_cast %176 : vector<1x4x32xf32> to vector<4x32xf32>
    %178 = vector.shape_cast %172 : vector<4x32xf32> to vector<1x4x32xf32>
    tpu.vector_store %arg4[%175, %c0_107, %c0_108], %178 {strides = array<i32>} : memref<8x4x32xf32, #tpu.memory_space<vmem>>, vector<1x4x32xf32>,
    %c7_i32_109 = arith.constant 7 : i32
    %179 = arith.subi %c7_i32_109, %c2_i32 : i32
    %180 = arith.index_cast %179 : i32 to index
    %c0_110 = arith.constant 0 : index
    %c0_111 = arith.constant 0 : index
    %181 = vector.load %arg6[%180, %c0_110, %c0_111] : memref<8x4x128xf32, #tpu.memory_space<vmem>>, vector<1x4x128xf32>
    %182 = vector.shape_cast %181 : vector<1x4x128xf32> to vector<4x128xf32>
    %c0_112 = arith.constant 0 : index
    %c0_113 = arith.constant 0 : index
    %183 = vector.load %arg10[%c0_112, %c0_113] : memref<4x32xf32, #tpu.memory_space<vmem>>, vector<4x32xf32>
    %cst_114 = arith.constant dense<0.000000e+00> : vector<4x128xf32>
    %184 = tpu.matmul %183, %31, %cst_114 {dimension_numbers = #tpu.dot_dimension_numbers<[1], [0], [0], [1], [0, 0, 1, 1], [], []>} : vector<4x32xf32>, vector<32x128xf32>, vector<4x128xf32> -> vector<4x128xf32>
    %185 = arith.addf %182, %184 : vector<4x128xf32>
    %c0_115 = arith.constant 0 : index
    %c0_116 = arith.constant 0 : index
    %186 = vector.load %arg11[%c0_115, %c0_116] : memref<4x32xf32, #tpu.memory_space<vmem>>, vector<4x32xf32>
    %187 = vector.extract_strided_slice %185 {offsets = [0, 0], sizes = [4, 96], strides = [1, 1]} : vector<4x128xf32> to vector<4x96xf32>
    %188 = arith.negf %187 : vector<4x96xf32>
    %189 = math.exp %188 : vector<4x96xf32>
    %cst_117 = arith.constant 1.000000e+00 : f32
    %190 = vector.broadcast %cst_117 : f32 to vector<4x96xf32>
    %191 = arith.addf %190, %189 : vector<4x96xf32>
    %192 = arith.divf %190, %191 : vector<4x96xf32>
    %193 = vector.extract_strided_slice %185 {offsets = [0, 96], sizes = [4, 32], strides = [1, 1]} : vector<4x128xf32> to vector<4x32xf32>
    %194 = math.tanh %193 : vector<4x32xf32>
    %195 = vector.extract_strided_slice %192 {offsets = [0, 0], sizes = [4, 32], strides = [1, 1]} : vector<4x96xf32> to vector<4x32xf32>
    %196 = vector.extract_strided_slice %192 {offsets = [0, 32], sizes = [4, 32], strides = [1, 1]} : vector<4x96xf32> to vector<4x32xf32>
    %197 = vector.extract_strided_slice %192 {offsets = [0, 64], sizes = [4, 32], strides = [1, 1]} : vector<4x96xf32> to vector<4x32xf32>
    %198 = arith.mulf %196, %186 : vector<4x32xf32>
    %199 = arith.mulf %195, %194 : vector<4x32xf32>
    %200 = arith.addf %198, %199 : vector<4x32xf32>
    %201 = math.tanh %200 : vector<4x32xf32>
    %202 = arith.mulf %197, %201 : vector<4x32xf32>
    %c0_118 = arith.constant 0 : index
    %c0_119 = arith.constant 0 : index
    %203 = vector.load %arg10[%c0_118, %c0_119] : memref<4x32xf32, #tpu.memory_space<vmem>>, vector<4x32xf32>
    tpu.vector_store %arg10[%c0_118, %c0_119], %202 {strides = array<i32>} : memref<4x32xf32, #tpu.memory_space<vmem>>, vector<4x32xf32>,
    %c0_120 = arith.constant 0 : index
    %c0_121 = arith.constant 0 : index
    %204 = vector.load %arg11[%c0_120, %c0_121] : memref<4x32xf32, #tpu.memory_space<vmem>>, vector<4x32xf32>
    tpu.vector_store %arg11[%c0_120, %c0_121], %200 {strides = array<i32>} : memref<4x32xf32, #tpu.memory_space<vmem>>, vector<4x32xf32>,
    %205 = arith.index_cast %179 : i32 to index
    %c0_122 = arith.constant 0 : index
    %c0_123 = arith.constant 0 : index
    %206 = vector.load %arg7[%205, %c0_122, %c0_123] : memref<8x4x32xf32, #tpu.memory_space<vmem>>, vector<1x4x32xf32>
    %207 = vector.shape_cast %206 : vector<1x4x32xf32> to vector<4x32xf32>
    %208 = vector.shape_cast %202 : vector<4x32xf32> to vector<1x4x32xf32>
    tpu.vector_store %arg7[%205, %c0_122, %c0_123], %208 {strides = array<i32>} : memref<8x4x32xf32, #tpu.memory_space<vmem>>, vector<1x4x32xf32>,
    %c3_i32 = arith.constant 3 : i32
    %209 = arith.index_cast %c3_i32 : i32 to index
    %c0_124 = arith.constant 0 : index
    %c0_125 = arith.constant 0 : index
    %210 = vector.load %arg5[%209, %c0_124, %c0_125] : memref<8x4x128xf32, #tpu.memory_space<vmem>>, vector<1x4x128xf32>
    %211 = vector.shape_cast %210 : vector<1x4x128xf32> to vector<4x128xf32>
    %c0_126 = arith.constant 0 : index
    %c0_127 = arith.constant 0 : index
    %212 = vector.load %arg8[%c0_126, %c0_127] : memref<4x32xf32, #tpu.memory_space<vmem>>, vector<4x32xf32>
    %cst_128 = arith.constant dense<0.000000e+00> : vector<4x128xf32>
    %213 = tpu.matmul %212, %29, %cst_128 {dimension_numbers = #tpu.dot_dimension_numbers<[1], [0], [0], [1], [0, 0, 1, 1], [], []>} : vector<4x32xf32>, vector<32x128xf32>, vector<4x128xf32> -> vector<4x128xf32>
    %214 = arith.addf %211, %213 : vector<4x128xf32>
    %c0_129 = arith.constant 0 : index
    %c0_130 = arith.constant 0 : index
    %215 = vector.load %arg9[%c0_129, %c0_130] : memref<4x32xf32, #tpu.memory_space<vmem>>, vector<4x32xf32>
    %216 = vector.extract_strided_slice %214 {offsets = [0, 0], sizes = [4, 96], strides = [1, 1]} : vector<4x128xf32> to vector<4x96xf32>
    %217 = arith.negf %216 : vector<4x96xf32>
    %218 = math.exp %217 : vector<4x96xf32>
    %cst_131 = arith.constant 1.000000e+00 : f32
    %219 = vector.broadcast %cst_131 : f32 to vector<4x96xf32>
    %220 = arith.addf %219, %218 : vector<4x96xf32>
    %221 = arith.divf %219, %220 : vector<4x96xf32>
    %222 = vector.extract_strided_slice %214 {offsets = [0, 96], sizes = [4, 32], strides = [1, 1]} : vector<4x128xf32> to vector<4x32xf32>
    %223 = math.tanh %222 : vector<4x32xf32>
    %224 = vector.extract_strided_slice %221 {offsets = [0, 0], sizes = [4, 32], strides = [1, 1]} : vector<4x96xf32> to vector<4x32xf32>
    %225 = vector.extract_strided_slice %221 {offsets = [0, 32], sizes = [4, 32], strides = [1, 1]} : vector<4x96xf32> to vector<4x32xf32>
    %226 = vector.extract_strided_slice %221 {offsets = [0, 64], sizes = [4, 32], strides = [1, 1]} : vector<4x96xf32> to vector<4x32xf32>
    %227 = arith.mulf %225, %215 : vector<4x32xf32>
    %228 = arith.mulf %224, %223 : vector<4x32xf32>
    %229 = arith.addf %227, %228 : vector<4x32xf32>
    %230 = math.tanh %229 : vector<4x32xf32>
    %231 = arith.mulf %226, %230 : vector<4x32xf32>
    %c0_132 = arith.constant 0 : index
    %c0_133 = arith.constant 0 : index
    %232 = vector.load %arg8[%c0_132, %c0_133] : memref<4x32xf32, #tpu.memory_space<vmem>>, vector<4x32xf32>
    tpu.vector_store %arg8[%c0_132, %c0_133], %231 {strides = array<i32>} : memref<4x32xf32, #tpu.memory_space<vmem>>, vector<4x32xf32>,
    %c0_134 = arith.constant 0 : index
    %c0_135 = arith.constant 0 : index
    %233 = vector.load %arg9[%c0_134, %c0_135] : memref<4x32xf32, #tpu.memory_space<vmem>>, vector<4x32xf32>
    tpu.vector_store %arg9[%c0_134, %c0_135], %229 {strides = array<i32>} : memref<4x32xf32, #tpu.memory_space<vmem>>, vector<4x32xf32>,
    %234 = arith.index_cast %c3_i32 : i32 to index
    %c0_136 = arith.constant 0 : index
    %c0_137 = arith.constant 0 : index
    %235 = vector.load %arg4[%234, %c0_136, %c0_137] : memref<8x4x32xf32, #tpu.memory_space<vmem>>, vector<1x4x32xf32>
    %236 = vector.shape_cast %235 : vector<1x4x32xf32> to vector<4x32xf32>
    %237 = vector.shape_cast %231 : vector<4x32xf32> to vector<1x4x32xf32>
    tpu.vector_store %arg4[%234, %c0_136, %c0_137], %237 {strides = array<i32>} : memref<8x4x32xf32, #tpu.memory_space<vmem>>, vector<1x4x32xf32>,
    %c7_i32_138 = arith.constant 7 : i32
    %238 = arith.subi %c7_i32_138, %c3_i32 : i32
    %239 = arith.index_cast %238 : i32 to index
    %c0_139 = arith.constant 0 : index
    %c0_140 = arith.constant 0 : index
    %240 = vector.load %arg6[%239, %c0_139, %c0_140] : memref<8x4x128xf32, #tpu.memory_space<vmem>>, vector<1x4x128xf32>
    %241 = vector.shape_cast %240 : vector<1x4x128xf32> to vector<4x128xf32>
    %c0_141 = arith.constant 0 : index
    %c0_142 = arith.constant 0 : index
    %242 = vector.load %arg10[%c0_141, %c0_142] : memref<4x32xf32, #tpu.memory_space<vmem>>, vector<4x32xf32>
    %cst_143 = arith.constant dense<0.000000e+00> : vector<4x128xf32>
    %243 = tpu.matmul %242, %31, %cst_143 {dimension_numbers = #tpu.dot_dimension_numbers<[1], [0], [0], [1], [0, 0, 1, 1], [], []>} : vector<4x32xf32>, vector<32x128xf32>, vector<4x128xf32> -> vector<4x128xf32>
    %244 = arith.addf %241, %243 : vector<4x128xf32>
    %c0_144 = arith.constant 0 : index
    %c0_145 = arith.constant 0 : index
    %245 = vector.load %arg11[%c0_144, %c0_145] : memref<4x32xf32, #tpu.memory_space<vmem>>, vector<4x32xf32>
    %246 = vector.extract_strided_slice %244 {offsets = [0, 0], sizes = [4, 96], strides = [1, 1]} : vector<4x128xf32> to vector<4x96xf32>
    %247 = arith.negf %246 : vector<4x96xf32>
    %248 = math.exp %247 : vector<4x96xf32>
    %cst_146 = arith.constant 1.000000e+00 : f32
    %249 = vector.broadcast %cst_146 : f32 to vector<4x96xf32>
    %250 = arith.addf %249, %248 : vector<4x96xf32>
    %251 = arith.divf %249, %250 : vector<4x96xf32>
    %252 = vector.extract_strided_slice %244 {offsets = [0, 96], sizes = [4, 32], strides = [1, 1]} : vector<4x128xf32> to vector<4x32xf32>
    %253 = math.tanh %252 : vector<4x32xf32>
    %254 = vector.extract_strided_slice %251 {offsets = [0, 0], sizes = [4, 32], strides = [1, 1]} : vector<4x96xf32> to vector<4x32xf32>
    %255 = vector.extract_strided_slice %251 {offsets = [0, 32], sizes = [4, 32], strides = [1, 1]} : vector<4x96xf32> to vector<4x32xf32>
    %256 = vector.extract_strided_slice %251 {offsets = [0, 64], sizes = [4, 32], strides = [1, 1]} : vector<4x96xf32> to vector<4x32xf32>
    %257 = arith.mulf %255, %245 : vector<4x32xf32>
    %258 = arith.mulf %254, %253 : vector<4x32xf32>
    %259 = arith.addf %257, %258 : vector<4x32xf32>
    %260 = math.tanh %259 : vector<4x32xf32>
    %261 = arith.mulf %256, %260 : vector<4x32xf32>
    %c0_147 = arith.constant 0 : index
    %c0_148 = arith.constant 0 : index
    %262 = vector.load %arg10[%c0_147, %c0_148] : memref<4x32xf32, #tpu.memory_space<vmem>>, vector<4x32xf32>
    tpu.vector_store %arg10[%c0_147, %c0_148], %261 {strides = array<i32>} : memref<4x32xf32, #tpu.memory_space<vmem>>, vector<4x32xf32>,
    %c0_149 = arith.constant 0 : index
    %c0_150 = arith.constant 0 : index
    %263 = vector.load %arg11[%c0_149, %c0_150] : memref<4x32xf32, #tpu.memory_space<vmem>>, vector<4x32xf32>
    tpu.vector_store %arg11[%c0_149, %c0_150], %259 {strides = array<i32>} : memref<4x32xf32, #tpu.memory_space<vmem>>, vector<4x32xf32>,
    %264 = arith.index_cast %238 : i32 to index
    %c0_151 = arith.constant 0 : index
    %c0_152 = arith.constant 0 : index
    %265 = vector.load %arg7[%264, %c0_151, %c0_152] : memref<8x4x32xf32, #tpu.memory_space<vmem>>, vector<1x4x32xf32>
    %266 = vector.shape_cast %265 : vector<1x4x32xf32> to vector<4x32xf32>
    %267 = vector.shape_cast %261 : vector<4x32xf32> to vector<1x4x32xf32>
    tpu.vector_store %arg7[%264, %c0_151, %c0_152], %267 {strides = array<i32>} : memref<8x4x32xf32, #tpu.memory_space<vmem>>, vector<1x4x32xf32>,
    %c4_i32 = arith.constant 4 : i32
    %268 = arith.index_cast %c4_i32 : i32 to index
    %c0_153 = arith.constant 0 : index
    %c0_154 = arith.constant 0 : index
    %269 = vector.load %arg5[%268, %c0_153, %c0_154] : memref<8x4x128xf32, #tpu.memory_space<vmem>>, vector<1x4x128xf32>
    %270 = vector.shape_cast %269 : vector<1x4x128xf32> to vector<4x128xf32>
    %c0_155 = arith.constant 0 : index
    %c0_156 = arith.constant 0 : index
    %271 = vector.load %arg8[%c0_155, %c0_156] : memref<4x32xf32, #tpu.memory_space<vmem>>, vector<4x32xf32>
    %cst_157 = arith.constant dense<0.000000e+00> : vector<4x128xf32>
    %272 = tpu.matmul %271, %29, %cst_157 {dimension_numbers = #tpu.dot_dimension_numbers<[1], [0], [0], [1], [0, 0, 1, 1], [], []>} : vector<4x32xf32>, vector<32x128xf32>, vector<4x128xf32> -> vector<4x128xf32>
    %273 = arith.addf %270, %272 : vector<4x128xf32>
    %c0_158 = arith.constant 0 : index
    %c0_159 = arith.constant 0 : index
    %274 = vector.load %arg9[%c0_158, %c0_159] : memref<4x32xf32, #tpu.memory_space<vmem>>, vector<4x32xf32>
    %275 = vector.extract_strided_slice %273 {offsets = [0, 0], sizes = [4, 96], strides = [1, 1]} : vector<4x128xf32> to vector<4x96xf32>
    %276 = arith.negf %275 : vector<4x96xf32>
    %277 = math.exp %276 : vector<4x96xf32>
    %cst_160 = arith.constant 1.000000e+00 : f32
    %278 = vector.broadcast %cst_160 : f32 to vector<4x96xf32>
    %279 = arith.addf %278, %277 : vector<4x96xf32>
    %280 = arith.divf %278, %279 : vector<4x96xf32>
    %281 = vector.extract_strided_slice %273 {offsets = [0, 96], sizes = [4, 32], strides = [1, 1]} : vector<4x128xf32> to vector<4x32xf32>
    %282 = math.tanh %281 : vector<4x32xf32>
    %283 = vector.extract_strided_slice %280 {offsets = [0, 0], sizes = [4, 32], strides = [1, 1]} : vector<4x96xf32> to vector<4x32xf32>
    %284 = vector.extract_strided_slice %280 {offsets = [0, 32], sizes = [4, 32], strides = [1, 1]} : vector<4x96xf32> to vector<4x32xf32>
    %285 = vector.extract_strided_slice %280 {offsets = [0, 64], sizes = [4, 32], strides = [1, 1]} : vector<4x96xf32> to vector<4x32xf32>
    %286 = arith.mulf %284, %274 : vector<4x32xf32>
    %287 = arith.mulf %283, %282 : vector<4x32xf32>
    %288 = arith.addf %286, %287 : vector<4x32xf32>
    %289 = math.tanh %288 : vector<4x32xf32>
    %290 = arith.mulf %285, %289 : vector<4x32xf32>
    %c0_161 = arith.constant 0 : index
    %c0_162 = arith.constant 0 : index
    %291 = vector.load %arg8[%c0_161, %c0_162] : memref<4x32xf32, #tpu.memory_space<vmem>>, vector<4x32xf32>
    tpu.vector_store %arg8[%c0_161, %c0_162], %290 {strides = array<i32>} : memref<4x32xf32, #tpu.memory_space<vmem>>, vector<4x32xf32>,
    %c0_163 = arith.constant 0 : index
    %c0_164 = arith.constant 0 : index
    %292 = vector.load %arg9[%c0_163, %c0_164] : memref<4x32xf32, #tpu.memory_space<vmem>>, vector<4x32xf32>
    tpu.vector_store %arg9[%c0_163, %c0_164], %288 {strides = array<i32>} : memref<4x32xf32, #tpu.memory_space<vmem>>, vector<4x32xf32>,
    %293 = arith.index_cast %c4_i32 : i32 to index
    %c0_165 = arith.constant 0 : index
    %c0_166 = arith.constant 0 : index
    %294 = vector.load %arg4[%293, %c0_165, %c0_166] : memref<8x4x32xf32, #tpu.memory_space<vmem>>, vector<1x4x32xf32>
    %295 = vector.shape_cast %294 : vector<1x4x32xf32> to vector<4x32xf32>
    %296 = vector.shape_cast %290 : vector<4x32xf32> to vector<1x4x32xf32>
    tpu.vector_store %arg4[%293, %c0_165, %c0_166], %296 {strides = array<i32>} : memref<8x4x32xf32, #tpu.memory_space<vmem>>, vector<1x4x32xf32>,
    %c7_i32_167 = arith.constant 7 : i32
    %297 = arith.subi %c7_i32_167, %c4_i32 : i32
    %298 = arith.index_cast %297 : i32 to index
    %c0_168 = arith.constant 0 : index
    %c0_169 = arith.constant 0 : index
    %299 = vector.load %arg6[%298, %c0_168, %c0_169] : memref<8x4x128xf32, #tpu.memory_space<vmem>>, vector<1x4x128xf32>
    %300 = vector.shape_cast %299 : vector<1x4x128xf32> to vector<4x128xf32>
    %c0_170 = arith.constant 0 : index
    %c0_171 = arith.constant 0 : index
    %301 = vector.load %arg10[%c0_170, %c0_171] : memref<4x32xf32, #tpu.memory_space<vmem>>, vector<4x32xf32>
    %cst_172 = arith.constant dense<0.000000e+00> : vector<4x128xf32>
    %302 = tpu.matmul %301, %31, %cst_172 {dimension_numbers = #tpu.dot_dimension_numbers<[1], [0], [0], [1], [0, 0, 1, 1], [], []>} : vector<4x32xf32>, vector<32x128xf32>, vector<4x128xf32> -> vector<4x128xf32>
    %303 = arith.addf %300, %302 : vector<4x128xf32>
    %c0_173 = arith.constant 0 : index
    %c0_174 = arith.constant 0 : index
    %304 = vector.load %arg11[%c0_173, %c0_174] : memref<4x32xf32, #tpu.memory_space<vmem>>, vector<4x32xf32>
    %305 = vector.extract_strided_slice %303 {offsets = [0, 0], sizes = [4, 96], strides = [1, 1]} : vector<4x128xf32> to vector<4x96xf32>
    %306 = arith.negf %305 : vector<4x96xf32>
    %307 = math.exp %306 : vector<4x96xf32>
    %cst_175 = arith.constant 1.000000e+00 : f32
    %308 = vector.broadcast %cst_175 : f32 to vector<4x96xf32>
    %309 = arith.addf %308, %307 : vector<4x96xf32>
    %310 = arith.divf %308, %309 : vector<4x96xf32>
    %311 = vector.extract_strided_slice %303 {offsets = [0, 96], sizes = [4, 32], strides = [1, 1]} : vector<4x128xf32> to vector<4x32xf32>
    %312 = math.tanh %311 : vector<4x32xf32>
    %313 = vector.extract_strided_slice %310 {offsets = [0, 0], sizes = [4, 32], strides = [1, 1]} : vector<4x96xf32> to vector<4x32xf32>
    %314 = vector.extract_strided_slice %310 {offsets = [0, 32], sizes = [4, 32], strides = [1, 1]} : vector<4x96xf32> to vector<4x32xf32>
    %315 = vector.extract_strided_slice %310 {offsets = [0, 64], sizes = [4, 32], strides = [1, 1]} : vector<4x96xf32> to vector<4x32xf32>
    %316 = arith.mulf %314, %304 : vector<4x32xf32>
    %317 = arith.mulf %313, %312 : vector<4x32xf32>
    %318 = arith.addf %316, %317 : vector<4x32xf32>
    %319 = math.tanh %318 : vector<4x32xf32>
    %320 = arith.mulf %315, %319 : vector<4x32xf32>
    %c0_176 = arith.constant 0 : index
    %c0_177 = arith.constant 0 : index
    %321 = vector.load %arg10[%c0_176, %c0_177] : memref<4x32xf32, #tpu.memory_space<vmem>>, vector<4x32xf32>
    tpu.vector_store %arg10[%c0_176, %c0_177], %320 {strides = array<i32>} : memref<4x32xf32, #tpu.memory_space<vmem>>, vector<4x32xf32>,
    %c0_178 = arith.constant 0 : index
    %c0_179 = arith.constant 0 : index
    %322 = vector.load %arg11[%c0_178, %c0_179] : memref<4x32xf32, #tpu.memory_space<vmem>>, vector<4x32xf32>
    tpu.vector_store %arg11[%c0_178, %c0_179], %318 {strides = array<i32>} : memref<4x32xf32, #tpu.memory_space<vmem>>, vector<4x32xf32>,
    %323 = arith.index_cast %297 : i32 to index
    %c0_180 = arith.constant 0 : index
    %c0_181 = arith.constant 0 : index
    %324 = vector.load %arg7[%323, %c0_180, %c0_181] : memref<8x4x32xf32, #tpu.memory_space<vmem>>, vector<1x4x32xf32>
    %325 = vector.shape_cast %324 : vector<1x4x32xf32> to vector<4x32xf32>
    %326 = vector.shape_cast %320 : vector<4x32xf32> to vector<1x4x32xf32>
    tpu.vector_store %arg7[%323, %c0_180, %c0_181], %326 {strides = array<i32>} : memref<8x4x32xf32, #tpu.memory_space<vmem>>, vector<1x4x32xf32>,
    %c5_i32 = arith.constant 5 : i32
    %327 = arith.index_cast %c5_i32 : i32 to index
    %c0_182 = arith.constant 0 : index
    %c0_183 = arith.constant 0 : index
    %328 = vector.load %arg5[%327, %c0_182, %c0_183] : memref<8x4x128xf32, #tpu.memory_space<vmem>>, vector<1x4x128xf32>
    %329 = vector.shape_cast %328 : vector<1x4x128xf32> to vector<4x128xf32>
    %c0_184 = arith.constant 0 : index
    %c0_185 = arith.constant 0 : index
    %330 = vector.load %arg8[%c0_184, %c0_185] : memref<4x32xf32, #tpu.memory_space<vmem>>, vector<4x32xf32>
    %cst_186 = arith.constant dense<0.000000e+00> : vector<4x128xf32>
    %331 = tpu.matmul %330, %29, %cst_186 {dimension_numbers = #tpu.dot_dimension_numbers<[1], [0], [0], [1], [0, 0, 1, 1], [], []>} : vector<4x32xf32>, vector<32x128xf32>, vector<4x128xf32> -> vector<4x128xf32>
    %332 = arith.addf %329, %331 : vector<4x128xf32>
    %c0_187 = arith.constant 0 : index
    %c0_188 = arith.constant 0 : index
    %333 = vector.load %arg9[%c0_187, %c0_188] : memref<4x32xf32, #tpu.memory_space<vmem>>, vector<4x32xf32>
    %334 = vector.extract_strided_slice %332 {offsets = [0, 0], sizes = [4, 96], strides = [1, 1]} : vector<4x128xf32> to vector<4x96xf32>
    %335 = arith.negf %334 : vector<4x96xf32>
    %336 = math.exp %335 : vector<4x96xf32>
    %cst_189 = arith.constant 1.000000e+00 : f32
    %337 = vector.broadcast %cst_189 : f32 to vector<4x96xf32>
    %338 = arith.addf %337, %336 : vector<4x96xf32>
    %339 = arith.divf %337, %338 : vector<4x96xf32>
    %340 = vector.extract_strided_slice %332 {offsets = [0, 96], sizes = [4, 32], strides = [1, 1]} : vector<4x128xf32> to vector<4x32xf32>
    %341 = math.tanh %340 : vector<4x32xf32>
    %342 = vector.extract_strided_slice %339 {offsets = [0, 0], sizes = [4, 32], strides = [1, 1]} : vector<4x96xf32> to vector<4x32xf32>
    %343 = vector.extract_strided_slice %339 {offsets = [0, 32], sizes = [4, 32], strides = [1, 1]} : vector<4x96xf32> to vector<4x32xf32>
    %344 = vector.extract_strided_slice %339 {offsets = [0, 64], sizes = [4, 32], strides = [1, 1]} : vector<4x96xf32> to vector<4x32xf32>
    %345 = arith.mulf %343, %333 : vector<4x32xf32>
    %346 = arith.mulf %342, %341 : vector<4x32xf32>
    %347 = arith.addf %345, %346 : vector<4x32xf32>
    %348 = math.tanh %347 : vector<4x32xf32>
    %349 = arith.mulf %344, %348 : vector<4x32xf32>
    %c0_190 = arith.constant 0 : index
    %c0_191 = arith.constant 0 : index
    %350 = vector.load %arg8[%c0_190, %c0_191] : memref<4x32xf32, #tpu.memory_space<vmem>>, vector<4x32xf32>
    tpu.vector_store %arg8[%c0_190, %c0_191], %349 {strides = array<i32>} : memref<4x32xf32, #tpu.memory_space<vmem>>, vector<4x32xf32>,
    %c0_192 = arith.constant 0 : index
    %c0_193 = arith.constant 0 : index
    %351 = vector.load %arg9[%c0_192, %c0_193] : memref<4x32xf32, #tpu.memory_space<vmem>>, vector<4x32xf32>
    tpu.vector_store %arg9[%c0_192, %c0_193], %347 {strides = array<i32>} : memref<4x32xf32, #tpu.memory_space<vmem>>, vector<4x32xf32>,
    %352 = arith.index_cast %c5_i32 : i32 to index
    %c0_194 = arith.constant 0 : index
    %c0_195 = arith.constant 0 : index
    %353 = vector.load %arg4[%352, %c0_194, %c0_195] : memref<8x4x32xf32, #tpu.memory_space<vmem>>, vector<1x4x32xf32>
    %354 = vector.shape_cast %353 : vector<1x4x32xf32> to vector<4x32xf32>
    %355 = vector.shape_cast %349 : vector<4x32xf32> to vector<1x4x32xf32>
    tpu.vector_store %arg4[%352, %c0_194, %c0_195], %355 {strides = array<i32>} : memref<8x4x32xf32, #tpu.memory_space<vmem>>, vector<1x4x32xf32>,
    %c7_i32_196 = arith.constant 7 : i32
    %356 = arith.subi %c7_i32_196, %c5_i32 : i32
    %357 = arith.index_cast %356 : i32 to index
    %c0_197 = arith.constant 0 : index
    %c0_198 = arith.constant 0 : index
    %358 = vector.load %arg6[%357, %c0_197, %c0_198] : memref<8x4x128xf32, #tpu.memory_space<vmem>>, vector<1x4x128xf32>
    %359 = vector.shape_cast %358 : vector<1x4x128xf32> to vector<4x128xf32>
    %c0_199 = arith.constant 0 : index
    %c0_200 = arith.constant 0 : index
    %360 = vector.load %arg10[%c0_199, %c0_200] : memref<4x32xf32, #tpu.memory_space<vmem>>, vector<4x32xf32>
    %cst_201 = arith.constant dense<0.000000e+00> : vector<4x128xf32>
    %361 = tpu.matmul %360, %31, %cst_201 {dimension_numbers = #tpu.dot_dimension_numbers<[1], [0], [0], [1], [0, 0, 1, 1], [], []>} : vector<4x32xf32>, vector<32x128xf32>, vector<4x128xf32> -> vector<4x128xf32>
    %362 = arith.addf %359, %361 : vector<4x128xf32>
    %c0_202 = arith.constant 0 : index
    %c0_203 = arith.constant 0 : index
    %363 = vector.load %arg11[%c0_202, %c0_203] : memref<4x32xf32, #tpu.memory_space<vmem>>, vector<4x32xf32>
    %364 = vector.extract_strided_slice %362 {offsets = [0, 0], sizes = [4, 96], strides = [1, 1]} : vector<4x128xf32> to vector<4x96xf32>
    %365 = arith.negf %364 : vector<4x96xf32>
    %366 = math.exp %365 : vector<4x96xf32>
    %cst_204 = arith.constant 1.000000e+00 : f32
    %367 = vector.broadcast %cst_204 : f32 to vector<4x96xf32>
    %368 = arith.addf %367, %366 : vector<4x96xf32>
    %369 = arith.divf %367, %368 : vector<4x96xf32>
    %370 = vector.extract_strided_slice %362 {offsets = [0, 96], sizes = [4, 32], strides = [1, 1]} : vector<4x128xf32> to vector<4x32xf32>
    %371 = math.tanh %370 : vector<4x32xf32>
    %372 = vector.extract_strided_slice %369 {offsets = [0, 0], sizes = [4, 32], strides = [1, 1]} : vector<4x96xf32> to vector<4x32xf32>
    %373 = vector.extract_strided_slice %369 {offsets = [0, 32], sizes = [4, 32], strides = [1, 1]} : vector<4x96xf32> to vector<4x32xf32>
    %374 = vector.extract_strided_slice %369 {offsets = [0, 64], sizes = [4, 32], strides = [1, 1]} : vector<4x96xf32> to vector<4x32xf32>
    %375 = arith.mulf %373, %363 : vector<4x32xf32>
    %376 = arith.mulf %372, %371 : vector<4x32xf32>
    %377 = arith.addf %375, %376 : vector<4x32xf32>
    %378 = math.tanh %377 : vector<4x32xf32>
    %379 = arith.mulf %374, %378 : vector<4x32xf32>
    %c0_205 = arith.constant 0 : index
    %c0_206 = arith.constant 0 : index
    %380 = vector.load %arg10[%c0_205, %c0_206] : memref<4x32xf32, #tpu.memory_space<vmem>>, vector<4x32xf32>
    tpu.vector_store %arg10[%c0_205, %c0_206], %379 {strides = array<i32>} : memref<4x32xf32, #tpu.memory_space<vmem>>, vector<4x32xf32>,
    %c0_207 = arith.constant 0 : index
    %c0_208 = arith.constant 0 : index
    %381 = vector.load %arg11[%c0_207, %c0_208] : memref<4x32xf32, #tpu.memory_space<vmem>>, vector<4x32xf32>
    tpu.vector_store %arg11[%c0_207, %c0_208], %377 {strides = array<i32>} : memref<4x32xf32, #tpu.memory_space<vmem>>, vector<4x32xf32>,
    %382 = arith.index_cast %356 : i32 to index
    %c0_209 = arith.constant 0 : index
    %c0_210 = arith.constant 0 : index
    %383 = vector.load %arg7[%382, %c0_209, %c0_210] : memref<8x4x32xf32, #tpu.memory_space<vmem>>, vector<1x4x32xf32>
    %384 = vector.shape_cast %383 : vector<1x4x32xf32> to vector<4x32xf32>
    %385 = vector.shape_cast %379 : vector<4x32xf32> to vector<1x4x32xf32>
    tpu.vector_store %arg7[%382, %c0_209, %c0_210], %385 {strides = array<i32>} : memref<8x4x32xf32, #tpu.memory_space<vmem>>, vector<1x4x32xf32>,
    %c6_i32 = arith.constant 6 : i32
    %386 = arith.index_cast %c6_i32 : i32 to index
    %c0_211 = arith.constant 0 : index
    %c0_212 = arith.constant 0 : index
    %387 = vector.load %arg5[%386, %c0_211, %c0_212] : memref<8x4x128xf32, #tpu.memory_space<vmem>>, vector<1x4x128xf32>
    %388 = vector.shape_cast %387 : vector<1x4x128xf32> to vector<4x128xf32>
    %c0_213 = arith.constant 0 : index
    %c0_214 = arith.constant 0 : index
    %389 = vector.load %arg8[%c0_213, %c0_214] : memref<4x32xf32, #tpu.memory_space<vmem>>, vector<4x32xf32>
    %cst_215 = arith.constant dense<0.000000e+00> : vector<4x128xf32>
    %390 = tpu.matmul %389, %29, %cst_215 {dimension_numbers = #tpu.dot_dimension_numbers<[1], [0], [0], [1], [0, 0, 1, 1], [], []>} : vector<4x32xf32>, vector<32x128xf32>, vector<4x128xf32> -> vector<4x128xf32>
    %391 = arith.addf %388, %390 : vector<4x128xf32>
    %c0_216 = arith.constant 0 : index
    %c0_217 = arith.constant 0 : index
    %392 = vector.load %arg9[%c0_216, %c0_217] : memref<4x32xf32, #tpu.memory_space<vmem>>, vector<4x32xf32>
    %393 = vector.extract_strided_slice %391 {offsets = [0, 0], sizes = [4, 96], strides = [1, 1]} : vector<4x128xf32> to vector<4x96xf32>
    %394 = arith.negf %393 : vector<4x96xf32>
    %395 = math.exp %394 : vector<4x96xf32>
    %cst_218 = arith.constant 1.000000e+00 : f32
    %396 = vector.broadcast %cst_218 : f32 to vector<4x96xf32>
    %397 = arith.addf %396, %395 : vector<4x96xf32>
    %398 = arith.divf %396, %397 : vector<4x96xf32>
    %399 = vector.extract_strided_slice %391 {offsets = [0, 96], sizes = [4, 32], strides = [1, 1]} : vector<4x128xf32> to vector<4x32xf32>
    %400 = math.tanh %399 : vector<4x32xf32>
    %401 = vector.extract_strided_slice %398 {offsets = [0, 0], sizes = [4, 32], strides = [1, 1]} : vector<4x96xf32> to vector<4x32xf32>
    %402 = vector.extract_strided_slice %398 {offsets = [0, 32], sizes = [4, 32], strides = [1, 1]} : vector<4x96xf32> to vector<4x32xf32>
    %403 = vector.extract_strided_slice %398 {offsets = [0, 64], sizes = [4, 32], strides = [1, 1]} : vector<4x96xf32> to vector<4x32xf32>
    %404 = arith.mulf %402, %392 : vector<4x32xf32>
    %405 = arith.mulf %401, %400 : vector<4x32xf32>
    %406 = arith.addf %404, %405 : vector<4x32xf32>
    %407 = math.tanh %406 : vector<4x32xf32>
    %408 = arith.mulf %403, %407 : vector<4x32xf32>
    %c0_219 = arith.constant 0 : index
    %c0_220 = arith.constant 0 : index
    %409 = vector.load %arg8[%c0_219, %c0_220] : memref<4x32xf32, #tpu.memory_space<vmem>>, vector<4x32xf32>
    tpu.vector_store %arg8[%c0_219, %c0_220], %408 {strides = array<i32>} : memref<4x32xf32, #tpu.memory_space<vmem>>, vector<4x32xf32>,
    %c0_221 = arith.constant 0 : index
    %c0_222 = arith.constant 0 : index
    %410 = vector.load %arg9[%c0_221, %c0_222] : memref<4x32xf32, #tpu.memory_space<vmem>>, vector<4x32xf32>
    tpu.vector_store %arg9[%c0_221, %c0_222], %406 {strides = array<i32>} : memref<4x32xf32, #tpu.memory_space<vmem>>, vector<4x32xf32>,
    %411 = arith.index_cast %c6_i32 : i32 to index
    %c0_223 = arith.constant 0 : index
    %c0_224 = arith.constant 0 : index
    %412 = vector.load %arg4[%411, %c0_223, %c0_224] : memref<8x4x32xf32, #tpu.memory_space<vmem>>, vector<1x4x32xf32>
    %413 = vector.shape_cast %412 : vector<1x4x32xf32> to vector<4x32xf32>
    %414 = vector.shape_cast %408 : vector<4x32xf32> to vector<1x4x32xf32>
    tpu.vector_store %arg4[%411, %c0_223, %c0_224], %414 {strides = array<i32>} : memref<8x4x32xf32, #tpu.memory_space<vmem>>, vector<1x4x32xf32>,
    %c7_i32_225 = arith.constant 7 : i32
    %415 = arith.subi %c7_i32_225, %c6_i32 : i32
    %416 = arith.index_cast %415 : i32 to index
    %c0_226 = arith.constant 0 : index
    %c0_227 = arith.constant 0 : index
    %417 = vector.load %arg6[%416, %c0_226, %c0_227] : memref<8x4x128xf32, #tpu.memory_space<vmem>>, vector<1x4x128xf32>
    %418 = vector.shape_cast %417 : vector<1x4x128xf32> to vector<4x128xf32>
    %c0_228 = arith.constant 0 : index
    %c0_229 = arith.constant 0 : index
    %419 = vector.load %arg10[%c0_228, %c0_229] : memref<4x32xf32, #tpu.memory_space<vmem>>, vector<4x32xf32>
    %cst_230 = arith.constant dense<0.000000e+00> : vector<4x128xf32>
    %420 = tpu.matmul %419, %31, %cst_230 {dimension_numbers = #tpu.dot_dimension_numbers<[1], [0], [0], [1], [0, 0, 1, 1], [], []>} : vector<4x32xf32>, vector<32x128xf32>, vector<4x128xf32> -> vector<4x128xf32>
    %421 = arith.addf %418, %420 : vector<4x128xf32>
    %c0_231 = arith.constant 0 : index
    %c0_232 = arith.constant 0 : index
    %422 = vector.load %arg11[%c0_231, %c0_232] : memref<4x32xf32, #tpu.memory_space<vmem>>, vector<4x32xf32>
    %423 = vector.extract_strided_slice %421 {offsets = [0, 0], sizes = [4, 96], strides = [1, 1]} : vector<4x128xf32> to vector<4x96xf32>
    %424 = arith.negf %423 : vector<4x96xf32>
    %425 = math.exp %424 : vector<4x96xf32>
    %cst_233 = arith.constant 1.000000e+00 : f32
    %426 = vector.broadcast %cst_233 : f32 to vector<4x96xf32>
    %427 = arith.addf %426, %425 : vector<4x96xf32>
    %428 = arith.divf %426, %427 : vector<4x96xf32>
    %429 = vector.extract_strided_slice %421 {offsets = [0, 96], sizes = [4, 32], strides = [1, 1]} : vector<4x128xf32> to vector<4x32xf32>
    %430 = math.tanh %429 : vector<4x32xf32>
    %431 = vector.extract_strided_slice %428 {offsets = [0, 0], sizes = [4, 32], strides = [1, 1]} : vector<4x96xf32> to vector<4x32xf32>
    %432 = vector.extract_strided_slice %428 {offsets = [0, 32], sizes = [4, 32], strides = [1, 1]} : vector<4x96xf32> to vector<4x32xf32>
    %433 = vector.extract_strided_slice %428 {offsets = [0, 64], sizes = [4, 32], strides = [1, 1]} : vector<4x96xf32> to vector<4x32xf32>
    %434 = arith.mulf %432, %422 : vector<4x32xf32>
    %435 = arith.mulf %431, %430 : vector<4x32xf32>
    %436 = arith.addf %434, %435 : vector<4x32xf32>
    %437 = math.tanh %436 : vector<4x32xf32>
    %438 = arith.mulf %433, %437 : vector<4x32xf32>
    %c0_234 = arith.constant 0 : index
    %c0_235 = arith.constant 0 : index
    %439 = vector.load %arg10[%c0_234, %c0_235] : memref<4x32xf32, #tpu.memory_space<vmem>>, vector<4x32xf32>
    tpu.vector_store %arg10[%c0_234, %c0_235], %438 {strides = array<i32>} : memref<4x32xf32, #tpu.memory_space<vmem>>, vector<4x32xf32>,
    %c0_236 = arith.constant 0 : index
    %c0_237 = arith.constant 0 : index
    %440 = vector.load %arg11[%c0_236, %c0_237] : memref<4x32xf32, #tpu.memory_space<vmem>>, vector<4x32xf32>
    tpu.vector_store %arg11[%c0_236, %c0_237], %436 {strides = array<i32>} : memref<4x32xf32, #tpu.memory_space<vmem>>, vector<4x32xf32>,
    %441 = arith.index_cast %415 : i32 to index
    %c0_238 = arith.constant 0 : index
    %c0_239 = arith.constant 0 : index
    %442 = vector.load %arg7[%441, %c0_238, %c0_239] : memref<8x4x32xf32, #tpu.memory_space<vmem>>, vector<1x4x32xf32>
    %443 = vector.shape_cast %442 : vector<1x4x32xf32> to vector<4x32xf32>
    %444 = vector.shape_cast %438 : vector<4x32xf32> to vector<1x4x32xf32>
    tpu.vector_store %arg7[%441, %c0_238, %c0_239], %444 {strides = array<i32>} : memref<8x4x32xf32, #tpu.memory_space<vmem>>, vector<1x4x32xf32>,
    %c7_i32_240 = arith.constant 7 : i32
    %445 = arith.index_cast %c7_i32_240 : i32 to index
    %c0_241 = arith.constant 0 : index
    %c0_242 = arith.constant 0 : index
    %446 = vector.load %arg5[%445, %c0_241, %c0_242] : memref<8x4x128xf32, #tpu.memory_space<vmem>>, vector<1x4x128xf32>
    %447 = vector.shape_cast %446 : vector<1x4x128xf32> to vector<4x128xf32>
    %c0_243 = arith.constant 0 : index
    %c0_244 = arith.constant 0 : index
    %448 = vector.load %arg8[%c0_243, %c0_244] : memref<4x32xf32, #tpu.memory_space<vmem>>, vector<4x32xf32>
    %cst_245 = arith.constant dense<0.000000e+00> : vector<4x128xf32>
    %449 = tpu.matmul %448, %29, %cst_245 {dimension_numbers = #tpu.dot_dimension_numbers<[1], [0], [0], [1], [0, 0, 1, 1], [], []>} : vector<4x32xf32>, vector<32x128xf32>, vector<4x128xf32> -> vector<4x128xf32>
    %450 = arith.addf %447, %449 : vector<4x128xf32>
    %c0_246 = arith.constant 0 : index
    %c0_247 = arith.constant 0 : index
    %451 = vector.load %arg9[%c0_246, %c0_247] : memref<4x32xf32, #tpu.memory_space<vmem>>, vector<4x32xf32>
    %452 = vector.extract_strided_slice %450 {offsets = [0, 0], sizes = [4, 96], strides = [1, 1]} : vector<4x128xf32> to vector<4x96xf32>
    %453 = arith.negf %452 : vector<4x96xf32>
    %454 = math.exp %453 : vector<4x96xf32>
    %cst_248 = arith.constant 1.000000e+00 : f32
    %455 = vector.broadcast %cst_248 : f32 to vector<4x96xf32>
    %456 = arith.addf %455, %454 : vector<4x96xf32>
    %457 = arith.divf %455, %456 : vector<4x96xf32>
    %458 = vector.extract_strided_slice %450 {offsets = [0, 96], sizes = [4, 32], strides = [1, 1]} : vector<4x128xf32> to vector<4x32xf32>
    %459 = math.tanh %458 : vector<4x32xf32>
    %460 = vector.extract_strided_slice %457 {offsets = [0, 0], sizes = [4, 32], strides = [1, 1]} : vector<4x96xf32> to vector<4x32xf32>
    %461 = vector.extract_strided_slice %457 {offsets = [0, 32], sizes = [4, 32], strides = [1, 1]} : vector<4x96xf32> to vector<4x32xf32>
    %462 = vector.extract_strided_slice %457 {offsets = [0, 64], sizes = [4, 32], strides = [1, 1]} : vector<4x96xf32> to vector<4x32xf32>
    %463 = arith.mulf %461, %451 : vector<4x32xf32>
    %464 = arith.mulf %460, %459 : vector<4x32xf32>
    %465 = arith.addf %463, %464 : vector<4x32xf32>
    %466 = math.tanh %465 : vector<4x32xf32>
    %467 = arith.mulf %462, %466 : vector<4x32xf32>
    %c0_249 = arith.constant 0 : index
    %c0_250 = arith.constant 0 : index
    %468 = vector.load %arg8[%c0_249, %c0_250] : memref<4x32xf32, #tpu.memory_space<vmem>>, vector<4x32xf32>
    tpu.vector_store %arg8[%c0_249, %c0_250], %467 {strides = array<i32>} : memref<4x32xf32, #tpu.memory_space<vmem>>, vector<4x32xf32>,
    %c0_251 = arith.constant 0 : index
    %c0_252 = arith.constant 0 : index
    %469 = vector.load %arg9[%c0_251, %c0_252] : memref<4x32xf32, #tpu.memory_space<vmem>>, vector<4x32xf32>
    tpu.vector_store %arg9[%c0_251, %c0_252], %465 {strides = array<i32>} : memref<4x32xf32, #tpu.memory_space<vmem>>, vector<4x32xf32>,
    %470 = arith.index_cast %c7_i32_240 : i32 to index
    %c0_253 = arith.constant 0 : index
    %c0_254 = arith.constant 0 : index
    %471 = vector.load %arg4[%470, %c0_253, %c0_254] : memref<8x4x32xf32, #tpu.memory_space<vmem>>, vector<1x4x32xf32>
    %472 = vector.shape_cast %471 : vector<1x4x32xf32> to vector<4x32xf32>
    %473 = vector.shape_cast %467 : vector<4x32xf32> to vector<1x4x32xf32>
    tpu.vector_store %arg4[%470, %c0_253, %c0_254], %473 {strides = array<i32>} : memref<8x4x32xf32, #tpu.memory_space<vmem>>, vector<1x4x32xf32>,
    %c7_i32_255 = arith.constant 7 : i32
    %474 = arith.subi %c7_i32_255, %c7_i32_240 : i32
    %475 = arith.index_cast %474 : i32 to index
    %c0_256 = arith.constant 0 : index
    %c0_257 = arith.constant 0 : index
    %476 = vector.load %arg6[%475, %c0_256, %c0_257] : memref<8x4x128xf32, #tpu.memory_space<vmem>>, vector<1x4x128xf32>
    %477 = vector.shape_cast %476 : vector<1x4x128xf32> to vector<4x128xf32>
    %c0_258 = arith.constant 0 : index
    %c0_259 = arith.constant 0 : index
    %478 = vector.load %arg10[%c0_258, %c0_259] : memref<4x32xf32, #tpu.memory_space<vmem>>, vector<4x32xf32>
    %cst_260 = arith.constant dense<0.000000e+00> : vector<4x128xf32>
    %479 = tpu.matmul %478, %31, %cst_260 {dimension_numbers = #tpu.dot_dimension_numbers<[1], [0], [0], [1], [0, 0, 1, 1], [], []>} : vector<4x32xf32>, vector<32x128xf32>, vector<4x128xf32> -> vector<4x128xf32>
    %480 = arith.addf %477, %479 : vector<4x128xf32>
    %c0_261 = arith.constant 0 : index
    %c0_262 = arith.constant 0 : index
    %481 = vector.load %arg11[%c0_261, %c0_262] : memref<4x32xf32, #tpu.memory_space<vmem>>, vector<4x32xf32>
    %482 = vector.extract_strided_slice %480 {offsets = [0, 0], sizes = [4, 96], strides = [1, 1]} : vector<4x128xf32> to vector<4x96xf32>
    %483 = arith.negf %482 : vector<4x96xf32>
    %484 = math.exp %483 : vector<4x96xf32>
    %cst_263 = arith.constant 1.000000e+00 : f32
    %485 = vector.broadcast %cst_263 : f32 to vector<4x96xf32>
    %486 = arith.addf %485, %484 : vector<4x96xf32>
    %487 = arith.divf %485, %486 : vector<4x96xf32>
    %488 = vector.extract_strided_slice %480 {offsets = [0, 96], sizes = [4, 32], strides = [1, 1]} : vector<4x128xf32> to vector<4x32xf32>
    %489 = math.tanh %488 : vector<4x32xf32>
    %490 = vector.extract_strided_slice %487 {offsets = [0, 0], sizes = [4, 32], strides = [1, 1]} : vector<4x96xf32> to vector<4x32xf32>
    %491 = vector.extract_strided_slice %487 {offsets = [0, 32], sizes = [4, 32], strides = [1, 1]} : vector<4x96xf32> to vector<4x32xf32>
    %492 = vector.extract_strided_slice %487 {offsets = [0, 64], sizes = [4, 32], strides = [1, 1]} : vector<4x96xf32> to vector<4x32xf32>
    %493 = arith.mulf %491, %481 : vector<4x32xf32>
    %494 = arith.mulf %490, %489 : vector<4x32xf32>
    %495 = arith.addf %493, %494 : vector<4x32xf32>
    %496 = math.tanh %495 : vector<4x32xf32>
    %497 = arith.mulf %492, %496 : vector<4x32xf32>
    %c0_264 = arith.constant 0 : index
    %c0_265 = arith.constant 0 : index
    %498 = vector.load %arg10[%c0_264, %c0_265] : memref<4x32xf32, #tpu.memory_space<vmem>>, vector<4x32xf32>
    tpu.vector_store %arg10[%c0_264, %c0_265], %497 {strides = array<i32>} : memref<4x32xf32, #tpu.memory_space<vmem>>, vector<4x32xf32>,
    %c0_266 = arith.constant 0 : index
    %c0_267 = arith.constant 0 : index
    %499 = vector.load %arg11[%c0_266, %c0_267] : memref<4x32xf32, #tpu.memory_space<vmem>>, vector<4x32xf32>
    tpu.vector_store %arg11[%c0_266, %c0_267], %495 {strides = array<i32>} : memref<4x32xf32, #tpu.memory_space<vmem>>, vector<4x32xf32>,
    %500 = arith.index_cast %474 : i32 to index
    %c0_268 = arith.constant 0 : index
    %c0_269 = arith.constant 0 : index
    %501 = vector.load %arg7[%500, %c0_268, %c0_269] : memref<8x4x32xf32, #tpu.memory_space<vmem>>, vector<1x4x32xf32>
    %502 = vector.shape_cast %501 : vector<1x4x32xf32> to vector<4x32xf32>
    %503 = vector.shape_cast %497 : vector<4x32xf32> to vector<1x4x32xf32>
    tpu.vector_store %arg7[%500, %c0_268, %c0_269], %503 {strides = array<i32>} : memref<8x4x32xf32, #tpu.memory_space<vmem>>, vector<1x4x32xf32>,
    %c8_i32 = arith.constant 8 : i32
    %c0_270 = arith.constant 0 : index
    %c0_271 = arith.constant 0 : index
    %c0_272 = arith.constant 0 : index
    %504 = vector.load %arg4[%c0_270, %c0_271, %c0_272] : memref<8x4x32xf32, #tpu.memory_space<vmem>>, vector<8x4x32xf32>
    %c0_273 = arith.constant 0 : index
    %c0_274 = arith.constant 0 : index
    %c0_275 = arith.constant 0 : index
    %505 = vector.load %arg7[%c0_273, %c0_274, %c0_275] : memref<8x4x32xf32, #tpu.memory_space<vmem>>, vector<8x4x32xf32>
    %506 = arith.addf %504, %505 : vector<8x4x32xf32>
    %cst_276 = arith.constant 5.000000e-01 : f32
    %507 = vector.broadcast %cst_276 : f32 to vector<8x4x32xf32>
    %508 = arith.mulf %507, %506 : vector<8x4x32xf32>
    %c0_277 = arith.constant 0 : index
    %c0_278 = arith.constant 0 : index
    %c0_279 = arith.constant 0 : index
    %509 = vector.load %arg4[%c0_277, %c0_278, %c0_279] : memref<8x4x32xf32, #tpu.memory_space<vmem>>, vector<8x4x32xf32>
    tpu.vector_store %arg4[%c0_277, %c0_278, %c0_279], %508 {strides = array<i32>} : memref<8x4x32xf32, #tpu.memory_space<vmem>>, vector<8x4x32xf32>,
    return
  }
}

module attributes {stable_mosaic.version = 11 : i64} {
  func.func @hybrid_attention_kernel(%arg0: memref<2x8x32xf32, #tpu.memory_space<vmem>>, %arg1: memref<2x8x32xf32, #tpu.memory_space<vmem>>, %arg2: memref<2x8x32xf32, #tpu.memory_space<vmem>>, %arg3: memref<32x32xf32, #tpu.memory_space<vmem>>, %arg4: memref<1x32xf32, #tpu.memory_space<vmem>>, %arg5: memref<32x32xf32, #tpu.memory_space<vmem>>, %arg6: memref<1x32xf32, #tpu.memory_space<vmem>>, %arg7: memref<1x32xf32, #tpu.memory_space<vmem>>, %arg8: memref<32x32xf32, #tpu.memory_space<vmem>>, %arg9: memref<1x32xf32, #tpu.memory_space<vmem>>, %arg10: memref<1x32xf32, #tpu.memory_space<vmem>>, %arg11: memref<32x32xf32, #tpu.memory_space<vmem>>, %arg12: memref<32x32xf32, #tpu.memory_space<vmem>>, %arg13: memref<32x32xf32, #tpu.memory_space<vmem>>, %arg14: memref<32x32xf32, #tpu.memory_space<vmem>>, %arg15: memref<32x32xf32, #tpu.memory_space<vmem>>, %arg16: memref<32x3xf32, #tpu.memory_space<vmem>>, %arg17: memref<1x3xf32, #tpu.memory_space<vmem>>, %arg18: memref<2x3xf32, #tpu.memory_space<vmem>>) attributes {dimension_semantics = [], scalar_prefetch = 0 : i64, scratch_operands = 0 : i64, tpu.core_type = #tpu.core_type<tc>} {
    %c0 = arith.constant 0 : index
    %c0_0 = arith.constant 0 : index
    %c0_1 = arith.constant 0 : index
    %0 = vector.load %arg0[%c0, %c0_0, %c0_1] : memref<2x8x32xf32, #tpu.memory_space<vmem>>, vector<2x8x32xf32>
    %c0_2 = arith.constant 0 : index
    %c0_3 = arith.constant 0 : index
    %c0_4 = arith.constant 0 : index
    %1 = vector.load %arg1[%c0_2, %c0_3, %c0_4] : memref<2x8x32xf32, #tpu.memory_space<vmem>>, vector<2x8x32xf32>
    %c0_5 = arith.constant 0 : index
    %c0_6 = arith.constant 0 : index
    %c0_7 = arith.constant 0 : index
    %2 = vector.load %arg2[%c0_5, %c0_6, %c0_7] : memref<2x8x32xf32, #tpu.memory_space<vmem>>, vector<2x8x32xf32>
    %cst = arith.constant dense<0.000000e+00> : vector<2x32xf32>
    %3 = vector.multi_reduction <add>, %2, %cst [1] : vector<2x8x32xf32> to vector<2x32xf32>
    %cst_8 = arith.constant 8.000000e+00 : f32
    %4 = vector.broadcast %cst_8 : f32 to vector<2x32xf32>
    %5 = arith.divf %3, %4 : vector<2x32xf32>
    %c0_9 = arith.constant 0 : index
    %c0_10 = arith.constant 0 : index
    %6 = vector.load %arg3[%c0_9, %c0_10] : memref<32x32xf32, #tpu.memory_space<vmem>>, vector<32x32xf32>
    %cst_11 = arith.constant dense<0.000000e+00> : vector<2x32xf32>
    %7 = tpu.matmul %5, %6, %cst_11 {dimension_numbers = #tpu.dot_dimension_numbers<[1], [0], [0], [1], [0, 0, 1, 1], [], []>} : vector<2x32xf32>, vector<32x32xf32>, vector<2x32xf32> -> vector<2x32xf32>
    %c0_12 = arith.constant 0 : index
    %c0_13 = arith.constant 0 : index
    %8 = vector.load %arg4[%c0_12, %c0_13] : memref<1x32xf32, #tpu.memory_space<vmem>>, vector<1x32xf32>
    %9 = vector.broadcast %8 : vector<1x32xf32> to vector<2x32xf32>
    %10 = arith.addf %7, %9 : vector<2x32xf32>
    %11 = math.tanh %10 : vector<2x32xf32>
    %c0_14 = arith.constant 0 : index
    %c0_15 = arith.constant 0 : index
    %12 = vector.load %arg5[%c0_14, %c0_15] : memref<32x32xf32, #tpu.memory_space<vmem>>, vector<32x32xf32>
    %c0_16 = arith.constant 0 : index
    %c0_17 = arith.constant 0 : index
    %13 = vector.load %arg6[%c0_16, %c0_17] : memref<1x32xf32, #tpu.memory_space<vmem>>, vector<1x32xf32>
    %c0_18 = arith.constant 0 : index
    %c0_19 = arith.constant 0 : index
    %14 = vector.load %arg7[%c0_18, %c0_19] : memref<1x32xf32, #tpu.memory_space<vmem>>, vector<1x32xf32>
    %15 = vector.shape_cast %0 : vector<2x8x32xf32> to vector<16x32xf32>
    %cst_20 = arith.constant dense<0.000000e+00> : vector<16x32xf32>
    %16 = tpu.matmul %15, %12, %cst_20 {dimension_numbers = #tpu.dot_dimension_numbers<[1], [0], [0], [1], [0, 0, 1, 1], [], []>} : vector<16x32xf32>, vector<32x32xf32>, vector<16x32xf32> -> vector<16x32xf32>
    %17 = vector.broadcast %13 : vector<1x32xf32> to vector<16x32xf32>
    %18 = arith.addf %16, %17 : vector<16x32xf32>
    %19 = math.tanh %18 : vector<16x32xf32>
    %20 = vector.shape_cast %19 : vector<16x32xf32> to vector<2x8x32xf32>
    %21 = vector.shape_cast %14 : vector<1x32xf32> to vector<1x1x32xf32>
    %22 = vector.broadcast %21 : vector<1x1x32xf32> to vector<2x8x32xf32>
    %23 = arith.mulf %20, %22 : vector<2x8x32xf32>
    %cst_21 = arith.constant dense<0.000000e+00> : vector<2x8xf32>
    %24 = vector.multi_reduction <add>, %23, %cst_21 [2] : vector<2x8x32xf32> to vector<2x8xf32>
    %cst_22 = arith.constant dense<0xFF800000> : vector<2xf32>
    %25 = vector.multi_reduction <maximumf>, %24, %cst_22 [1] : vector<2x8xf32> to vector<2xf32>
    %cst_23 = arith.constant 0xFF800000 : f32
    %26 = vector.broadcast %cst_23 : f32 to vector<2xf32>
    %27 = arith.maximumf %26, %25 : vector<2xf32>
    %28 = vector.shape_cast %27 : vector<2xf32> to vector<2x1xf32>
    %29 = vector.broadcast %28 : vector<2x1xf32> to vector<2x8xf32>
    %30 = arith.subf %24, %29 : vector<2x8xf32>
    %31 = math.exp %30 : vector<2x8xf32>
    %cst_24 = arith.constant dense<0.000000e+00> : vector<2xf32>
    %32 = vector.multi_reduction <add>, %31, %cst_24 [1] : vector<2x8xf32> to vector<2xf32>
    %33 = vector.shape_cast %32 : vector<2xf32> to vector<2x1xf32>
    %34 = vector.broadcast %33 : vector<2x1xf32> to vector<2x8xf32>
    %35 = arith.divf %31, %34 : vector<2x8xf32>
    %c0_25 = arith.constant 0 : index
    %c0_26 = arith.constant 0 : index
    %36 = vector.load %arg8[%c0_25, %c0_26] : memref<32x32xf32, #tpu.memory_space<vmem>>, vector<32x32xf32>
    %c0_27 = arith.constant 0 : index
    %c0_28 = arith.constant 0 : index
    %37 = vector.load %arg9[%c0_27, %c0_28] : memref<1x32xf32, #tpu.memory_space<vmem>>, vector<1x32xf32>
    %c0_29 = arith.constant 0 : index
    %c0_30 = arith.constant 0 : index
    %38 = vector.load %arg10[%c0_29, %c0_30] : memref<1x32xf32, #tpu.memory_space<vmem>>, vector<1x32xf32>
    %39 = vector.shape_cast %1 : vector<2x8x32xf32> to vector<16x32xf32>
    %cst_31 = arith.constant dense<0.000000e+00> : vector<16x32xf32>
    %40 = tpu.matmul %39, %36, %cst_31 {dimension_numbers = #tpu.dot_dimension_numbers<[1], [0], [0], [1], [0, 0, 1, 1], [], []>} : vector<16x32xf32>, vector<32x32xf32>, vector<16x32xf32> -> vector<16x32xf32>
    %41 = vector.broadcast %37 : vector<1x32xf32> to vector<16x32xf32>
    %42 = arith.addf %40, %41 : vector<16x32xf32>
    %43 = math.tanh %42 : vector<16x32xf32>
    %44 = vector.shape_cast %43 : vector<16x32xf32> to vector<2x8x32xf32>
    %45 = vector.shape_cast %38 : vector<1x32xf32> to vector<1x1x32xf32>
    %46 = vector.broadcast %45 : vector<1x1x32xf32> to vector<2x8x32xf32>
    %47 = arith.mulf %44, %46 : vector<2x8x32xf32>
    %cst_32 = arith.constant dense<0.000000e+00> : vector<2x8xf32>
    %48 = vector.multi_reduction <add>, %47, %cst_32 [2] : vector<2x8x32xf32> to vector<2x8xf32>
    %cst_33 = arith.constant dense<0xFF800000> : vector<2xf32>
    %49 = vector.multi_reduction <maximumf>, %48, %cst_33 [1] : vector<2x8xf32> to vector<2xf32>
    %cst_34 = arith.constant 0xFF800000 : f32
    %50 = vector.broadcast %cst_34 : f32 to vector<2xf32>
    %51 = arith.maximumf %50, %49 : vector<2xf32>
    %52 = vector.shape_cast %51 : vector<2xf32> to vector<2x1xf32>
    %53 = vector.broadcast %52 : vector<2x1xf32> to vector<2x8xf32>
    %54 = arith.subf %48, %53 : vector<2x8xf32>
    %55 = math.exp %54 : vector<2x8xf32>
    %cst_35 = arith.constant dense<0.000000e+00> : vector<2xf32>
    %56 = vector.multi_reduction <add>, %55, %cst_35 [1] : vector<2x8xf32> to vector<2xf32>
    %57 = vector.shape_cast %56 : vector<2xf32> to vector<2x1xf32>
    %58 = vector.broadcast %57 : vector<2x1xf32> to vector<2x8xf32>
    %59 = arith.divf %55, %58 : vector<2x8xf32>
    %c0_36 = arith.constant 0 : index
    %c0_37 = arith.constant 0 : index
    %60 = vector.load %arg11[%c0_36, %c0_37] : memref<32x32xf32, #tpu.memory_space<vmem>>, vector<32x32xf32>
    %61 = vector.shape_cast %0 : vector<2x8x32xf32> to vector<16x32xf32>
    %cst_38 = arith.constant dense<0.000000e+00> : vector<16x32xf32>
    %62 = tpu.matmul %61, %60, %cst_38 {dimension_numbers = #tpu.dot_dimension_numbers<[1], [0], [0], [1], [0, 0, 1, 1], [], []>} : vector<16x32xf32>, vector<32x32xf32>, vector<16x32xf32> -> vector<16x32xf32>
    %63 = vector.shape_cast %62 : vector<16x32xf32> to vector<2x8x32xf32>
    "tpu.trace_start"() <{level = 10 : i32, message = "nlk,nmk->nlm"}> : () -> ()
    %cst_39 = arith.constant dense<0.000000e+00> : vector<2x8x8xf32>
    %64 = tpu.matmul %63, %1, %cst_39 {dimension_numbers = #tpu.dot_dimension_numbers<[2], [2], [1], [1], [0, 0, 0, 1, 1, 1], [0], [0]>} : vector<2x8x32xf32>, vector<2x8x32xf32>, vector<2x8x8xf32> -> vector<2x8x8xf32>
    "tpu.trace_stop"() : () -> ()
    %cst_40 = arith.constant dense<0xFF800000> : vector<2x8xf32>
    %65 = vector.multi_reduction <maximumf>, %64, %cst_40 [2] : vector<2x8x8xf32> to vector<2x8xf32>
    %cst_41 = arith.constant dense<0xFF800000> : vector<2xf32>
    %66 = vector.multi_reduction <maximumf>, %65, %cst_41 [1] : vector<2x8xf32> to vector<2xf32>
    %cst_42 = arith.constant 0xFF800000 : f32
    %67 = vector.broadcast %cst_42 : f32 to vector<2xf32>
    %68 = arith.maximumf %67, %66 : vector<2xf32>
    %69 = vector.shape_cast %68 : vector<2xf32> to vector<2x1xf32>
    %70 = vector.broadcast %69 : vector<2x1xf32> to vector<2x8xf32>
    %71 = arith.subf %65, %70 : vector<2x8xf32>
    %72 = math.exp %71 : vector<2x8xf32>
    %cst_43 = arith.constant dense<0.000000e+00> : vector<2xf32>
    %73 = vector.multi_reduction <add>, %72, %cst_43 [1] : vector<2x8xf32> to vector<2xf32>
    %74 = vector.shape_cast %73 : vector<2xf32> to vector<2x1xf32>
    %75 = vector.broadcast %74 : vector<2x1xf32> to vector<2x8xf32>
    %76 = arith.divf %72, %75 : vector<2x8xf32>
    %77 = vector.shape_cast %1 : vector<2x8x32xf32> to vector<16x32xf32>
    %cst_44 = arith.constant dense<0.000000e+00> : vector<16x32xf32>
    %78 = tpu.matmul %77, %60, %cst_44 {dimension_numbers = #tpu.dot_dimension_numbers<[1], [0], [0], [1], [0, 0, 1, 1], [], []>} : vector<16x32xf32>, vector<32x32xf32>, vector<16x32xf32> -> vector<16x32xf32>
    %79 = vector.shape_cast %78 : vector<16x32xf32> to vector<2x8x32xf32>
    "tpu.trace_start"() <{level = 10 : i32, message = "nmk,nlk->nml"}> : () -> ()
    %cst_45 = arith.constant dense<0.000000e+00> : vector<2x8x8xf32>
    %80 = tpu.matmul %79, %0, %cst_45 {dimension_numbers = #tpu.dot_dimension_numbers<[2], [2], [1], [1], [0, 0, 0, 1, 1, 1], [0], [0]>} : vector<2x8x32xf32>, vector<2x8x32xf32>, vector<2x8x8xf32> -> vector<2x8x8xf32>
    "tpu.trace_stop"() : () -> ()
    %cst_46 = arith.constant dense<0xFF800000> : vector<2x8xf32>
    %81 = vector.multi_reduction <maximumf>, %80, %cst_46 [2] : vector<2x8x8xf32> to vector<2x8xf32>
    %cst_47 = arith.constant dense<0xFF800000> : vector<2xf32>
    %82 = vector.multi_reduction <maximumf>, %81, %cst_47 [1] : vector<2x8xf32> to vector<2xf32>
    %cst_48 = arith.constant 0xFF800000 : f32
    %83 = vector.broadcast %cst_48 : f32 to vector<2xf32>
    %84 = arith.maximumf %83, %82 : vector<2xf32>
    %85 = vector.shape_cast %84 : vector<2xf32> to vector<2x1xf32>
    %86 = vector.broadcast %85 : vector<2x1xf32> to vector<2x8xf32>
    %87 = arith.subf %81, %86 : vector<2x8xf32>
    %88 = math.exp %87 : vector<2x8xf32>
    %cst_49 = arith.constant dense<0.000000e+00> : vector<2xf32>
    %89 = vector.multi_reduction <add>, %88, %cst_49 [1] : vector<2x8xf32> to vector<2xf32>
    %90 = vector.shape_cast %89 : vector<2xf32> to vector<2x1xf32>
    %91 = vector.broadcast %90 : vector<2x1xf32> to vector<2x8xf32>
    %92 = arith.divf %88, %91 : vector<2x8xf32>
    %c0_50 = arith.constant 0 : index
    %c0_51 = arith.constant 0 : index
    %93 = vector.load %arg12[%c0_50, %c0_51] : memref<32x32xf32, #tpu.memory_space<vmem>>, vector<32x32xf32>
    %cst_52 = arith.constant dense<0.000000e+00> : vector<2x32xf32>
    %94 = tpu.matmul %11, %93, %cst_52 {dimension_numbers = #tpu.dot_dimension_numbers<[1], [0], [0], [1], [0, 0, 1, 1], [], []>} : vector<2x32xf32>, vector<32x32xf32>, vector<2x32xf32> -> vector<2x32xf32>
    %95 = vector.shape_cast %94 : vector<2x32xf32> to vector<2x1x32xf32>
    %96 = vector.broadcast %95 : vector<2x1x32xf32> to vector<2x8x32xf32>
    %97 = arith.mulf %96, %0 : vector<2x8x32xf32>
    %cst_53 = arith.constant dense<0.000000e+00> : vector<2x8xf32>
    %98 = vector.multi_reduction <add>, %97, %cst_53 [2] : vector<2x8x32xf32> to vector<2x8xf32>
    %cst_54 = arith.constant dense<0xFF800000> : vector<2xf32>
    %99 = vector.multi_reduction <maximumf>, %98, %cst_54 [1] : vector<2x8xf32> to vector<2xf32>
    %cst_55 = arith.constant 0xFF800000 : f32
    %100 = vector.broadcast %cst_55 : f32 to vector<2xf32>
    %101 = arith.maximumf %100, %99 : vector<2xf32>
    %102 = vector.shape_cast %101 : vector<2xf32> to vector<2x1xf32>
    %103 = vector.broadcast %102 : vector<2x1xf32> to vector<2x8xf32>
    %104 = arith.subf %98, %103 : vector<2x8xf32>
    %105 = math.exp %104 : vector<2x8xf32>
    %cst_56 = arith.constant dense<0.000000e+00> : vector<2xf32>
    %106 = vector.multi_reduction <add>, %105, %cst_56 [1] : vector<2x8xf32> to vector<2xf32>
    %107 = vector.shape_cast %106 : vector<2xf32> to vector<2x1xf32>
    %108 = vector.broadcast %107 : vector<2x1xf32> to vector<2x8xf32>
    %109 = arith.divf %105, %108 : vector<2x8xf32>
    %110 = arith.mulf %35, %76 : vector<2x8xf32>
    %cst_57 = arith.constant dense<0.000000e+00> : vector<2xf32>
    %111 = vector.multi_reduction <add>, %110, %cst_57 [1] : vector<2x8xf32> to vector<2xf32>
    %112 = vector.shape_cast %111 : vector<2xf32> to vector<2x1xf32>
    %cst_58 = arith.constant 9.99999971E-10 : f32
    %113 = vector.broadcast %cst_58 : f32 to vector<2x1xf32>
    %114 = arith.addf %112, %113 : vector<2x1xf32>
    %115 = vector.broadcast %114 : vector<2x1xf32> to vector<2x8xf32>
    %116 = arith.divf %110, %115 : vector<2x8xf32>
    %117 = arith.mulf %59, %92 : vector<2x8xf32>
    %cst_59 = arith.constant dense<0.000000e+00> : vector<2xf32>
    %118 = vector.multi_reduction <add>, %117, %cst_59 [1] : vector<2x8xf32> to vector<2xf32>
    %119 = vector.shape_cast %118 : vector<2xf32> to vector<2x1xf32>
    %cst_60 = arith.constant 9.99999971E-10 : f32
    %120 = vector.broadcast %cst_60 : f32 to vector<2x1xf32>
    %121 = arith.addf %119, %120 : vector<2x1xf32>
    %122 = vector.broadcast %121 : vector<2x1xf32> to vector<2x8xf32>
    %123 = arith.divf %117, %122 : vector<2x8xf32>
    %124 = arith.mulf %35, %76 : vector<2x8xf32>
    %125 = arith.mulf %124, %109 : vector<2x8xf32>
    %cst_61 = arith.constant dense<0.000000e+00> : vector<2xf32>
    %126 = vector.multi_reduction <add>, %125, %cst_61 [1] : vector<2x8xf32> to vector<2xf32>
    %127 = vector.shape_cast %126 : vector<2xf32> to vector<2x1xf32>
    %cst_62 = arith.constant 9.99999971E-10 : f32
    %128 = vector.broadcast %cst_62 : f32 to vector<2x1xf32>
    %129 = arith.addf %127, %128 : vector<2x1xf32>
    %130 = vector.broadcast %129 : vector<2x1xf32> to vector<2x8xf32>
    %131 = arith.divf %125, %130 : vector<2x8xf32>
    %132 = vector.shape_cast %116 : vector<2x8xf32> to vector<2x8x1xf32>
    %133 = vector.broadcast %132 : vector<2x8x1xf32> to vector<2x8x32xf32>
    %134 = arith.mulf %133, %0 : vector<2x8x32xf32>
    %cst_63 = arith.constant dense<0.000000e+00> : vector<2x32xf32>
    %135 = vector.multi_reduction <add>, %134, %cst_63 [1] : vector<2x8x32xf32> to vector<2x32xf32>
    %136 = vector.shape_cast %123 : vector<2x8xf32> to vector<2x8x1xf32>
    %137 = vector.broadcast %136 : vector<2x8x1xf32> to vector<2x8x32xf32>
    %138 = arith.mulf %137, %1 : vector<2x8x32xf32>
    %cst_64 = arith.constant dense<0.000000e+00> : vector<2x32xf32>
    %139 = vector.multi_reduction <add>, %138, %cst_64 [1] : vector<2x8x32xf32> to vector<2x32xf32>
    %140 = vector.shape_cast %131 : vector<2x8xf32> to vector<2x8x1xf32>
    %141 = vector.broadcast %140 : vector<2x8x1xf32> to vector<2x8x32xf32>
    %142 = arith.mulf %141, %0 : vector<2x8x32xf32>
    %cst_65 = arith.constant dense<0.000000e+00> : vector<2x32xf32>
    %143 = vector.multi_reduction <add>, %142, %cst_65 [1] : vector<2x8x32xf32> to vector<2x32xf32>
    %c0_66 = arith.constant 0 : index
    %c0_67 = arith.constant 0 : index
    %144 = vector.load %arg13[%c0_66, %c0_67] : memref<32x32xf32, #tpu.memory_space<vmem>>, vector<32x32xf32>
    %cst_68 = arith.constant dense<0.000000e+00> : vector<2x32xf32>
    %145 = tpu.matmul %135, %144, %cst_68 {dimension_numbers = #tpu.dot_dimension_numbers<[1], [0], [0], [1], [0, 0, 1, 1], [], []>} : vector<2x32xf32>, vector<32x32xf32>, vector<2x32xf32> -> vector<2x32xf32>
    %c0_69 = arith.constant 0 : index
    %c0_70 = arith.constant 0 : index
    %146 = vector.load %arg14[%c0_69, %c0_70] : memref<32x32xf32, #tpu.memory_space<vmem>>, vector<32x32xf32>
    %cst_71 = arith.constant dense<0.000000e+00> : vector<2x32xf32>
    %147 = tpu.matmul %139, %146, %cst_71 {dimension_numbers = #tpu.dot_dimension_numbers<[1], [0], [0], [1], [0, 0, 1, 1], [], []>} : vector<2x32xf32>, vector<32x32xf32>, vector<2x32xf32> -> vector<2x32xf32>
    %148 = arith.addf %145, %147 : vector<2x32xf32>
    %c0_72 = arith.constant 0 : index
    %c0_73 = arith.constant 0 : index
    %149 = vector.load %arg15[%c0_72, %c0_73] : memref<32x32xf32, #tpu.memory_space<vmem>>, vector<32x32xf32>
    %cst_74 = arith.constant dense<0.000000e+00> : vector<2x32xf32>
    %150 = tpu.matmul %143, %149, %cst_74 {dimension_numbers = #tpu.dot_dimension_numbers<[1], [0], [0], [1], [0, 0, 1, 1], [], []>} : vector<2x32xf32>, vector<32x32xf32>, vector<2x32xf32> -> vector<2x32xf32>
    %151 = arith.addf %148, %150 : vector<2x32xf32>
    %152 = math.tanh %151 : vector<2x32xf32>
    %c0_75 = arith.constant 0 : index
    %c0_76 = arith.constant 0 : index
    %153 = vector.load %arg16[%c0_75, %c0_76] : memref<32x3xf32, #tpu.memory_space<vmem>>, vector<32x3xf32>
    %cst_77 = arith.constant dense<0.000000e+00> : vector<2x3xf32>
    %154 = tpu.matmul %152, %153, %cst_77 {dimension_numbers = #tpu.dot_dimension_numbers<[1], [0], [0], [1], [0, 0, 1, 1], [], []>} : vector<2x32xf32>, vector<32x3xf32>, vector<2x3xf32> -> vector<2x3xf32>
    %c0_78 = arith.constant 0 : index
    %c0_79 = arith.constant 0 : index
    %155 = vector.load %arg17[%c0_78, %c0_79] : memref<1x3xf32, #tpu.memory_space<vmem>>, vector<1x3xf32>
    %156 = vector.broadcast %155 : vector<1x3xf32> to vector<2x3xf32>
    %157 = arith.addf %154, %156 : vector<2x3xf32>
    %cst_80 = arith.constant dense<0xFF800000> : vector<2xf32>
    %158 = vector.multi_reduction <maximumf>, %157, %cst_80 [1] : vector<2x3xf32> to vector<2xf32>
    %159 = vector.shape_cast %158 : vector<2xf32> to vector<2x1xf32>
    %160 = vector.broadcast %159 : vector<2x1xf32> to vector<2x3xf32>
    %161 = arith.subf %157, %160 : vector<2x3xf32>
    %162 = math.exp %161 : vector<2x3xf32>
    %cst_81 = arith.constant dense<0.000000e+00> : vector<2xf32>
    %163 = vector.multi_reduction <add>, %162, %cst_81 [1] : vector<2x3xf32> to vector<2xf32>
    %164 = vector.shape_cast %163 : vector<2xf32> to vector<2x1xf32>
    %165 = math.log %164 : vector<2x1xf32>
    %166 = arith.addf %159, %165 : vector<2x1xf32>
    %167 = vector.broadcast %166 : vector<2x1xf32> to vector<2x3xf32>
    %168 = arith.subf %157, %167 : vector<2x3xf32>
    %c0_82 = arith.constant 0 : index
    %c0_83 = arith.constant 0 : index
    %169 = vector.load %arg18[%c0_82, %c0_83] : memref<2x3xf32, #tpu.memory_space<vmem>>, vector<2x3xf32>
    tpu.vector_store %arg18[%c0_82, %c0_83], %168 {strides = array<i32>} : memref<2x3xf32, #tpu.memory_space<vmem>>, vector<2x3xf32>,
    return
  }
}

</mosaic_0001>

<bundles_post_ra>
// kernel: forward.3
= control target key start
LH: loop header
LB: loop body
LE: loop exit
PB: predicated region body
PF: predicated region fallthrough
CT: control target
= control target key end

     0   :  { %v2140_v2 = vmov 0.0   ;;  %vm2141_vm0 = vmmov 0   ;;  %vm65_vm1 = vcmask 261120   ;;  %vm96_vm2 = vcmask 1041409   ;;  %s2658_s5 = inlined_call_operand.vmem [shape: f32[32,32], index: 5, kind: input, shape index: {}]   ;;  %s2659_s3 = inlined_call_operand.vmem [shape: f32[32,32], index: 3, kind: input, shape index: {}]   ;;  %s2660_s0 = inlined_call_operand.vmem [shape: f32[2,8,32], index: 0, kind: input, shape index: {}]   ;;  %s2661_s2 = inlined_call_operand.vmem [shape: f32[2,8,32], index: 2, kind: input, shape index: {}]   ;;  %s2662_s11 = inlined_call_operand.vmem [shape: f32[32,32], index: 11, kind: input, shape index: {}]   ;;  %s2663_s8 = inlined_call_operand.vmem [shape: f32[32,32], index: 8, kind: input, shape index: {}]   ;;  %s2664_s1 = inlined_call_operand.vmem [shape: f32[2,8,32], index: 1, kind: input, shape index: {}]   ;;  %s2665_s12 = inlined_call_operand.vmem [shape: f32[32,32], index: 12, kind: input, shape index: {}]   ;;  %s2666_s6 = inlined_call_operand.vmem [shape: f32[1,32], index: 6, kind: input, shape index: {}]   ;;  %s2667_s4 = inlined_call_operand.vmem [shape: f32[1,32], index: 4, kind: input, shape index: {}]   ;;  %s2668_s7 = inlined_call_operand.vmem [shape: f32[1,32], index: 7, kind: input, shape index: {}]   ;;  %s2669_s9 = inlined_call_operand.vmem [shape: f32[1,32], index: 9, kind: input, shape index: {}]   ;;  %s2670_s10 = inlined_call_operand.vmem [shape: f32[1,32], index: 10, kind: input, shape index: {}]   ;;  %s2671_s14 = inlined_call_operand.vmem [shape: f32[32,32], index: 14, kind: input, shape index: {}]   ;;  %s2672_s13 = inlined_call_operand.vmem [shape: f32[32,32], index: 13, kind: input, shape index: {}]   ;;  %s2673_s15 = inlined_call_operand.vmem [shape: f32[32,32], index: 15, kind: input, shape index: {}]   ;;  %s2674_s16 = inlined_call_operand.vmem [shape: f32[32,3], index: 16, kind: input, shape index: {}]   ;;  %s2675_s17 = inlined_call_operand.vmem [shape: f32[1,3], index: 17, kind: input, shape index: {}]   ;;  %s2676_s18 = inlined_call_operand.vmem [shape: f32[2,3], index: 18, kind: output, shape index: {}]  }
   0x1   :  { %2680 = sst [smem:[#allocation2_spill]] %s2658_s5  ;;  %1936 = vmatprep.subr.mxu0 %v2140_v2  ;;  %1944 = vmatprep.mubr.msk.f32.mxu0 %vm2141_vm0, %v2140_v2  ;;  %v63_v9 = vld [vmem:[%s2661_s2] sm:$0xff]  ;;  %v64_v10 = vld [vmem:[%s2661_s2 + $0x8] sm:$0xff]  ;;  %v2280_v11 = vld [vmem:[%s2662_s11 + $0x18] sm:$0xff]  ;;  %vm753_vm3 = vcmask 64512   ;;  %vm294_vm4 = vcmask 58368  }
   0x2   :  { %2681 = sst [smem:[#allocation3_spill]] %s2659_s3  ;;  %v66_v13 = vsel %vm65_vm1, %v63_v9, 0.0  ;;  %v73_v14 = vsel %vm65_vm1, %v64_v10, 0.0  ;;  %v530_v18 = vld [vmem:[%s2662_s11 + $0x10] sm:$0xff]  ;;  %v354_v19 = vld [vmem:[%s2663_s8 + $0x18] sm:$0xff]  ;;  %v529_v22 = vld [vmem:[%s2662_s11 + $0x8] sm:$0xff] }
   0x3   :  { %2682 = sst [smem:[#allocation4_spill]] %s2660_s0  ;;  %v67_v16 = vrot.slane %v66_v13, 4  ;;  %v74_v17 = vrot.slane %v73_v14, 4  ;;  %v528_v25 = vld [vmem:[%s2662_s11] sm:$0xff]  ;;  %v353_v36 = vld [vmem:[%s2663_s8 + $0x10] sm:$0xff]  ;;  %v352_v37 = vld [vmem:[%s2663_s8 + $0x8] sm:$0xff] }
   0x4   :  { %s2683_s29 = sld [smem:[#allocation2_spill]]  ;;  %v2317_v32 = vld [vmem:[%s2664_s1] sm:$0xff]  ;;  %v2341_v39 = vld [vmem:[%s2664_s1 + $0x8] sm:$0xff]  ;;  %v1126_v40 = vld [vmem:[%s2665_s12 + $0x18] sm:$0xff]  ;;  %vm1827_vm5 = vcmask 17408  }
   0x5   :  { %s2684_s20 = sld [smem:[#allocation3_spill]]  ;;  %v68_v20 = vadd.f32 %v67_v16, %v66_v13  ;;  %v75_v21 = vadd.f32 %v74_v17, %v73_v14  ;;  %v351_v38 = vld [vmem:[%s2663_s8] sm:$0xff]  ;;  %v1125_v41 = vld [vmem:[%s2665_s12 + $0x10] sm:$0xff]  ;;  %v1124_v42 = vld [vmem:[%s2665_s12 + $0x8] sm:$0xff] }
   0x6   :  { %s2685_s0 = sld [smem:[#allocation4_spill]]  ;;  %v1123_v43 = vld [vmem:[%s2665_s12] sm:$0xff] }
   0x7   :  { %v69_v23 = vrot.slane %v68_v20, 2  ;;  %v76_v24 = vrot.slane %v75_v21, 2  ;;  %v1848_v44 = vld [vmem:[%s2666_s6] ss:$0 sm:$0xff] }
   0x8   :  { %v1846_v51 = vld [vmem:[%s2667_s4] ss:$0 sm:$0xff] }
   0x9   :  { %v70_v26 = vadd.f32 %v69_v23, %v68_v20  ;;  %v77_v27 = vadd.f32 %v76_v24, %v75_v21  ;;  %v1851_v54 = vld [vmem:[%s2668_s7] ss:$0 sm:$0xff]  ;;  %v2142_v21 = vmov 1966171168   ;;  %v282_v23 = vlaneseq }
   0xa   :  { %v174_v0 = vld [vmem:[%s2683_s29 + $0x18] sm:$0xff]  ;;  %v173_v1 = vld [vmem:[%s2683_s29 + $0x10] sm:$0xff]  ;;  %v172_v5 = vld [vmem:[%s2683_s29 + $0x8] sm:$0xff] }
   0xb   :  { %1947 = vmatprep.subr.mxu1 %v174_v0  ;;  %v86_v3 = vld [vmem:[%s2684_s20 + $0x18] sm:$0xff]  ;;  %v85_v6 = vld [vmem:[%s2684_s20 + $0x10] sm:$0xff]  ;;  %v171_v7 = vld [vmem:[%s2683_s29] sm:$0xff]  ;;  %v71_v28 = vrot.slane %v70_v26, 1  ;;  %v78_v29 = vrot.slane %v77_v27, 1 }
   0xc   :  { %v2254_v4 = vld [vmem:[%s2685_s0] sm:$0xff]  ;;  %1948 = vmatpush3.msra.mxu1 %v174_v0  ;;  %1937 = vmatpush3.msra.mxu0 %v86_v3  ;;  %v84_v8 = vld [vmem:[%s2684_s20 + $0x8] sm:$0xff] }
   0xd   :  { %1949 = vmatprep.subr.mxu1 %v173_v1  ;;  %1955 = vmatprep.mubr.msk.f32.mxu1 %vm65_vm1, %v2254_v4  ;;  %v2285_v12 = vld [vmem:[%s2685_s0 + $0x8] sm:$0xff]  ;;  %v83_v15 = vld [vmem:[%s2684_s20] sm:$0xff]  ;;  %v72_v30 = vadd.f32 %v71_v28, %v70_v26  ;;  %v79_v31 = vadd.f32 %v78_v29, %v77_v27  ;;  %v285_v26 = vshrl.u32 %v282_v23, 7  ;;  %v283_v29 = vand.u32 127, %v282_v23 }
   0xe   :  { %1950 = vmatpush3.msra.mxu1 %v173_v1  ;;  %1938 = vmatprep.subr.mxu0 %v2140_v2  ;;  %v1852_v59 = vld [vmem:[%s2669_s9] ss:$0 sm:$0xff] }
   0xf   :  { %1951 = vmatprep.subr.mxu1 %v172_v5  ;;  %1939 = vmatpush3.msra.mxu0 %v85_v6  ;;  %v81_v33 = vmul.f32 0.125, %v72_v30  ;;  %v82_v34 = vmul.f32 0.125, %v79_v31  ;;  %v2418_v31 = vsub.s32 0, %v285_v26 }
  0x10   :  { %1952 = vmatpush3.msra.mxu1 %v172_v5  ;;  %1940 = vmatprep.subr.mxu0 %v2140_v2 }
  0x11   :  { %1953 = vmatprep.subr.mxu1 %v171_v7  ;;  %1941 = vmatpush3.msra.mxu0 %v84_v8  ;;  %v97_v35 = vsel %vm96_vm2, %v82_v34, %v81_v33  ;;  %v1855_v8 = vld [vmem:[%s2670_s10] ss:$0 sm:$0xff] }
  0x12   :  { %1954 = vmatpush3.msra.mxu1 %v171_v7  ;;  %1942 = vmatprep.subr.mxu0 %v2140_v2 }
  0x13   :  { %1969 = vmatprep.subr.mxu1 %v2280_v11  ;;  %1956 = vmatmul.mubr.msk.f32.vlgmr.msra.gmra.mxu1 %vm65_vm1, %v2285_v12 }
  0x14   :  { %1970 = vmatpush3.msra.mxu1 %v2280_v11  ;;  %1943 = vmatpush3.msra.mxu0 %v83_v15 }
  0x15   :  { %1971 = vmatprep.subr.mxu1 %v530_v18  ;;  %1958 = vmatprep.subr.mxu0 %v354_v19 }
  0x16   :  { %1972 = vmatpush3.msra.mxu1 %v530_v18  ;;  %1977 = vmatprep.mubr.msk.f32.mxu1 %vm65_vm1, %v2254_v4 }
  0x17   :  { %1973 = vmatprep.subr.mxu1 %v529_v22  ;;  %1945 = vmatmul.mubr.msk.f32.vlgmr.msra.gmra.mxu0 %vm65_vm1, %v97_v35 }
  0x18   :  { %1974 = vmatpush3.msra.mxu1 %v529_v22  ;;  %1959 = vmatpush3.msra.mxu0 %v354_v19 }
  0x19   :  { %1975 = vmatprep.subr.mxu1 %v528_v25  ;;  %1966 = vmatprep.mubr.msk.f32.mxu0 %vm65_vm1, %v2317_v32 }
  0x1a   :  { %1976 = vmatpush3.msra.mxu1 %v528_v25  ;;  %1960 = vmatprep.subr.mxu0 %v353_v36 }
  0x1b   :  { %1978 = vmatmul.mubr.msk.f32.vlgmr.msra.gmra.mxu1 %vm65_vm1, %v2285_v12  ;;  %1980 = vmatprep.subr.mxu1 %v2140_v2 }
  0x1c   :  { %1981 = vmatpush3.xpose.msk.msra.mxu1 %vm65_vm1, %v2317_v32  ;;  %1982 = vmatprep.mubr.msk.f32.mxu1 %vm2141_vm0, %v2140_v2 }
  0x1d   :  { %1985 = vmatprep.subr.mxu1 %v2140_v2  ;;  %1961 = vmatpush3.msra.mxu0 %v353_v36 }
  0x1e   :  { %1962 = vmatprep.subr.mxu0 %v352_v37 }
  0x1f   :  { %1963 = vmatpush3.msra.mxu0 %v352_v37 }
  0x20   :  { %1964 = vmatprep.subr.mxu0 %v351_v38 }
  0x21   :  { %1965 = vmatpush3.msra.mxu0 %v351_v38 }
  0x22   :  { %1967 = vmatmul.mubr.msk.f32.vlgmr.msra.gmra.mxu0 %vm65_vm1, %v2341_v39  ;;  %1990 = vmatprep.subr.mxu0 %v2280_v11 }
  0x23   :  { %1991 = vmatpush3.msra.mxu0 %v2280_v11  ;;  %1998 = vmatprep.mubr.msk.f32.mxu0 %vm65_vm1, %v2317_v32 }
  0x24   :  { %1992 = vmatprep.subr.mxu0 %v530_v18 }
  0x25   :  { %1993 = vmatpush3.msra.mxu0 %v530_v18 }
  0x26   :  { %1994 = vmatprep.subr.mxu0 %v529_v22 }
  0x27   :  { %1995 = vmatpush3.msra.mxu0 %v529_v22  ;;  %v1202_v22 = vunpack.c.l.s4 %v2142_v21 }
  0x28   :  { %1996 = vmatprep.subr.mxu0 %v528_v25 }
  0x29   :  { %1997 = vmatpush3.msra.mxu0 %v528_v25  ;;  %v1203_v25 = vunpack.c.0.s8 %v1202_v22 }
  0x2a   :  { %1999 = vmatmul.mubr.msk.f32.vlgmr.msra.gmra.mxu0 %vm65_vm1, %v2341_v39  ;;  %2011 = vmatprep.subr.mxu0 %v2140_v2 }
  0x2b   :  { %2019 = vmatprep.mubr.msk.f32.mxu0 %vm2141_vm0, %v2140_v2  ;;  %2012 = vmatpush3.msra.mxu0 %v1126_v40  ;;  %v1206_v28 = vsub.s32 %v1203_v25, %v285_v26 }
  0x2c   :  { %2013 = vmatprep.subr.mxu0 %v2140_v2 }
  0x2d   :  { %2014 = vmatpush3.msra.mxu0 %v1125_v41  ;;  %v2421_v41 = vsub.s32 %v283_v29, %v285_v26 }
  0x2e   :  { %2015 = vmatprep.subr.mxu0 %v2140_v2 }
  0x2f   :  { %2016 = vmatpush3.msra.mxu0 %v1124_v42 }
  0x30   :  { %2017 = vmatprep.subr.mxu0 %v2140_v2 }
  0x31   :  { %2018 = vmatpush3.msra.mxu0 %v1123_v43 }
  0x32   :  { %2033 = vmatprep.subr.mxu0 %v2140_v2 }
  0xd3   :  { %v1957_v45 = vpop.f32.mrf.mxu1 }
  0xd4   :  { %v261_v46 = vadd.f32 %v1957_v45, %v1848_v44 }
  0xd5   :  { %v255_v47 = vpop.f32.mrf.mxu1 }
  0xd6   :  { %2072 = vtanh.f32 %v261_v46  ;;  %v256_v48 = vadd.f32 %v1848_v44, %v255_v47 }
  0xd7   :  { %v166_v52 = vpop.f32.mrf.mxu0 }
  0xd8   :  { %2074 = vtanh.f32 %v256_v48  ;;  %v167_v53 = vadd.f32 %v1846_v51, %v166_v52 }
  0xd9   :  { %v1946_v55 = vpop.f32.mrf.mxu0 }
  0xda   :  { %2076 = vtanh.f32 %v167_v53 }
  0xdb   :  { %v1979_v49 = vpop.f32.mrf.mxu1 }
  0xdd   :  { %v598_v50 = vpop.f32.mrf.mxu1 }
  0xde   :  { %1983 = vmatmul.mubr.msk.f32.vlgmr.msra.gmra.mxu1 %vm65_vm1, %v598_v50 }
  0xdf   :  { %1986 = vmatpush3.xpose.msk.msra.mxu1 %vm65_vm1, %v2341_v39  ;;  %1987 = vmatprep.mubr.msk.f32.mxu1 %vm2141_vm0, %v2140_v2 }
  0xe0   :  { %2001 = vmatprep.subr.mxu1 %v2140_v2 }
  0xe2   :  { %1988 = vmatmul.mubr.msk.f32.vlgmr.msra.gmra.mxu1 %vm65_vm1, %v1979_v49  ;;  %v1968_v62 = vpop.f32.mrf.mxu0 }
  0xe3   :  { %v2073_v56 = vpop.eup %2072  ;;  %2002 = vmatpush3.xpose.msk.msra.mxu1 %vm65_vm1, %v2254_v4  ;;  %2003 = vmatprep.mubr.msk.f32.mxu1 %vm2141_vm0, %v2140_v2  ;;  %v441_v0 = vadd.f32 %v1968_v62, %v1852_v59 }
  0xe4   :  { %2006 = vmatprep.subr.mxu1 %v2140_v2  ;;  %v273_v57 = vmul.f32 %v2073_v56, %v1851_v54  ;;  %v435_v1 = vpop.f32.mrf.mxu0 }
  0xe5   :  { %v2075_v58 = vpop.eup %2074  ;;  %2078 = vtanh.f32 %v441_v0  ;;  %v436_v3 = vadd.f32 %v1852_v59, %v435_v1 }
  0xe6   :  { %v277_v60 = vsel %vm65_vm1, %v273_v57, 0.0  ;;  %v272_v61 = vmul.f32 %v2075_v58, %v1851_v54 }
  0xe7   :  { %278 = vadd.xlane.f32.xlu1 %v277_v60  ;;  %2080 = vtanh.f32 %v436_v3  ;;  %v2077_v5 = vpop.eup %2076 }
  0xe8   :  { %v274_v63 = vsel %vm65_vm1, %v272_v61, 0.0  ;;  %2020 = vmatmul.mubr.msk.f32.vlgmr.msra.gmra.mxu0 %vm65_vm1, %v2077_v5 }
  0xe9   :  { %275 = vadd.xlane.f32.xlu0 %v274_v63  ;;  %2041 = vmatprep.mubr.msk.f32.mxu0 %vm2141_vm0, %v2140_v2  ;;  %v2143_v63 = vmov 0  }
  0xea   :  { %v2000_v6 = vpop.f32.mrf.mxu0  ;;  %2070 = vset.pattern.permute.xlu1 %v2143_v63  ;;  %2071 = vset.pattern.permute.xlu0 %v2143_v63 }
  0xec   :  { %v894_v7 = vpop.f32.mrf.mxu0 }
  0xed   :  { %2004 = vmatmul.mubr.msk.f32.vlgmr.msra.gmra.mxu1 %vm65_vm1, %v894_v7 }
  0xee   :  { %2007 = vmatpush3.xpose.msk.msra.mxu1 %vm65_vm1, %v2285_v12  ;;  %2008 = vmatprep.mubr.msk.f32.mxu1 %vm2141_vm0, %v2140_v2 }
  0xef   :  { %2022 = vmatprep.subr.mxu1 %v2140_v2 }
  0xf1   :  { %2009 = vmatmul.mubr.msk.f32.vlgmr.msra.gmra.mxu1 %vm65_vm1, %v2000_v6 }
  0xf2   :  { %v2079_v9 = vpop.eup %2078  ;;  %2030 = vmatprep.mubr.msk.f32.mxu1 %vm2141_vm0, %v2140_v2 }
  0xf3   :  { %v453_v10 = vmul.f32 %v2079_v9, %v1855_v8 }
  0xf4   :  { %v2081_v11 = vpop.eup %2080 }
  0xf5   :  { %v457_v13 = vsel %vm65_vm1, %v453_v10, 0.0  ;;  %v452_v14 = vmul.f32 %v2081_v11, %v1855_v8 }
  0xf6   :  { %458 = vadd.xlane.f32.xlu0 %v457_v13 }
  0xf7   :  { %v454_v15 = vsel %vm65_vm1, %v452_v14, 0.0  ;;  %v2449_v14 = vsub.s32 1, %v285_v26 }
  0xfa   :  { %455 = vadd.xlane.f32.xlu0 %v454_v15 }
 0x170   :  { %v279_v47 = vpop.xlane.xlu1 %278 }
 0x171   :  { %v291_v54 = vrot.slane %v279_v47, %v2421_v41 }
 0x172   :  { %v2414_v24 = vpop.xlane.xlu0 %275 }
 0x173   :  { %v287_v55 = vrot.slane %v2414_v24, %v2421_v41 }
 0x175   :  { %v292_v60 = vsel %vm96_vm2, %v291_v54, %v287_v55 }
 0x176   :  { %v295_v62 = vsel %vm294_vm4, %v292_v60, -inf }
 0x17f   :  { %v2416_v27 = vpop.xlane.xlu0 %458 }
 0x180   :  { %v469_v51 = vrot.slane %v2416_v27, %v2421_v41 }
 0x183   :  { %v456_v36 = vpop.xlane.xlu0 %455 }
 0x184   :  { %v465_v45 = vrot.slane %v456_v36, %v2421_v41 }
 0x186   :  { %v470_v56 = vsel %vm96_vm2, %v469_v51, %v465_v45 }
 0x187   :  { %v472_v59 = vsel %vm294_vm4, %v470_v56, -inf }
 0x19e   :  { %v676_v16 = vpop.f32.mrf.mxu1 }
 0x19f   :  { %v754_v17 = vsel %vm753_vm3, %v676_v16, -inf }
 0x1a0   :  { %v1984_v18 = vpop.f32.mrf.mxu1  ;;  %755 = vmax.xlane.f32.xlu0 %v754_v17 }
 0x1a2   :  { %v749_v19 = vpop.f32.mrf.mxu1 }
 0x1a3   :  { %v757_v57 = vsel %vm753_vm3, %v749_v19, -inf }
 0x1a4   :  { %v1989_v20 = vpop.f32.mrf.mxu1 }
 0x1a8   :  { %v1196_v30 = vpop.f32.mrf.mxu0 }
 0x1a9   :  { %v1207_v33 = vrot.slane %v1196_v30, %v1206_v28 }
 0x1aa   :  { %v2021_v35 = vpop.f32.mrf.mxu0 }
 0x1ab   :  { %v1208_v37 = vcombine.high %v1207_v33, %v1207_v33  ;;  %v1215_v38 = vrot.slane %v1207_v33, %v1206_v28 }
 0x1ad   :  { %v972_v34 = vpop.f32.mrf.mxu1  ;;  %v1222_v43 = vrot.slane %v1208_v37, %v1206_v28  ;;  %v1226_v44 = vrot.slane %v1215_v38, %v2418_v31 }
 0x1ae   :  { %v1049_v40 = vsel %vm753_vm3, %v972_v34, -inf }
 0x1af   :  { %1050 = vmax.xlane.f32.xlu1 %v1049_v40  ;;  %v2005_v42 = vpop.f32.mrf.mxu1  ;;  %v1233_v49 = vmul.f32 %v1226_v44, %v2254_v4  ;;  %v1230_v50 = vrot.slane %v1222_v43, %v2418_v31 }
 0x1b1   :  { %v1045_v46 = vpop.f32.mrf.mxu1  ;;  %v1235_v53 = vsel %vm65_vm1, %v1233_v49, 0.0  ;;  %v1234_v58 = vmul.f32 %v1230_v50, %v2285_v12 }
 0x1b2   :  { %v1052_v48 = vsel %vm753_vm3, %v1045_v46, -inf  ;;  %1236 = vadd.xlane.f32.xlu0 %v1235_v53 }
 0x1b3   :  { %1053 = vmax.xlane.f32.xlu1 %v1052_v48  ;;  %v2010_v52 = vpop.f32.mrf.mxu1  ;;  %v1238_v61 = vsel %vm65_vm1, %v1234_v58, 0.0 }
 0x1b6   :  { %473 = vmax.xlane.f32.xlu0 %v472_v59 }
 0x1b7   :  { %758 = vmax.xlane.f32.xlu1 %v757_v57 }
 0x1ba   :  { %296 = vmax.xlane.f32.xlu0 %v295_v62 }
 0x1bb   :  { %1239 = vadd.xlane.f32.xlu1 %v1238_v61 }
 0x229   :  { %v756_v1 = vpop.xlane.xlu0 %755 }
 0x22a   :  { %v765_v11 = vrot.slane %v756_v1, %v2421_v41 }
 0x238   :  { %v1051_v0 = vpop.xlane.xlu1 %1050 }
 0x239   :  { %v1060_v5 = vrot.slane %v1051_v0, %v2421_v41 }
 0x23b   :  { %v2443_v7 = vpop.xlane.xlu0 %1236 }
 0x23c   :  { %v1054_v3 = vpop.xlane.xlu1 %1053  ;;  %v1246_v22 = vrot.slane %v2443_v7, %v2421_v41 }
 0x23d   :  { %v1064_v6 = vrot.slane %v1054_v3, %v2421_v41 }
 0x23f   :  { %v1065_v8 = vsel %vm96_vm2, %v1064_v6, %v1060_v5  ;;  %v474_v15 = vpop.xlane.xlu0 %473 }
 0x240   :  { %v759_v9 = vpop.xlane.xlu1 %758  ;;  %v1067_v10 = vsel %vm294_vm4, %v1065_v8, -inf  ;;  %v479_v16 = vrot.slane %v474_v15, %v2418_v31  ;;  %v483_v23 = vrot.slane %v474_v15, %v2449_v14 }
 0x241   :  { %v769_v13 = vrot.slane %v759_v9, %v2421_v41  ;;  %1068 = vmax.xlane.f32.xlu1 %v1067_v10 }
 0x242   :  { %v486_v20 = vsub.f32 %v456_v36, %v479_v16  ;;  %v487_v36 = vsub.f32 %v2416_v27, %v483_v23 }
 0x243   :  { %v770_v17 = vsel %vm96_vm2, %v769_v13, %v765_v11  ;;  %v297_v25 = vpop.xlane.xlu0 %296 }
 0x244   :  { %v2453_v18 = vpop.xlane.xlu1 %1239  ;;  %v772_v19 = vsel %vm294_vm4, %v770_v17, -inf  ;;  %v488_v26 = vmul.f32 1.442695, %v486_v20  ;;  %v302_v28 = vrot.slane %v297_v25, %v2418_v31  ;;  %v306_v29 = vrot.slane %v297_v25, %v2449_v14 }
 0x245   :  { %v1250_v21 = vrot.slane %v2453_v18, %v2421_v41  ;;  %773 = vmax.xlane.f32.xlu1 %v772_v19  ;;  %v490_v40 = vmul.f32 1.442695, %v487_v36 }
 0x246   :  { %2082 = vpow2.f32 %v488_v26  ;;  %v309_v33 = vsub.f32 %v2414_v24, %v302_v28  ;;  %v310_v34 = vsub.f32 %v279_v47, %v306_v29 }
 0x247   :  { %v1251_v30 = vsel %vm96_vm2, %v1250_v21, %v1246_v22 }
 0x248   :  { %v1253_v35 = vsel %vm294_vm4, %v1251_v30, -inf  ;;  %v311_v37 = vmul.f32 1.442695, %v309_v33  ;;  %v313_v38 = vmul.f32 1.442695, %v310_v34 }
 0x249   :  { %1254 = vmax.xlane.f32.xlu0 %v1253_v35 }
 0x24a   :  { %2084 = vpow2.f32 %v311_v37 }
 0x24b   :  { %2086 = vpow2.f32 %v313_v38 }
 0x24c   :  { %2088 = vpow2.f32 %v490_v40 }
 0x253   :  { %v2467_v42 = vpop.eup %2082 }
 0x256   :  { %495 = vperm.xlu1 %2070, %v2467_v42  }
 0x257   :  { %v2470_v43 = vpop.eup %2084 }
 0x258   :  { %v2473_v24 = vpop.eup %2086 }
 0x259   :  { %v2475_v44 = vpop.eup %2088 }
 0x25a   :  { %318 = vperm.xlu1 %2070, %v2470_v43  }
 0x25e   :  { %321 = vperm.xlu1 %2070, %v2473_v24  }
 0x25f   :  { %498 = vperm.xlu0 %2071, %v2475_v44  }
 0x2ca   :  { %v1069_v27 = vpop.xlane.xlu1 %1068 }
 0x2cb   :  { %v1074_v48 = vrot.slane %v1069_v27, %v2418_v31  ;;  %v1078_v53 = vrot.slane %v1069_v27, %v2449_v14 }
 0x2cd   :  { %v1081_v54 = vsub.f32 %v1051_v0, %v1074_v48  ;;  %v1082_v58 = vsub.f32 %v1054_v3, %v1078_v53 }
 0x2ce   :  { %v774_v45 = vpop.xlane.xlu1 %773 }
 0x2cf   :  { %v779_v46 = vrot.slane %v774_v45, %v2418_v31  ;;  %v783_v47 = vrot.slane %v774_v45, %v2449_v14  ;;  %v1083_v59 = vmul.f32 1.442695, %v1081_v54  ;;  %v1085_v6 = vmul.f32 1.442695, %v1082_v58 }
 0x2d1   :  { %v786_v49 = vsub.f32 %v756_v1, %v779_v46  ;;  %v787_v50 = vsub.f32 %v759_v9, %v783_v47 }
 0x2d2   :  { %v496_v51 = vpop.permute.xlu1 %495  ;;  %v1255_v56 = vpop.xlane.xlu0 %1254 }
 0x2d3   :  { %v788_v52 = vmul.f32 1.442695, %v786_v49  ;;  %v790_v55 = vmul.f32 1.442695, %v787_v50  ;;  %v1260_v60 = vrot.slane %v1255_v56, %v2418_v31  ;;  %v503_v63 = vrot.slane %v496_v51, %v2421_v41 }
 0x2d4   :  { %v1264_v0 = vrot.slane %v1255_v56, %v2449_v14 }
 0x2d5   :  { %2090 = vpow2.f32 %v788_v52  ;;  %v1267_v8 = vsub.f32 %v2443_v7, %v1260_v60 }
 0x2d6   :  { %v319_v57 = vpop.permute.xlu1 %318  ;;  %2092 = vpow2.f32 %v790_v55  ;;  %v1268_v13 = vsub.f32 %v2453_v18, %v1264_v0 }
 0x2d7   :  { %2094 = vpow2.f32 %v1083_v59  ;;  %v326_v3 = vrot.slane %v319_v57, %v2421_v41  ;;  %v1269_v15 = vmul.f32 1.442695, %v1267_v8 }
 0x2d8   :  { %2096 = vpow2.f32 %v1085_v6  ;;  %v1271_v7 = vmul.f32 1.442695, %v1268_v13 }
 0x2d9   :  { %2098 = vpow2.f32 %v1269_v15 }
 0x2da   :  { %v322_v61 = vpop.permute.xlu1 %321  ;;  %v499_v62 = vpop.permute.xlu0 %498  ;;  %2100 = vpow2.f32 %v1271_v7 }
 0x2db   :  { %v507_v1 = vrot.slane %v499_v62, %v2421_v41  ;;  %v330_v5 = vrot.slane %v322_v61, %v2421_v41 }
 0x2dd   :  { %v508_v9 = vsel %vm96_vm2, %v507_v1, %v503_v63  ;;  %v331_v11 = vsel %vm96_vm2, %v330_v5, %v326_v3 }
 0x2de   :  { %v510_v10 = vsel %vm294_vm4, %v508_v9, 0.0  ;;  %v333_v17 = vsel %vm294_vm4, %v331_v11, 0.0 }
 0x2df   :  { %511 = vadd.xlane.f32.xlu0 %v510_v10 }
 0x2e2   :  { %v2494_v16 = vpop.eup %2090 }
 0x2e3   :  { %795 = vperm.xlu1 %2070, %v2494_v16   ;;  %334 = vadd.xlane.f32.xlu0 %v333_v17  ;;  %v2498_v19 = vpop.eup %2092 }
 0x2e4   :  { %v2095_v20 = vpop.eup %2094 }
 0x2e5   :  { %v2097_v21 = vpop.eup %2096 }
 0x2e6   :  { %v2501_v18 = vpop.eup %2098 }
 0x2e7   :  { %798 = vperm.xlu1 %2070, %v2498_v19   ;;  %v2504_v22 = vpop.eup %2100 }
 0x2eb   :  { %1090 = vperm.xlu1 %2070, %v2095_v20  }
 0x2ef   :  { %1093 = vperm.xlu1 %2070, %v2097_v21  }
 0x2f3   :  { %1276 = vperm.xlu1 %2070, %v2501_v18  }
 0x2f7   :  { %1279 = vperm.xlu1 %2070, %v2504_v22  }
 0x35e   :  { %v796_v23 = vpop.permute.xlu1 %795 }
 0x35f   :  { %v803_v26 = vrot.slane %v796_v23, %v2421_v41 }
 0x362   :  { %v799_v25 = vpop.permute.xlu1 %798 }
 0x363   :  { %v807_v28 = vrot.slane %v799_v25, %v2421_v41 }
 0x365   :  { %v808_v29 = vsel %vm96_vm2, %v807_v28, %v803_v26 }
 0x366   :  { %v1091_v30 = vpop.permute.xlu1 %1090  ;;  %v810_v33 = vsel %vm294_vm4, %v808_v29, 0.0 }
 0x367   :  { %811 = vadd.xlane.f32.xlu0 %v810_v33  ;;  %v1098_v35 = vrot.slane %v1091_v30, %v2421_v41 }
 0x368   :  { %v512_v49 = vpop.xlane.xlu0 %511 }
 0x369   :  { %v517_v52 = vrot.slane %v512_v49, %v2418_v31  ;;  %v521_v53 = vrot.slane %v512_v49, %v2449_v14 }
 0x36a   :  { %v1094_v34 = vpop.permute.xlu1 %1093 }
 0x36b   :  { %v1102_v36 = vrot.slane %v1094_v34, %v2421_v41  ;;  %2102 = vrcp.f32 %v517_v52 }
 0x36c   :  { %v335_v50 = vpop.xlane.xlu0 %334  ;;  %2104 = vrcp.f32 %v521_v53 }
 0x36d   :  { %v1103_v37 = vsel %vm96_vm2, %v1102_v36, %v1098_v35  ;;  %v344_v57 = vrot.slane %v335_v50, %v2449_v14  ;;  %v340_v60 = vrot.slane %v335_v50, %v2418_v31 }
 0x36e   :  { %v1277_v38 = vpop.permute.xlu1 %1276  ;;  %v1105_v40 = vsel %vm294_vm4, %v1103_v37, 0.0 }
 0x36f   :  { %1106 = vadd.xlane.f32.xlu1 %v1105_v40  ;;  %v1284_v45 = vrot.slane %v1277_v38, %v2421_v41 }
 0x372   :  { %v1280_v27 = vpop.permute.xlu1 %1279 }
 0x373   :  { %v1288_v46 = vrot.slane %v1280_v27, %v2421_v41 }
 0x375   :  { %v1289_v47 = vsel %vm96_vm2, %v1288_v46, %v1284_v45 }
 0x376   :  { %v1291_v48 = vsel %vm294_vm4, %v1289_v47, 0.0 }
 0x377   :  { %1292 = vadd.xlane.f32.xlu1 %v1291_v48 }
 0x378   :  { %v2103_v1 = vpop.eup %2102 }
 0x379   :  { %v2105_v5 = vpop.eup %2104  ;;  %v525_v9 = vmul.f32 %v2103_v1, %v2467_v42 }
 0x37a   :  { %v527_v13 = vmul.f32 %v2105_v5, %v2475_v44 }
 0x3f0   :  { %v812_v51 = vpop.xlane.xlu0 %811 }
 0x3f1   :  { %v817_v54 = vrot.slane %v812_v51, %v2418_v31  ;;  %v821_v55 = vrot.slane %v812_v51, %v2449_v14 }
 0x3f3   :  { %2106 = vrcp.f32 %v817_v54 }
 0x3f4   :  { %2108 = vrcp.f32 %v821_v55 }
 0x3f8   :  { %v1107_v56 = vpop.xlane.xlu1 %1106 }
 0x3f9   :  { %v1112_v58 = vrot.slane %v1107_v56, %v2418_v31  ;;  %v1116_v59 = vrot.slane %v1107_v56, %v2449_v14 }
 0x3fb   :  { %2110 = vrcp.f32 %v1112_v58 }
 0x3fc   :  { %2112 = vrcp.f32 %v1116_v59 }
 0x3fd   :  { %2114 = vrcp.f32 %v344_v57 }
 0x3fe   :  { %2116 = vrcp.f32 %v340_v60 }
 0x400   :  { %v1293_v61 = vpop.xlane.xlu1 %1292  ;;  %v2107_v6 = vpop.eup %2106 }
 0x401   :  { %v1298_v62 = vrot.slane %v1293_v61, %v2418_v31  ;;  %v1302_v63 = vrot.slane %v1293_v61, %v2449_v14  ;;  %v2109_v0 = vpop.eup %2108  ;;  %v825_v26 = vmul.f32 %v2107_v6, %v2494_v16 }
 0x402   :  { %v827_v23 = vmul.f32 %v2109_v0, %v2498_v19 }
 0x403   :  { %2118 = vrcp.f32 %v1298_v62 }
 0x404   :  { %2120 = vrcp.f32 %v1302_v63 }
 0x408   :  { %v2111_v8 = vpop.eup %2110 }
 0x409   :  { %v2113_v3 = vpop.eup %2112  ;;  %v1120_v10 = vmul.f32 %v2111_v8, %v2095_v20 }
 0x40a   :  { %v2115_v11 = vpop.eup %2114  ;;  %v1122_v15 = vmul.f32 %v2113_v3, %v2097_v21 }
 0x40b   :  { %v2117_v17 = vpop.eup %2116  ;;  %v1348_v7 = vmul.f32 %v1120_v10, %v525_v9  ;;  %v350_v28 = vmul.f32 %v2115_v11, %v2473_v24  ;;  %v1511_v10 = vld [vmem:[%s2671_s14 + $0x18] sm:$0xff] }
 0x40c   :  { %v1349_v25 = vmul.f32 %v1122_v15, %v527_v13  ;;  %v348_v29 = vmul.f32 %v2117_v17, %v2470_v43  ;;  %2023 = vmatpush3.msra.mxu1 %v1511_v10  ;;  %v1510_v13 = vld [vmem:[%s2671_s14 + $0x10] sm:$0xff]  ;;  %v1509_v15 = vld [vmem:[%s2671_s14 + $0x8] sm:$0xff] }
 0x40d   :  { %1353 = vperm.xlu0 %2071, %v1348_v7   ;;  %v2535_v30 = vmul.f32 %v827_v23, %v350_v28  ;;  %2024 = vmatprep.subr.mxu1 %v2140_v2  ;;  %v1507_v23 = vld [vmem:[%s2672_s13 + $0x18] sm:$0xff]  ;;  %v1504_v28 = vld [vmem:[%s2672_s13] sm:$0xff] }
 0x40e   :  { %1356 = vperm.xlu1 %2070, %v1349_v25   ;;  %v1309_v20 = vmul.f32 %v825_v26, %v348_v29  ;;  %2025 = vmatpush3.msra.mxu1 %v1510_v13  ;;  %v1505_v26 = vld [vmem:[%s2672_s13 + $0x8] sm:$0xff]  ;;  %v1662_v13 = vld [vmem:[%s2673_s15] sm:$0xff] }
 0x40f   :  { %2026 = vmatprep.subr.mxu1 %v2140_v2  ;;  %2034 = vmatpush3.msra.mxu0 %v1507_v23 }
 0x410   :  { %v2119_v42 = vpop.eup %2118  ;;  %2027 = vmatpush3.msra.mxu1 %v1509_v15  ;;  %2035 = vmatprep.subr.mxu0 %v2140_v2 }
 0x411   :  { %v2121_v33 = vpop.eup %2120  ;;  %1317 = vperm.xlu0 %2071, %v2535_v30   ;;  %v1306_v44 = vmul.f32 %v2119_v42, %v2501_v18  ;;  %2028 = vmatprep.subr.mxu1 %v2140_v2 }
 0x412   :  { %1314 = vperm.xlu1 %2070, %v1309_v20   ;;  %v1308_v19 = vmul.f32 %v2121_v33, %v2504_v22 }
 0x413   :  { %v1387_v21 = vmul.f32 %v1309_v20, %v1306_v44 }
 0x414   :  { %v2541_v16 = vmul.f32 %v2535_v30, %v1308_v19 }
 0x416   :  { %1395 = vperm.xlu0 %2071, %v2541_v16   ;;  %1392 = vperm.xlu1 %2070, %v1387_v21  }
 0x488   :  { %v1354_v43 = vpop.permute.xlu0 %1353 }
 0x489   :  { %v1357_v24 = vpop.permute.xlu1 %1356  ;;  %v1361_v34 = vrot.slane %v1354_v43, %v2421_v41 }
 0x48a   :  { %v1365_v35 = vrot.slane %v1357_v24, %v2421_v41 }
 0x48c   :  { %v1318_v36 = vpop.permute.xlu0 %1317  ;;  %v1366_v37 = vsel %vm96_vm2, %v1365_v35, %v1361_v34 }
 0x48d   :  { %v1315_v18 = vpop.permute.xlu1 %1314  ;;  %v1326_v38 = vrot.slane %v1318_v36, %v2421_v41  ;;  %v1368_v22 = vsel %vm294_vm4, %v1366_v37, 0.0 }
 0x48e   :  { %v1322_v40 = vrot.slane %v1315_v18, %v2421_v41  ;;  %1369 = vadd.xlane.f32.xlu1 %v1368_v22 }
 0x490   :  { %v1327_v27 = vsel %vm96_vm2, %v1326_v38, %v1322_v40 }
 0x491   :  { %v1393_v45 = vpop.permute.xlu1 %1392  ;;  %v1396_v46 = vpop.permute.xlu0 %1395  ;;  %v1329_v47 = vsel %vm294_vm4, %v1327_v27, 0.0 }
 0x492   :  { %v1400_v48 = vrot.slane %v1393_v45, %v2421_v41  ;;  %v1404_v49 = vrot.slane %v1396_v46, %v2421_v41  ;;  %1330 = vadd.xlane.f32.xlu0 %v1329_v47 }
 0x494   :  { %v1405_v50 = vsel %vm96_vm2, %v1404_v49, %v1400_v48 }
 0x495   :  { %v1407_v51 = vsel %vm294_vm4, %v1405_v50, 0.0 }
 0x496   :  { %1408 = vadd.xlane.f32.xlu0 %v1407_v51 }
 0x517   :  { %v1370_v52 = vpop.xlane.xlu1 %1369 }
 0x518   :  { %v1371_v53 = vadd.f32 1e-09, %v1370_v52 }
 0x51a   :  { %v1376_v54 = vrot.slane %v1371_v53, %v2418_v31  ;;  %v1380_v55 = vrot.slane %v1371_v53, %v2449_v14 }
 0x51b   :  { %v1331_v56 = vpop.xlane.xlu0 %1330 }
 0x51c   :  { %2122 = vrcp.f32 %v1376_v54  ;;  %v1332_v57 = vadd.f32 1e-09, %v1331_v56 }
 0x51d   :  { %2124 = vrcp.f32 %v1380_v55 }
 0x51e   :  { %v1337_v58 = vrot.slane %v1332_v57, %v2418_v31  ;;  %v1341_v41 = vrot.slane %v1332_v57, %v2449_v14 }
 0x51f   :  { %v1409_v59 = vpop.xlane.xlu0 %1408 }
 0x520   :  { %2126 = vrcp.f32 %v1337_v58  ;;  %v1410_v60 = vadd.f32 1e-09, %v1409_v59 }
 0x521   :  { %2128 = vrcp.f32 %v1341_v41 }
 0x522   :  { %v1415_v61 = vrot.slane %v1410_v60, %v2418_v31  ;;  %v1419_v62 = vrot.slane %v1410_v60, %v2449_v14 }
 0x524   :  { %2130 = vrcp.f32 %v1415_v61 }
 0x525   :  { %2132 = vrcp.f32 %v1419_v62  ;;  %v1665_v62 = vld [vmem:[%s2673_s15 + $0x18] sm:$0xff] }
 0x529   :  { %v2123_v63 = vpop.eup %2122 }
 0x52a   :  { %v2125_v1 = vpop.eup %2124  ;;  %v1384_v5 = vmul.f32 %v2123_v63, %v1348_v7  ;;  %v1508_v7 = vld [vmem:[%s2671_s14] sm:$0xff] }
 0x52b   :  { %v1386_v6 = vmul.f32 %v2125_v1, %v1349_v25  ;;  %2029 = vmatpush3.msra.mxu1 %v1508_v7  ;;  %v1506_v25 = vld [vmem:[%s2672_s13 + $0x10] sm:$0xff] }
 0x52c   :  { %1454 = vperm.xlu1 %2070, %v1384_v5   ;;  %2044 = vmatprep.subr.mxu1 %v2140_v2 }
 0x52d   :  { %v2127_v0 = vpop.eup %2126  ;;  %1459 = vperm.xlu0 %2071, %v1386_v6   ;;  %2036 = vmatpush3.msra.mxu0 %v1506_v25 }
 0x52e   :  { %v1345_v8 = vmul.f32 %v2127_v0, %v1309_v20  ;;  %v2129_v3 = vpop.eup %2128  ;;  %2037 = vmatprep.subr.mxu0 %v2140_v2  ;;  %v1664_v0 = vld [vmem:[%s2673_s15 + $0x10] sm:$0xff] }
 0x52f   :  { %v1347_v31 = vmul.f32 %v2129_v3, %v2535_v30  ;;  %2038 = vmatpush3.msra.mxu0 %v1505_v26  ;;  %v1746_v26 = vld [vmem:[%s2674_s16 + $0x18] sm:$0xff] }
 0x530   :  { %1428 = vperm.xlu1 %2070, %v1345_v8   ;;  %2039 = vmatprep.subr.mxu0 %v2140_v2 }
 0x531   :  { %v2131_v9 = vpop.eup %2130  ;;  %2040 = vmatpush3.msra.mxu0 %v1504_v28  ;;  %v1745_v28 = vld [vmem:[%s2674_s16 + $0x10] sm:$0xff] }
 0x532   :  { %v1423_v14 = vmul.f32 %v2131_v9, %v1387_v21  ;;  %v2133_v11 = vpop.eup %2132  ;;  %2055 = vmatprep.subr.mxu0 %v2140_v2  ;;  %v1663_v9 = vld [vmem:[%s2673_s15 + $0x8] sm:$0xff] }
 0x533   :  { %v1425_v17 = vmul.f32 %v2133_v11, %v2541_v16 }
 0x534   :  { %1433 = vperm.xlu1 %2070, %v1347_v31   ;;  %1480 = vperm.xlu0 %2071, %v1423_v14  }
 0x538   :  { %1485 = vperm.xlu1 %2070, %v1425_v17  }
 0x5a7   :  { %v1455_v29 = vpop.permute.xlu1 %1454 }
 0x5a8   :  { %v1462_v30 = vmul.f32 %v1455_v29, %v2317_v32  ;;  %v1460_v42 = vpop.permute.xlu0 %1459  ;;  %v1744_v29 = vld [vmem:[%s2674_s16 + $0x8] sm:$0xff] }
 0x5a9   :  { %v1463_v20 = vmul.f32 %v1460_v42, %v2341_v39 }
 0x5aa   :  { %v1464_v33 = vsel %vm65_vm1, %v1462_v30, 0.0  ;;  %v1743_v30 = vld [vmem:[%s2674_s16] sm:$0xff] }
 0x5ab   :  { %v1465_v44 = vrot.slane %v1464_v33, 4  ;;  %v1471_v19 = vsel %vm65_vm1, %v1463_v20, 0.0  ;;  %v1429_v21 = vpop.permute.xlu1 %1428 }
 0x5ac   :  { %v1472_v16 = vrot.slane %v1471_v19, 4  ;;  %v1436_v43 = vmul.f32 %v1429_v21, %v2254_v4 }
 0x5ad   :  { %v1466_v24 = vadd.f32 %v1465_v44, %v1464_v33 }
 0x5ae   :  { %v1473_v34 = vadd.f32 %v1472_v16, %v1471_v19  ;;  %v1438_v35 = vsel %vm65_vm1, %v1436_v43, 0.0 }
 0x5af   :  { %v1467_v36 = vrot.slane %v1466_v24, 2  ;;  %v1439_v37 = vrot.slane %v1438_v35, 4  ;;  %v1434_v18 = vpop.permute.xlu1 %1433  ;;  %v1481_v32 = vpop.permute.xlu0 %1480 }
 0x5b0   :  { %v1474_v38 = vrot.slane %v1473_v34, 2  ;;  %v1437_v39 = vmul.f32 %v1434_v18, %v2285_v12  ;;  %v1488_v22 = vmul.f32 %v1481_v32, %v2254_v4 }
 0x5b1   :  { %v1468_v40 = vadd.f32 %v1467_v36, %v1466_v24  ;;  %v1440_v27 = vadd.f32 %v1439_v37, %v1438_v35 }
 0x5b2   :  { %v1475_v45 = vadd.f32 %v1474_v38, %v1473_v34  ;;  %v1445_v46 = vsel %vm65_vm1, %v1437_v39, 0.0  ;;  %v1490_v47 = vsel %vm65_vm1, %v1488_v22, 0.0  ;;  %v1872_v34 = vld [vmem:[%s2675_s17] ss:$0 sm:$0xff] }
 0x5b3   :  { %v1469_v48 = vrot.slane %v1468_v40, 1  ;;  %v1441_v49 = vrot.slane %v1440_v27, 2  ;;  %v1446_v50 = vrot.slane %v1445_v46, 4  ;;  %v1491_v51 = vrot.slane %v1490_v47, 4  ;;  %v1486_v52 = vpop.permute.xlu1 %1485 }
 0x5b4   :  { %v1476_v53 = vrot.slane %v1475_v45, 1  ;;  %v1489_v54 = vmul.f32 %v1486_v52, %v2285_v12 }
 0x5b5   :  { %v1470_v55 = vadd.f32 %v1469_v48, %v1468_v40  ;;  %v1442_v56 = vadd.f32 %v1441_v49, %v1440_v27  ;;  %v1447_v57 = vadd.f32 %v1446_v50, %v1445_v46  ;;  %v1492_v58 = vadd.f32 %v1491_v51, %v1490_v47 }
 0x5b6   :  { %v1477_v4 = vadd.f32 %v1476_v53, %v1475_v45  ;;  %v1497_v41 = vsel %vm65_vm1, %v1489_v54, 0.0 }
 0x5b7   :  { %v1448_v59 = vrot.slane %v1447_v57, 2  ;;  %v1493_v60 = vrot.slane %v1492_v58, 2  ;;  %v1498_v61 = vrot.slane %v1497_v41, 4  ;;  %v1443_v1 = vrot.slane %v1442_v56, 1 }
 0x5b8   :  { %v1514_v63 = vsel %vm96_vm2, %v1477_v4, %v1470_v55 }
 0x5b9   :  { %v1449_v5 = vadd.f32 %v1448_v59, %v1447_v57  ;;  %v1494_v6 = vadd.f32 %v1493_v60, %v1492_v58  ;;  %v1499_v12 = vadd.f32 %v1498_v61, %v1497_v41  ;;  %2031 = vmatmul.mubr.msk.f32.vlgmr.msra.gmra.mxu1 %vm65_vm1, %v1514_v63  ;;  %v1444_v10 = vadd.f32 %v1443_v1, %v1442_v56 }
 0x5ba   :  { %2045 = vmatpush3.msra.mxu1 %v1665_v62  ;;  %2052 = vmatprep.mubr.msk.f32.mxu1 %vm2141_vm0, %v2140_v2 }
 0x5bb   :  { %v1450_v8 = vrot.slane %v1449_v5, 1  ;;  %v1500_v3 = vrot.slane %v1499_v12, 2  ;;  %2046 = vmatprep.subr.mxu1 %v2140_v2  ;;  %v1495_v14 = vrot.slane %v1494_v6, 1 }
 0x5bc   :  { %2047 = vmatpush3.msra.mxu1 %v1664_v0 }
 0x5bd   :  { %v1451_v31 = vadd.f32 %v1450_v8, %v1449_v5  ;;  %v1501_v11 = vadd.f32 %v1500_v3, %v1499_v12  ;;  %2048 = vmatprep.subr.mxu1 %v2140_v2  ;;  %v1496_v7 = vadd.f32 %v1495_v14, %v1494_v6 }
 0x5be   :  { %2049 = vmatpush3.msra.mxu1 %v1663_v9 }
 0x5bf   :  { %v1502_v15 = vrot.slane %v1501_v11, 1  ;;  %v1589_v17 = vsel %vm96_vm2, %v1451_v31, %v1444_v10  ;;  %2050 = vmatprep.subr.mxu1 %v2140_v2 }
 0x5c0   :  { %2042 = vmatmul.mubr.msk.f32.vlgmr.msra.gmra.mxu0 %vm65_vm1, %v1589_v17  ;;  %2051 = vmatpush3.msra.mxu1 %v1662_v13 }
 0x5c1   :  { %v1503_v23 = vadd.f32 %v1502_v15, %v1501_v11  ;;  %2063 = vmatprep.mubr.msk.f32.mxu0 %vm2141_vm0, %v2140_v2  ;;  %2056 = vmatpush3.msra.mxu0 %v1746_v26 }
 0x5c2   :  { %2057 = vmatprep.subr.mxu0 %v2140_v2 }
 0x5c3   :  { %v1668_v25 = vsel %vm96_vm2, %v1503_v23, %v1496_v7  ;;  %2058 = vmatpush3.msra.mxu0 %v1745_v28 }
 0x5c4   :  { %2053 = vmatmul.mubr.msk.f32.vlgmr.msra.gmra.mxu1 %vm65_vm1, %v1668_v25  ;;  %2059 = vmatprep.subr.mxu0 %v2140_v2 }
 0x5c5   :  { %2060 = vmatpush3.msra.mxu0 %v1744_v29 }
 0x5c6   :  { %2061 = vmatprep.subr.mxu0 %v2140_v2 }
 0x5c7   :  { %2062 = vmatpush3.msra.mxu0 %v1743_v30 }
 0x679   :  { %v1583_v42 = vpop.f32.mrf.mxu1 }
 0x67b   :  { %v2032_v20 = vpop.f32.mrf.mxu1 }
 0x680   :  { %v1658_v33 = vpop.f32.mrf.mxu0 }
 0x681   :  { %v1659_v19 = vadd.f32 %v1658_v33, %v1583_v42 }
 0x682   :  { %v2043_v44 = vpop.f32.mrf.mxu0 }
 0x684   :  { %v1737_v21 = vpop.f32.mrf.mxu1 }
 0x685   :  { %v1741_v16 = vadd.f32 %v1737_v21, %v1659_v19 }
 0x686   :  { %v2054_v43 = vpop.f32.mrf.mxu1 }
 0x687   :  { %2134 = vtanh.f32 %v1741_v16 }
 0x694   :  { %v2135_v24 = vpop.eup %2134 }
 0x695   :  { %2064 = vmatmul.mubr.msk.f32.vlgmr.msra.gmra.mxu0 %vm65_vm1, %v2135_v24 }
 0x755   :  { %v1823_v35 = vpop.f32.mrf.mxu0 }
 0x756   :  { %v1824_v2 = vadd.f32 %v1872_v34, %v1823_v35 }
 0x757   :  { %v2065_v36 = vpop.f32.mrf.mxu0 }
 0x758   :  { %v1828_v37 = vsel %vm1827_vm5, %v1824_v2, -inf }
 0x759   :  { %1829 = vmax.xlane.f32.xlu0 %v1828_v37 }
 0x7e2   :  { %v1830_v18 = vpop.xlane.xlu0 %1829 }
 0x7e3   :  { %v1831_v32 = vsub.f32 %v1824_v2, %v1830_v18 }
 0x7e5   :  { %v1832_v38 = vmul.f32 1.442695, %v1831_v32 }
 0x7e7   :  { %2136 = vpow2.f32 %v1832_v38 }
 0x7f4   :  { %v2137_v39 = vpop.eup %2136 }
 0x7f5   :  { %v1834_v22 = vsel %vm1827_vm5, %v2137_v39, 0.0 }
 0x7f6   :  { %1835 = vadd.xlane.f32.xlu1 %v1834_v22 }
 0x87f   :  { %v1836_v40 = vpop.xlane.xlu1 %1835 }
 0x880   :  { %2138 = vlog2.f32 %v1836_v40 }
 0x88d   :  { %v2139_v27 = vpop.eup %2138 }
 0x88e   :  { %v1838_v45 = vmul.f32 0.6931472, %v2139_v27 }
 0x890   :  { %v1839_v46 = vadd.f32 %v1838_v45, %v1830_v18 }
 0x892   :  { %v1840_v47 = vsub.f32 %v1824_v2, %v1839_v46 }
 0x894   :  { %1841 = vst.msk [vmem:[%s2676_s18] sm:$0x3] %vm1827_vm5, %v1840_v47 }

// kernel: forward.2
= control target key start
LH: loop header
LB: loop body
LE: loop exit
PB: predicated region body
PF: predicated region fallthrough
CT: control target
= control target key end

     0   :  { %vm280_vm0 = vcmask 257024   ;;  %v2725_v3 = vmov 0.0   ;;  %vm48_vm1 = vcmask 261120   ;;  %vm2726_vm2 = vmmov 0   ;;  %s2727_s27 = smov 32   ;;  %s2729_s6 = smov 96   ;;  %s3293_s1 = inlined_call_operand.vmem [shape: f32[2,32,128], index: 1, kind: input, shape index: {}]   ;;  %s3294_s0 = inlined_call_operand.vmem [shape: f32[8,4,32], index: 0, kind: input, shape index: {}]   ;;  %s3295_s2 = inlined_call_operand.vmem [shape: f32[2,32,128], index: 2, kind: input, shape index: {}]   ;;  %s3296_s3 = inlined_call_operand.vmem [shape: f32[2,1,128], index: 3, kind: input, shape index: {}]   ;;  %s3297_s4 = inlined_call_operand.vmem [shape: f32[8,4,32], index: 4, kind: output, shape index: {}]  }
   0x1   :  { %v28_v0 = vld [vmem:[%s3293_s1 + $0x18] sm:$0xff]  ;;  %v27_v2 = vld [vmem:[%s3293_s1 + $0x10] sm:$0xff]  ;;  %281 = vst.msk [vmem:[#allocation5] sm:$0xf] %vm280_vm0, %v2725_v3  ;;  %282 = vst.msk [vmem:[#allocation6] sm:$0xf] %vm280_vm0, %v2725_v3 }
   0x2   :  { %v2230_v1 = vld [vmem:[%s3293_s1 + $0x38] sm:$0xff]  ;;  %283 = vst.msk [vmem:[#allocation7] sm:$0xf] %vm280_vm0, %v2725_v3  ;;  %284 = vst.msk [vmem:[#allocation8] sm:$0xf] %vm280_vm0, %v2725_v3  ;;  %2376 = vmatprep.subr.mxu0 %v28_v0  ;;  %v2229_v4 = vld [vmem:[%s3293_s1 + $0x30] sm:$0xff] }
   0x3   :  { %2390 = vmatprep.subr.mxu1 %v2230_v1  ;;  %v26_v5 = vld [vmem:[%s3293_s1 + $0x8] sm:$0xff]  ;;  %2377 = vmatpush3.msra.mxu0 %v28_v0  ;;  %v25_v7 = vld [vmem:[%s3293_s1] sm:$0xff]  ;;  %v2587_v11 = vld [vmem:[%s3294_s0 + $0x10] sm:$0xff]  }
   0x4   :  { %2391 = vmatpush3.msra.mxu1 %v2230_v1  ;;  %v2228_v6 = vld [vmem:[%s3293_s1 + $0x28] sm:$0xff]  ;;  %2378 = vmatprep.subr.mxu0 %v27_v2  ;;  %v2227_v8 = vld [vmem:[%s3293_s1 + $0x20] sm:$0xff]  ;;  %v2801_v12 = vld [vmem:[%s3295_s2 + $0x18] sm:$0xff] }
   0x5   :  { %2392 = vmatprep.subr.mxu1 %v2229_v4  ;;  %2379 = vmatpush3.msra.mxu0 %v27_v2  ;;  %v2585_v9 = vld [vmem:[%s3294_s0] sm:$0xff]   ;;  %v2586_v10 = vld [vmem:[%s3294_s0 + $0x8] sm:$0xff]   ;;  %v2588_v13 = vld [vmem:[%s3294_s0 + $0x18] sm:$0xff]  }
   0x6   :  { %2393 = vmatpush3.msra.mxu1 %v2229_v4  ;;  %2380 = vmatprep.subr.mxu0 %v26_v5  ;;  %v2813_v14 = vld [vmem:[%s3295_s2 + $0x10] sm:$0xff]  ;;  %v2822_v15 = vld [vmem:[%s3295_s2 + $0x8] sm:$0xff]  ;;  %v2827_v16 = vld [vmem:[%s3295_s2 + $0x38] sm:$0xff] }
   0x7   :  { %2394 = vmatprep.subr.mxu1 %v2228_v6  ;;  %2381 = vmatpush3.msra.mxu0 %v26_v5  ;;  %v2836_v17 = vld [vmem:[%s3295_s2] sm:$0xff]  ;;  %v2843_v18 = vld [vmem:[%s3295_s2 + $0x30] sm:$0xff]  ;;  %v2853_v20 = vld [vmem:[%s3295_s2 + $0x28] sm:$0xff] }
   0x8   :  { %2395 = vmatpush3.msra.mxu1 %v2228_v6  ;;  %2382 = vmatprep.subr.mxu0 %v25_v7  ;;  %v295_v19 = vld [vmem:[#allocation5] sm:$0xf]  ;;  %v370_v21 = vld [vmem:[#allocation6] sm:$0xf] }
   0x9   :  { %2396 = vmatprep.subr.mxu1 %v2227_v8  ;;  %2383 = vmatpush3.msra.mxu0 %v25_v7  ;;  %v2861_v22 = vld [vmem:[%s3295_s2 + $0x20] sm:$0xff]  ;;  %v412_v23 = vld [vmem:[#allocation7] sm:$0xf]  ;;  %v487_v24 = vld [vmem:[#allocation8] sm:$0xf] }
   0xa   :  { %2384 = vmatprep.mubr.msk.f32.mxu0 %vm48_vm1, %v2585_v9  ;;  %2397 = vmatpush3.msra.mxu1 %v2227_v8  ;;  %v2222_v25 = vld [vmem:[%s3296_s3] ss:$0 sm:$0xff]  ;;  %v2232_v26 = vld [vmem:[%s3296_s3 + $0x1] ss:$0 sm:$0xff]  ;;  %s2728_s3 = smov 64  }
   0xb   :  { %2398 = vmatprep.mubr.msk.f32.mxu1 %vm48_vm1, %v2585_v9  ;;  %2385 = vmatmul.mubr.msk.f32.vlgmr.msra.gmra.mxu0 %vm48_vm1, %v2586_v10 }
   0xc   :  { %2399 = vmatmul.mubr.msk.f32.vlgmr.msra.gmra.mxu1 %vm48_vm1, %v2586_v10  ;;  %2404 = vmatprep.subr.mxu0 %v2725_v3 }
   0xd   :  { %2401 = vmatprep.mubr.msk.f32.mxu1 %vm48_vm1, %v2587_v11  ;;  %2405 = vmatpush3.msra.mxu0 %v2801_v12 }
   0xe   :  { %2387 = vmatprep.mubr.msk.f32.mxu0 %vm48_vm1, %v2587_v11  ;;  %2406 = vmatprep.subr.mxu0 %v2725_v3 }
   0xf   :  { %2415 = vmatprep.subr.mxu1 %v2725_v3  ;;  %2407 = vmatpush3.msra.mxu0 %v2813_v14 }
  0x10   :  { %2402 = vmatmul.mubr.msk.f32.gmra.mxu1 %vm48_vm1, %v2588_v13  ;;  %2388 = vmatmul.mubr.msk.f32.gmra.mxu0 %vm48_vm1, %v2588_v13 }
  0x11   :  { %2408 = vmatprep.subr.mxu0 %v2725_v3  ;;  %2416 = vmatpush3.msra.mxu1 %v2827_v16 }
  0x12   :  { %2409 = vmatpush3.msra.mxu0 %v2822_v15  ;;  %2417 = vmatprep.subr.mxu1 %v2725_v3 }
  0x13   :  { %2410 = vmatprep.subr.mxu0 %v2725_v3  ;;  %2412 = vmatprep.mubr.msk.f32.mxu0 %vm2726_vm2, %v2725_v3 }
  0x14   :  { %2411 = vmatpush3.msra.mxu0 %v2836_v17  ;;  %2418 = vmatpush3.msra.mxu1 %v2843_v18 }
  0x15   :  { %2413 = vmatmul.mubr.msk.f32.vlgmr.msra.gmra.mxu0 %vm48_vm1, %v295_v19  ;;  %2419 = vmatprep.subr.mxu1 %v2725_v3 }
  0x16   :  { %2423 = vmatprep.mubr.msk.f32.mxu1 %vm2726_vm2, %v2725_v3  ;;  %2420 = vmatpush3.msra.mxu1 %v2853_v20 }
  0x17   :  { %379 = vrot.lane.b32.xlu1 %v370_v21, %s2727_s27  ;;  %2421 = vmatprep.subr.mxu1 %v2725_v3 }
  0x18   :  { %2426 = vmatprep.subr.mxu0 %v2725_v3  ;;  %2422 = vmatpush3.msra.mxu1 %v2861_v22 }
  0x19   :  { %2427 = vmatpush3.msra.mxu0 %v2801_v12  ;;  %2424 = vmatmul.mubr.msk.f32.vlgmr.msra.gmra.mxu1 %vm48_vm1, %v412_v23 }
  0x1a   :  { %2428 = vmatprep.subr.mxu0 %v2725_v3  ;;  %2437 = vmatprep.subr.mxu1 %v2725_v3 }
  0x1b   :  { %496 = vrot.lane.b32.xlu1 %v487_v24, %s2727_s27  ;;  %2429 = vmatpush3.msra.mxu0 %v2813_v14 }
  0x1c   :  { %2430 = vmatprep.subr.mxu0 %v2725_v3  ;;  %2438 = vmatpush3.msra.mxu1 %v2827_v16 }
  0x1d   :  { %2431 = vmatpush3.msra.mxu0 %v2822_v15  ;;  %2439 = vmatprep.subr.mxu1 %v2725_v3 }
  0x1e   :  { %2432 = vmatprep.subr.mxu0 %v2725_v3  ;;  %2434 = vmatprep.mubr.msk.f32.mxu0 %vm2726_vm2, %v2725_v3 }
  0x1f   :  { %2433 = vmatpush3.msra.mxu0 %v2836_v17  ;;  %2440 = vmatpush3.msra.mxu1 %v2843_v18 }
  0x20   :  { %2445 = vmatprep.mubr.msk.f32.mxu1 %vm2726_vm2, %v2725_v3  ;;  %2441 = vmatprep.subr.mxu1 %v2725_v3 }
  0x21   :  { %2448 = vmatprep.subr.mxu0 %v2725_v3  ;;  %2442 = vmatpush3.msra.mxu1 %v2853_v20 }
  0x22   :  { %2443 = vmatprep.subr.mxu1 %v2725_v3 }
  0x23   :  { %2444 = vmatpush3.msra.mxu1 %v2861_v22 }
  0x24   :  { %2459 = vmatprep.subr.mxu1 %v2725_v3 }
  0x89   :  { %v380_v10 = vpop.permute.xlu1 %379 }
  0x8d   :  { %v497_v13 = vpop.permute.xlu1 %496 }
  0xcb   :  { %v2386_v27 = vpop.f32.mrf.mxu0 }
  0xcc   :  { %v2400_v28 = vpop.f32.mrf.mxu1  ;;  %v129_v29 = vadd.f32 %v2386_v27, %v2222_v25 }
  0xcd   :  { %v247_v30 = vadd.f32 %v2400_v28, %v2232_v26  ;;  %v123_v31 = vpop.f32.mrf.mxu0 }
  0xce   :  { %v241_v32 = vpop.f32.mrf.mxu1  ;;  %v147_v33 = vcombine.high %v129_v29, %v129_v29  ;;  %156 = vst [vmem:[#allocation2 + $0x8] sm:$0xf] %v129_v29  ;;  %v124_v35 = vadd.f32 %v2222_v25, %v123_v31 }
  0xcf   :  { %v265_v34 = vcombine.high %v247_v30, %v247_v30  ;;  %274 = vst [vmem:[#allocation3 + $0x8] sm:$0xf] %v247_v30  ;;  %v242_v36 = vadd.f32 %v2232_v26, %v241_v32 }
  0xd0   :  { %v2403_v37 = vpop.f32.mrf.mxu1  ;;  %157 = vst [vmem:[#allocation2 + $0xc] sm:$0xf] %v147_v33  ;;  %v146_v38 = vcombine.high %v124_v35, %v124_v35  ;;  %154 = vst [vmem:[#allocation2] sm:$0xf] %v124_v35  ;;  %v2389_v41 = vpop.f32.mrf.mxu0 }
  0xd1   :  { %275 = vst [vmem:[#allocation3 + $0xc] sm:$0xf] %v265_v34  ;;  %v264_v39 = vcombine.high %v242_v36, %v242_v36  ;;  %272 = vst [vmem:[#allocation3] sm:$0xf] %v242_v36  ;;  %v257_v40 = vadd.f32 %v2403_v37, %v2232_v26  ;;  %v139_v42 = vadd.f32 %v2389_v41, %v2222_v25 }
  0xd2   :  { %v251_v43 = vpop.f32.mrf.mxu1  ;;  %155 = vst [vmem:[#allocation2 + $0x4] sm:$0xf] %v146_v38  ;;  %v133_v46 = vpop.f32.mrf.mxu0 }
  0xd3   :  { %273 = vst [vmem:[#allocation3 + $0x4] sm:$0xf] %v264_v39  ;;  %v267_v44 = vcombine.high %v257_v40, %v257_v40  ;;  %278 = vst [vmem:[#allocation3 + $0x18] sm:$0xf] %v257_v40  ;;  %v252_v45 = vadd.f32 %v2232_v26, %v251_v43  ;;  %v149_v47 = vcombine.high %v139_v42, %v139_v42 }
  0xd4   :  { %160 = vst [vmem:[#allocation2 + $0x18] sm:$0xf] %v139_v42  ;;  %v134_v48 = vadd.f32 %v2222_v25, %v133_v46 }
  0xd5   :  { %279 = vst [vmem:[#allocation3 + $0x1c] sm:$0xf] %v267_v44  ;;  %v266_v49 = vcombine.high %v252_v45, %v252_v45  ;;  %276 = vst [vmem:[#allocation3 + $0x10] sm:$0xf] %v252_v45  ;;  %v365_v50 = vpop.f32.mrf.mxu0 }
  0xd6   :  { %161 = vst [vmem:[#allocation2 + $0x1c] sm:$0xf] %v149_v47  ;;  %v148_v51 = vcombine.high %v134_v48, %v134_v48  ;;  %158 = vst [vmem:[#allocation2 + $0x10] sm:$0xf] %v134_v48 }
  0xd7   :  { %277 = vst [vmem:[#allocation3 + $0x14] sm:$0xf] %v266_v49  ;;  %v2414_v52 = vpop.f32.mrf.mxu0  ;;  %v294_v53 = vld [vmem:[#allocation2] sm:$0xf] }
  0xd8   :  { %159 = vst [vmem:[#allocation2 + $0x14] sm:$0xf] %v148_v51  ;;  %v369_v54 = vadd.f32 %v365_v50, %v294_v53 }
  0xd9   :  { %v482_v55 = vpop.f32.mrf.mxu1  ;;  %v529_v38 = vld [vmem:[#allocation2 + $0x4] sm:$0xf] }
  0xda   :  { %2589 = vtanh.f32 %v369_v54  ;;  %v2242_v61 = vmul.f32 -1.442695, %v369_v54  ;;  %v647_v42 = vld [vmem:[#allocation3 + $0x18] sm:$0xf] }
  0xdb   :  { %v2425_v57 = vpop.f32.mrf.mxu1 }
  0xdc   :  { %v411_v56 = vld [vmem:[#allocation3 + $0x1c] sm:$0xf] }
  0xdd   :  { %v486_v58 = vadd.f32 %v482_v55, %v411_v56 }
  0xdf   :  { %2591 = vtanh.f32 %v486_v58  ;;  %v2244_v62 = vmul.f32 -1.442695, %v486_v58 }
  0xe0   :  { %2593 = vpow2.f32 %v2242_v61 }
  0xe1   :  { %2595 = vpow2.f32 %v2244_v62 }
  0xe7   :  { %v2590_v59 = vpop.eup %2589 }
  0xe8   :  { %384 = vrot.lane.b32.xlu0 %v2590_v59, %s2727_s27 }
  0xec   :  { %v2592_v60 = vpop.eup %2591 }
  0xed   :  { %501 = vrot.lane.b32.xlu0 %v2592_v60, %s2727_s27  ;;  %v2594_v63 = vpop.eup %2593 }
  0xee   :  { %v374_v0 = vadd.f32 1.0, %v2594_v63  ;;  %v2596_v1 = vpop.eup %2595 }
  0xef   :  { %v491_v2 = vadd.f32 1.0, %v2596_v1 }
  0xf0   :  { %2597 = vrcp.f32 %v374_v0 }
  0xf1   :  { %2599 = vrcp.f32 %v491_v2 }
  0xfd   :  { %v2598_v4 = vpop.eup %2597 }
  0xfe   :  { %v2600_v7 = vpop.eup %2599  ;;  %v382_v11 = vmul.f32 %v2598_v4, %v380_v10 }
  0xff   :  { %v499_v23 = vmul.f32 %v2600_v7, %v497_v13 }
 0x15a   :  { %v385_v5 = vpop.permute.xlu0 %384 }
 0x15b   :  { %v387_v6 = vmul.f32 %v2598_v4, %v385_v5 }
 0x15d   :  { %389 = vrot.lane.b32.xlu0 %v387_v6, %s2727_s27 }
 0x15f   :  { %v502_v8 = vpop.permute.xlu0 %501 }
 0x160   :  { %v504_v9 = vmul.f32 %v2600_v7, %v502_v8 }
 0x162   :  { %506 = vrot.lane.b32.xlu1 %v504_v9, %s2727_s27 }
 0x1cf   :  { %v390_v19 = vpop.permute.xlu0 %389 }
 0x1d0   :  { %v392_v21 = vadd.f32 %v390_v19, %v382_v11 }
 0x1d2   :  { %2601 = vtanh.f32 %v392_v21 }
 0x1d4   :  { %v507_v24 = vpop.permute.xlu1 %506 }
 0x1d5   :  { %v509_v25 = vadd.f32 %v507_v24, %v499_v23 }
 0x1d7   :  { %2603 = vtanh.f32 %v509_v25 }
 0x1df   :  { %v2602_v26 = vpop.eup %2601 }
 0x1e0   :  { %395 = vrot.lane.b32.xlu0 %v2602_v26, %s2727_s27 }
 0x1e4   :  { %v2604_v27 = vpop.eup %2603 }
 0x1e5   :  { %512 = vrot.lane.b32.xlu1 %v2604_v27, %s2727_s27  ;;  %v765_v27 = vld [vmem:[#allocation2 + $0x8] sm:$0xf] }
 0x252   :  { %v396_v28 = vpop.permute.xlu0 %395 }
 0x253   :  { %v398_v29 = vmul.f32 %v2598_v4, %v396_v28 }
 0x255   :  { %400 = vrot.lane.b32.xlu0 %v398_v29, %s2728_s3 }
 0x257   :  { %v513_v30 = vpop.permute.xlu1 %512 }
 0x258   :  { %v515_v31 = vmul.f32 %v2600_v7, %v513_v30 }
 0x259   :  { %405 = vrot.lane.b32.xlu0 %v392_v21, %s2729_s6 }
 0x25a   :  { %517 = vrot.lane.b32.xlu1 %v515_v31, %s2728_s3  ;;  %v883_v31 = vld [vmem:[#allocation3 + $0x14] sm:$0xf] }
 0x25e   :  { %522 = vrot.lane.b32.xlu1 %v509_v25, %s2729_s6 }
 0x2c7   :  { %v401_v32 = vpop.permute.xlu0 %400 }
 0x2c8   :  { %403 = vst.msk [vmem:[#allocation5] sm:$0xf] %vm280_vm0, %v401_v32  ;;  %409 = vst.msk [vmem:[%s3297_s4] sm:$0xf] %vm280_vm0, %v401_v32 }
 0x2cb   :  { %v406_v34 = vpop.permute.xlu0 %405 }
 0x2cc   :  { %v518_v33 = vpop.permute.xlu1 %517  ;;  %408 = vst.msk [vmem:[#allocation6] sm:$0xf] %vm280_vm0, %v406_v34 }
 0x2cd   :  { %520 = vst.msk [vmem:[#allocation7] sm:$0xf] %vm280_vm0, %v518_v33  ;;  %527 = vst.msk [vmem:[#allocation4 + $0x1c] sm:$0xf] %vm280_vm0, %v518_v33 }
 0x2cf   :  { %v530_v36 = vld [vmem:[#allocation5] sm:$0xf] }
 0x2d0   :  { %v523_v35 = vpop.permute.xlu1 %522  ;;  %2435 = vmatmul.mubr.msk.f32.vlgmr.msra.gmra.mxu0 %vm48_vm1, %v530_v36 }
 0x2d1   :  { %525 = vst.msk [vmem:[#allocation8] sm:$0xf] %vm280_vm0, %v523_v35  ;;  %2449 = vmatpush3.msra.mxu0 %v2801_v12  ;;  %2456 = vmatprep.mubr.msk.f32.mxu0 %vm2726_vm2, %v2725_v3 }
 0x2d2   :  { %2450 = vmatprep.subr.mxu0 %v2725_v3 }
 0x2d3   :  { %2451 = vmatpush3.msra.mxu0 %v2813_v14  ;;  %v605_v48 = vld [vmem:[#allocation6] sm:$0xf] }
 0x2d4   :  { %v648_v37 = vld [vmem:[#allocation7] sm:$0xf]  ;;  %2452 = vmatprep.subr.mxu0 %v2725_v3 }
 0x2d5   :  { %2446 = vmatmul.mubr.msk.f32.vlgmr.msra.gmra.mxu1 %vm48_vm1, %v648_v37  ;;  %2453 = vmatpush3.msra.mxu0 %v2822_v15 }
 0x2d6   :  { %2460 = vmatpush3.msra.mxu1 %v2827_v16  ;;  %2454 = vmatprep.subr.mxu0 %v2725_v3 }
 0x2d7   :  { %2461 = vmatprep.subr.mxu1 %v2725_v3  ;;  %2455 = vmatpush3.msra.mxu0 %v2836_v17 }
 0x2d8   :  { %2462 = vmatpush3.msra.mxu1 %v2843_v18  ;;  %2467 = vmatprep.mubr.msk.f32.mxu1 %vm2726_vm2, %v2725_v3  ;;  %v723_v49 = vld [vmem:[#allocation8] sm:$0xf] }
 0x2d9   :  { %2463 = vmatprep.subr.mxu1 %v2725_v3  ;;  %2470 = vmatprep.subr.mxu0 %v2725_v3 }
 0x2da   :  { %2464 = vmatpush3.msra.mxu1 %v2853_v20 }
 0x2db   :  { %2465 = vmatprep.subr.mxu1 %v2725_v3 }
 0x2dc   :  { %2466 = vmatpush3.msra.mxu1 %v2861_v22 }
 0x2dd   :  { %2481 = vmatprep.subr.mxu1 %v2725_v3 }
 0x390   :  { %v600_v39 = vpop.f32.mrf.mxu0 }
 0x391   :  { %v604_v40 = vadd.f32 %v600_v39, %v529_v38 }
 0x392   :  { %v2436_v41 = vpop.f32.mrf.mxu0 }
 0x393   :  { %2605 = vtanh.f32 %v604_v40  ;;  %v2246_v50 = vmul.f32 -1.442695, %v604_v40 }
 0x395   :  { %v718_v43 = vpop.f32.mrf.mxu1 }
 0x396   :  { %v722_v44 = vadd.f32 %v718_v43, %v647_v42 }
 0x397   :  { %v2447_v45 = vpop.f32.mrf.mxu1 }
 0x398   :  { %2607 = vtanh.f32 %v722_v44  ;;  %v2249_v51 = vmul.f32 -1.442695, %v722_v44 }
 0x399   :  { %2609 = vpow2.f32 %v2246_v50 }
 0x39a   :  { %2611 = vpow2.f32 %v2249_v51 }
 0x3a0   :  { %v2606_v46 = vpop.eup %2605 }
 0x3a1   :  { %619 = vrot.lane.b32.xlu0 %v2606_v46, %s2727_s27 }
 0x3a5   :  { %v2608_v47 = vpop.eup %2607  ;;  %614 = vrot.lane.b32.xlu0 %v605_v48, %s2727_s27 }
 0x3a6   :  { %737 = vrot.lane.b32.xlu1 %v2608_v47, %s2727_s27  ;;  %v2610_v52 = vpop.eup %2609 }
 0x3a7   :  { %v609_v53 = vadd.f32 1.0, %v2610_v52  ;;  %v2612_v54 = vpop.eup %2611 }
 0x3a8   :  { %v727_v55 = vadd.f32 1.0, %v2612_v54 }
 0x3a9   :  { %2613 = vrcp.f32 %v609_v53 }
 0x3aa   :  { %732 = vrot.lane.b32.xlu1 %v723_v49, %s2727_s27  ;;  %2615 = vrcp.f32 %v727_v55 }
 0x3b6   :  { %v2614_v56 = vpop.eup %2613 }
 0x3b7   :  { %v2616_v59 = vpop.eup %2615 }
 0x413   :  { %v620_v57 = vpop.permute.xlu0 %619 }
 0x414   :  { %v622_v58 = vmul.f32 %v2614_v56, %v620_v57 }
 0x416   :  { %624 = vrot.lane.b32.xlu0 %v622_v58, %s2727_s27 }
 0x417   :  { %v615_v62 = vpop.permute.xlu0 %614 }
 0x418   :  { %v738_v60 = vpop.permute.xlu1 %737  ;;  %v617_v63 = vmul.f32 %v2614_v56, %v615_v62 }
 0x419   :  { %v740_v61 = vmul.f32 %v2616_v59, %v738_v60 }
 0x41b   :  { %742 = vrot.lane.b32.xlu1 %v740_v61, %s2727_s27 }
 0x41c   :  { %v733_v0 = vpop.permute.xlu1 %732 }
 0x41d   :  { %v735_v4 = vmul.f32 %v2616_v59, %v733_v0 }
 0x488   :  { %v625_v1 = vpop.permute.xlu0 %624 }
 0x489   :  { %v627_v2 = vadd.f32 %v625_v1, %v617_v63 }
 0x48b   :  { %2617 = vtanh.f32 %v627_v2 }
 0x48d   :  { %v743_v5 = vpop.permute.xlu1 %742 }
 0x48e   :  { %v745_v6 = vadd.f32 %v743_v5, %v735_v4 }
 0x490   :  { %2619 = vtanh.f32 %v745_v6 }
 0x498   :  { %v2618_v7 = vpop.eup %2617 }
 0x499   :  { %630 = vrot.lane.b32.xlu0 %v2618_v7, %s2727_s27 }
 0x49d   :  { %v2620_v8 = vpop.eup %2619 }
 0x49e   :  { %748 = vrot.lane.b32.xlu1 %v2620_v8, %s2727_s27  ;;  %v1001_v8 = vld [vmem:[#allocation2 + $0xc] sm:$0xf] }
 0x50b   :  { %v631_v9 = vpop.permute.xlu0 %630 }
 0x50c   :  { %v633_v10 = vmul.f32 %v2614_v56, %v631_v9 }
 0x50e   :  { %635 = vrot.lane.b32.xlu0 %v633_v10, %s2728_s3 }
 0x510   :  { %v749_v11 = vpop.permute.xlu1 %748 }
 0x511   :  { %v751_v13 = vmul.f32 %v2616_v59, %v749_v11 }
 0x512   :  { %640 = vrot.lane.b32.xlu0 %v627_v2, %s2729_s6 }
 0x513   :  { %753 = vrot.lane.b32.xlu1 %v751_v13, %s2728_s3  ;;  %v1119_v13 = vld [vmem:[#allocation3 + $0x10] sm:$0xf] }
 0x517   :  { %758 = vrot.lane.b32.xlu1 %v745_v6, %s2729_s6 }
 0x580   :  { %v636_v19 = vpop.permute.xlu0 %635 }
 0x581   :  { %638 = vst.msk [vmem:[#allocation5] sm:$0xf] %vm280_vm0, %v636_v19  ;;  %2247 = vst.msk [vmem:[%s3297_s4 + $0x4] sm:$0xf] %vm280_vm0, %v636_v19 }
 0x584   :  { %v641_v23 = vpop.permute.xlu0 %640 }
 0x585   :  { %v754_v21 = vpop.permute.xlu1 %753  ;;  %643 = vst.msk [vmem:[#allocation6] sm:$0xf] %vm280_vm0, %v641_v23 }
 0x586   :  { %756 = vst.msk [vmem:[#allocation7] sm:$0xf] %vm280_vm0, %v754_v21  ;;  %763 = vst.msk [vmem:[#allocation4 + $0x18] sm:$0xf] %vm280_vm0, %v754_v21 }
 0x588   :  { %v766_v25 = vld [vmem:[#allocation5] sm:$0xf] }
 0x589   :  { %v759_v24 = vpop.permute.xlu1 %758  ;;  %2457 = vmatmul.mubr.msk.f32.vlgmr.msra.gmra.mxu0 %vm48_vm1, %v766_v25 }
 0x58a   :  { %761 = vst.msk [vmem:[#allocation8] sm:$0xf] %vm280_vm0, %v759_v24  ;;  %2471 = vmatpush3.msra.mxu0 %v2801_v12  ;;  %2478 = vmatprep.mubr.msk.f32.mxu0 %vm2726_vm2, %v2725_v3 }
 0x58b   :  { %2472 = vmatprep.subr.mxu0 %v2725_v3 }
 0x58c   :  { %2473 = vmatpush3.msra.mxu0 %v2813_v14  ;;  %v841_v37 = vld [vmem:[#allocation6] sm:$0xf] }
 0x58d   :  { %v884_v26 = vld [vmem:[#allocation7] sm:$0xf]  ;;  %2474 = vmatprep.subr.mxu0 %v2725_v3 }
 0x58e   :  { %2468 = vmatmul.mubr.msk.f32.vlgmr.msra.gmra.mxu1 %vm48_vm1, %v884_v26  ;;  %2475 = vmatpush3.msra.mxu0 %v2822_v15 }
 0x58f   :  { %2482 = vmatpush3.msra.mxu1 %v2827_v16  ;;  %2476 = vmatprep.subr.mxu0 %v2725_v3 }
 0x590   :  { %2483 = vmatprep.subr.mxu1 %v2725_v3  ;;  %2477 = vmatpush3.msra.mxu0 %v2836_v17 }
 0x591   :  { %2484 = vmatpush3.msra.mxu1 %v2843_v18  ;;  %2489 = vmatprep.mubr.msk.f32.mxu1 %vm2726_vm2, %v2725_v3  ;;  %v959_v38 = vld [vmem:[#allocation8] sm:$0xf] }
 0x592   :  { %2485 = vmatprep.subr.mxu1 %v2725_v3  ;;  %2492 = vmatprep.subr.mxu0 %v2725_v3 }
 0x593   :  { %2486 = vmatpush3.msra.mxu1 %v2853_v20 }
 0x594   :  { %2487 = vmatprep.subr.mxu1 %v2725_v3 }
 0x595   :  { %2488 = vmatpush3.msra.mxu1 %v2861_v22 }
 0x596   :  { %2503 = vmatprep.subr.mxu1 %v2725_v3 }
 0x649   :  { %v836_v28 = vpop.f32.mrf.mxu0 }
 0x64a   :  { %v840_v29 = vadd.f32 %v836_v28, %v765_v27 }
 0x64b   :  { %v2458_v30 = vpop.f32.mrf.mxu0 }
 0x64c   :  { %2621 = vtanh.f32 %v840_v29  ;;  %v2251_v39 = vmul.f32 -1.442695, %v840_v29 }
 0x64e   :  { %v954_v32 = vpop.f32.mrf.mxu1 }
 0x64f   :  { %v958_v33 = vadd.f32 %v954_v32, %v883_v31 }
 0x650   :  { %v2469_v34 = vpop.f32.mrf.mxu1 }
 0x651   :  { %2623 = vtanh.f32 %v958_v33  ;;  %v2254_v40 = vmul.f32 -1.442695, %v958_v33 }
 0x652   :  { %2625 = vpow2.f32 %v2251_v39 }
 0x653   :  { %2627 = vpow2.f32 %v2254_v40 }
 0x659   :  { %v2622_v35 = vpop.eup %2621 }
 0x65a   :  { %855 = vrot.lane.b32.xlu0 %v2622_v35, %s2727_s27 }
 0x65e   :  { %v2624_v36 = vpop.eup %2623  ;;  %850 = vrot.lane.b32.xlu0 %v841_v37, %s2727_s27 }
 0x65f   :  { %973 = vrot.lane.b32.xlu1 %v2624_v36, %s2727_s27  ;;  %v2626_v41 = vpop.eup %2625 }
 0x660   :  { %v845_v42 = vadd.f32 1.0, %v2626_v41  ;;  %v2628_v43 = vpop.eup %2627 }
 0x661   :  { %v963_v44 = vadd.f32 1.0, %v2628_v43 }
 0x662   :  { %2629 = vrcp.f32 %v845_v42 }
 0x663   :  { %968 = vrot.lane.b32.xlu1 %v959_v38, %s2727_s27  ;;  %2631 = vrcp.f32 %v963_v44 }
 0x66f   :  { %v2630_v45 = vpop.eup %2629 }
 0x670   :  { %v2632_v48 = vpop.eup %2631 }
 0x6cc   :  { %v856_v46 = vpop.permute.xlu0 %855 }
 0x6cd   :  { %v858_v47 = vmul.f32 %v2630_v45, %v856_v46 }
 0x6cf   :  { %860 = vrot.lane.b32.xlu0 %v858_v47, %s2727_s27 }
 0x6d0   :  { %v851_v51 = vpop.permute.xlu0 %850 }
 0x6d1   :  { %v974_v49 = vpop.permute.xlu1 %973  ;;  %v853_v52 = vmul.f32 %v2630_v45, %v851_v51 }
 0x6d2   :  { %v976_v50 = vmul.f32 %v2632_v48, %v974_v49 }
 0x6d4   :  { %978 = vrot.lane.b32.xlu1 %v976_v50, %s2727_s27 }
 0x6d5   :  { %v969_v53 = vpop.permute.xlu1 %968 }
 0x6d6   :  { %v971_v56 = vmul.f32 %v2632_v48, %v969_v53 }
 0x741   :  { %v861_v54 = vpop.permute.xlu0 %860 }
 0x742   :  { %v863_v55 = vadd.f32 %v861_v54, %v853_v52 }
 0x744   :  { %2633 = vtanh.f32 %v863_v55 }
 0x746   :  { %v979_v57 = vpop.permute.xlu1 %978 }
 0x747   :  { %v981_v58 = vadd.f32 %v979_v57, %v971_v56 }
 0x749   :  { %2635 = vtanh.f32 %v981_v58 }
 0x751   :  { %v2634_v59 = vpop.eup %2633 }
 0x752   :  { %866 = vrot.lane.b32.xlu0 %v2634_v59, %s2727_s27 }
 0x756   :  { %v2636_v60 = vpop.eup %2635 }
 0x757   :  { %984 = vrot.lane.b32.xlu1 %v2636_v60, %s2727_s27 }
 0x7c4   :  { %v867_v61 = vpop.permute.xlu0 %866 }
 0x7c5   :  { %v869_v62 = vmul.f32 %v2630_v45, %v867_v61 }
 0x7c7   :  { %871 = vrot.lane.b32.xlu0 %v869_v62, %s2728_s3 }
 0x7c9   :  { %v985_v63 = vpop.permute.xlu1 %984 }
 0x7ca   :  { %v987_v0 = vmul.f32 %v2632_v48, %v985_v63 }
 0x7cb   :  { %876 = vrot.lane.b32.xlu0 %v863_v55, %s2729_s6 }
 0x7cc   :  { %989 = vrot.lane.b32.xlu1 %v987_v0, %s2728_s3 }
 0x7d0   :  { %994 = vrot.lane.b32.xlu1 %v981_v58, %s2729_s6 }
 0x839   :  { %v872_v1 = vpop.permute.xlu0 %871 }
 0x83a   :  { %874 = vst.msk [vmem:[#allocation5] sm:$0xf] %vm280_vm0, %v872_v1  ;;  %2252 = vst.msk [vmem:[%s3297_s4 + $0x8] sm:$0xf] %vm280_vm0, %v872_v1 }
 0x83d   :  { %v877_v4 = vpop.permute.xlu0 %876 }
 0x83e   :  { %v990_v2 = vpop.permute.xlu1 %989  ;;  %879 = vst.msk [vmem:[#allocation6] sm:$0xf] %vm280_vm0, %v877_v4 }
 0x83f   :  { %992 = vst.msk [vmem:[#allocation7] sm:$0xf] %vm280_vm0, %v990_v2  ;;  %999 = vst.msk [vmem:[#allocation4 + $0x14] sm:$0xf] %vm280_vm0, %v990_v2 }
 0x841   :  { %v1002_v6 = vld [vmem:[#allocation5] sm:$0xf] }
 0x842   :  { %v995_v5 = vpop.permute.xlu1 %994  ;;  %2479 = vmatmul.mubr.msk.f32.vlgmr.msra.gmra.mxu0 %vm48_vm1, %v1002_v6 }
 0x843   :  { %997 = vst.msk [vmem:[#allocation8] sm:$0xf] %vm280_vm0, %v995_v5  ;;  %2493 = vmatpush3.msra.mxu0 %v2801_v12  ;;  %2500 = vmatprep.mubr.msk.f32.mxu0 %vm2726_vm2, %v2725_v3 }
 0x844   :  { %2494 = vmatprep.subr.mxu0 %v2725_v3 }
 0x845   :  { %2495 = vmatpush3.msra.mxu0 %v2813_v14  ;;  %v1077_v26 = vld [vmem:[#allocation6] sm:$0xf] }
 0x846   :  { %v1120_v7 = vld [vmem:[#allocation7] sm:$0xf]  ;;  %2496 = vmatprep.subr.mxu0 %v2725_v3 }
 0x847   :  { %2490 = vmatmul.mubr.msk.f32.vlgmr.msra.gmra.mxu1 %vm48_vm1, %v1120_v7  ;;  %2497 = vmatpush3.msra.mxu0 %v2822_v15 }
 0x848   :  { %2504 = vmatpush3.msra.mxu1 %v2827_v16  ;;  %2498 = vmatprep.subr.mxu0 %v2725_v3 }
 0x849   :  { %2505 = vmatprep.subr.mxu1 %v2725_v3  ;;  %2499 = vmatpush3.msra.mxu0 %v2836_v17 }
 0x84a   :  { %2506 = vmatpush3.msra.mxu1 %v2843_v18  ;;  %2511 = vmatprep.mubr.msk.f32.mxu1 %vm2726_vm2, %v2725_v3  ;;  %v1195_v27 = vld [vmem:[#allocation8] sm:$0xf] }
 0x84b   :  { %2507 = vmatprep.subr.mxu1 %v2725_v3  ;;  %2514 = vmatprep.subr.mxu0 %v2725_v3 }
 0x84c   :  { %2508 = vmatpush3.msra.mxu1 %v2853_v20 }
 0x84d   :  { %2509 = vmatprep.subr.mxu1 %v2725_v3 }
 0x84e   :  { %2510 = vmatpush3.msra.mxu1 %v2861_v22 }
 0x84f   :  { %2525 = vmatprep.subr.mxu1 %v2725_v3 }
 0x902   :  { %v1072_v9 = vpop.f32.mrf.mxu0 }
 0x903   :  { %v1076_v10 = vadd.f32 %v1072_v9, %v1001_v8 }
 0x904   :  { %v2480_v11 = vpop.f32.mrf.mxu0 }
 0x905   :  { %2637 = vtanh.f32 %v1076_v10  ;;  %v2256_v28 = vmul.f32 -1.442695, %v1076_v10 }
 0x907   :  { %v1190_v19 = vpop.f32.mrf.mxu1 }
 0x908   :  { %v1194_v21 = vadd.f32 %v1190_v19, %v1119_v13 }
 0x909   :  { %v2491_v23 = vpop.f32.mrf.mxu1 }
 0x90a   :  { %2639 = vtanh.f32 %v1194_v21  ;;  %v2259_v29 = vmul.f32 -1.442695, %v1194_v21 }
 0x90b   :  { %2641 = vpow2.f32 %v2256_v28 }
 0x90c   :  { %2643 = vpow2.f32 %v2259_v29 }
 0x912   :  { %v2638_v24 = vpop.eup %2637 }
 0x913   :  { %1091 = vrot.lane.b32.xlu0 %v2638_v24, %s2727_s27 }
 0x917   :  { %v2640_v25 = vpop.eup %2639  ;;  %1086 = vrot.lane.b32.xlu0 %v1077_v26, %s2727_s27 }
 0x918   :  { %1209 = vrot.lane.b32.xlu1 %v2640_v25, %s2727_s27  ;;  %v2642_v30 = vpop.eup %2641 }
 0x919   :  { %v1081_v31 = vadd.f32 1.0, %v2642_v30  ;;  %v2644_v32 = vpop.eup %2643 }
 0x91a   :  { %v1199_v33 = vadd.f32 1.0, %v2644_v32 }
 0x91b   :  { %2645 = vrcp.f32 %v1081_v31 }
 0x91c   :  { %1204 = vrot.lane.b32.xlu1 %v1195_v27, %s2727_s27  ;;  %2647 = vrcp.f32 %v1199_v33 }
 0x928   :  { %v2646_v34 = vpop.eup %2645 }
 0x929   :  { %v2648_v37 = vpop.eup %2647 }
 0x985   :  { %v1092_v35 = vpop.permute.xlu0 %1091 }
 0x986   :  { %v1094_v36 = vmul.f32 %v2646_v34, %v1092_v35 }
 0x988   :  { %1096 = vrot.lane.b32.xlu0 %v1094_v36, %s2727_s27 }
 0x989   :  { %v1087_v40 = vpop.permute.xlu0 %1086 }
 0x98a   :  { %v1210_v38 = vpop.permute.xlu1 %1209  ;;  %v1089_v41 = vmul.f32 %v2646_v34, %v1087_v40 }
 0x98b   :  { %v1212_v39 = vmul.f32 %v2648_v37, %v1210_v38 }
 0x98d   :  { %1214 = vrot.lane.b32.xlu1 %v1212_v39, %s2727_s27 }
 0x98e   :  { %v1205_v42 = vpop.permute.xlu1 %1204 }
 0x98f   :  { %v1207_v45 = vmul.f32 %v2648_v37, %v1205_v42 }
 0x9fa   :  { %v1097_v43 = vpop.permute.xlu0 %1096 }
 0x9fb   :  { %v1099_v44 = vadd.f32 %v1097_v43, %v1089_v41  ;;  %v3097_v43 = vld [vmem:[%s3295_s2 + $0x18] sm:$0xff] }
 0x9fd   :  { %2649 = vtanh.f32 %v1099_v44 }
 0x9ff   :  { %v1215_v46 = vpop.permute.xlu1 %1214 }
 0xa00   :  { %v1217_v47 = vadd.f32 %v1215_v46, %v1207_v45 }
 0xa02   :  { %2651 = vtanh.f32 %v1217_v47 }
 0xa0a   :  { %v2650_v48 = vpop.eup %2649 }
 0xa0b   :  { %1102 = vrot.lane.b32.xlu0 %v2650_v48, %s2727_s27  ;;  %v3109_v48 = vld [vmem:[%s3295_s2 + $0x10] sm:$0xff] }
 0xa0f   :  { %v2652_v49 = vpop.eup %2651 }
 0xa10   :  { %1220 = vrot.lane.b32.xlu1 %v2652_v49, %s2727_s27 }
 0xa7d   :  { %v1103_v50 = vpop.permute.xlu0 %1102 }
 0xa7e   :  { %v1105_v51 = vmul.f32 %v2646_v34, %v1103_v50  ;;  %v3121_v50 = vld [vmem:[%s3295_s2 + $0x8] sm:$0xff] }
 0xa80   :  { %1107 = vrot.lane.b32.xlu0 %v1105_v51, %s2728_s3  ;;  %v3127_v51 = vld [vmem:[%s3295_s2 + $0x38] sm:$0xff] }
 0xa82   :  { %v1221_v52 = vpop.permute.xlu1 %1220 }
 0xa83   :  { %v1223_v53 = vmul.f32 %v2648_v37, %v1221_v52 }
 0xa84   :  { %1112 = vrot.lane.b32.xlu0 %v1099_v44, %s2729_s6 }
 0xa85   :  { %1225 = vrot.lane.b32.xlu1 %v1223_v53, %s2728_s3  ;;  %v3135_v53 = vld [vmem:[%s3295_s2 + $0x30] sm:$0xff] }
 0xa89   :  { %1230 = vrot.lane.b32.xlu1 %v1217_v47, %s2729_s6 }
 0xaf2   :  { %v1108_v54 = vpop.permute.xlu0 %1107 }
 0xaf3   :  { %1110 = vst.msk [vmem:[#allocation5] sm:$0xf] %vm280_vm0, %v1108_v54  ;;  %2257 = vst.msk [vmem:[%s3297_s4 + $0xc] sm:$0xf] %vm280_vm0, %v1108_v54  ;;  %v3141_v54 = vld [vmem:[%s3295_s2] sm:$0xff] }
 0xaf6   :  { %v1113_v56 = vpop.permute.xlu0 %1112 }
 0xaf7   :  { %v1226_v55 = vpop.permute.xlu1 %1225  ;;  %1115 = vst.msk [vmem:[#allocation6] sm:$0xf] %vm280_vm0, %v1113_v56  ;;  %v3162_v56 = vld [vmem:[%s3295_s2 + $0x20] sm:$0xff] }
 0xaf8   :  { %1228 = vst.msk [vmem:[#allocation7] sm:$0xf] %vm280_vm0, %v1226_v55  ;;  %1235 = vst.msk [vmem:[#allocation4 + $0x10] sm:$0xf] %vm280_vm0, %v1226_v55  ;;  %v3154_v55 = vld [vmem:[%s3295_s2 + $0x28] sm:$0xff] }
 0xafa   :  { %v1238_v58 = vld [vmem:[#allocation5] sm:$0xf]  ;;  %v2181_v45 = vld [vmem:[%s3297_s4 + $0xc] sm:$0xf] }
 0xafb   :  { %v1231_v57 = vpop.permute.xlu1 %1230  ;;  %2501 = vmatmul.mubr.msk.f32.vlgmr.msra.gmra.mxu0 %vm48_vm1, %v1238_v58 }
 0xafc   :  { %1233 = vst.msk [vmem:[#allocation8] sm:$0xf] %vm280_vm0, %v1231_v57  ;;  %2515 = vmatpush3.msra.mxu0 %v2801_v12  ;;  %2522 = vmatprep.mubr.msk.f32.mxu0 %vm2726_vm2, %v2725_v3  ;;  %v1237_v12 = vld [vmem:[#allocation2 + $0x10] sm:$0xf]  ;;  %v1473_v57 = vld [vmem:[#allocation2 + $0x14] sm:$0xf] }
 0xafd   :  { %2516 = vmatprep.subr.mxu0 %v2725_v3 }
 0xafe   :  { %2517 = vmatpush3.msra.mxu0 %v2813_v14  ;;  %v1313_v63 = vld [vmem:[#allocation6] sm:$0xf] }
 0xaff   :  { %v1356_v59 = vld [vmem:[#allocation7] sm:$0xf]  ;;  %2518 = vmatprep.subr.mxu0 %v2725_v3  ;;  %v2190_v38 = vld [vmem:[#allocation4 + $0x10] sm:$0xf] }
 0xb00   :  { %2512 = vmatmul.mubr.msk.f32.vlgmr.msra.gmra.mxu1 %vm48_vm1, %v1356_v59  ;;  %2519 = vmatpush3.msra.mxu0 %v2822_v15 }
 0xb01   :  { %2526 = vmatpush3.msra.mxu1 %v2827_v16  ;;  %2520 = vmatprep.subr.mxu0 %v2725_v3 }
 0xb02   :  { %2527 = vmatprep.subr.mxu1 %v2725_v3  ;;  %2521 = vmatpush3.msra.mxu0 %v2836_v17  ;;  %v1355_v17 = vld [vmem:[#allocation3 + $0xc] sm:$0xf] }
 0xb03   :  { %2528 = vmatpush3.msra.mxu1 %v2843_v18  ;;  %2533 = vmatprep.mubr.msk.f32.mxu1 %vm2726_vm2, %v2725_v3 }
 0xb04   :  { %2529 = vmatprep.subr.mxu1 %v2725_v3  ;;  %2536 = vmatprep.subr.mxu0 %v2725_v3 }
 0xb05   :  { %2530 = vmatpush3.msra.mxu1 %v2853_v20 }
 0xb06   :  { %2531 = vmatprep.subr.mxu1 %v2725_v3 }
 0xb07   :  { %2532 = vmatpush3.msra.mxu1 %v2861_v22  ;;  %v1431_v22 = vld [vmem:[#allocation8] sm:$0xf] }
 0xb08   :  { %2547 = vmatprep.subr.mxu1 %v2725_v3 }
 0xbbb   :  { %v1308_v14 = vpop.f32.mrf.mxu0 }
 0xbbc   :  { %v1312_v15 = vadd.f32 %v1308_v14, %v1237_v12  ;;  %v1591_v14 = vld [vmem:[#allocation3 + $0x8] sm:$0xf] }
 0xbbd   :  { %v2502_v16 = vpop.f32.mrf.mxu0 }
 0xbbe   :  { %2653 = vtanh.f32 %v1312_v15  ;;  %v2261_v0 = vmul.f32 -1.442695, %v1312_v15 }
 0xbc0   :  { %v1426_v18 = vpop.f32.mrf.mxu1 }
 0xbc1   :  { %v1430_v60 = vadd.f32 %v1426_v18, %v1355_v17 }
 0xbc2   :  { %v2513_v61 = vpop.f32.mrf.mxu1 }
 0xbc3   :  { %2655 = vtanh.f32 %v1430_v60  ;;  %v2264_v1 = vmul.f32 -1.442695, %v1430_v60 }
 0xbc4   :  { %2657 = vpow2.f32 %v2261_v0 }
 0xbc5   :  { %2659 = vpow2.f32 %v2264_v1 }
 0xbcb   :  { %v2654_v62 = vpop.eup %2653 }
 0xbcc   :  { %1327 = vrot.lane.b32.xlu0 %v2654_v62, %s2727_s27 }
 0xbd0   :  { %v2656_v20 = vpop.eup %2655  ;;  %1322 = vrot.lane.b32.xlu0 %v1313_v63, %s2727_s27 }
 0xbd1   :  { %1445 = vrot.lane.b32.xlu1 %v2656_v20, %s2727_s27  ;;  %v2658_v2 = vpop.eup %2657 }
 0xbd2   :  { %v1317_v4 = vadd.f32 1.0, %v2658_v2  ;;  %v2660_v5 = vpop.eup %2659 }
 0xbd3   :  { %v1435_v6 = vadd.f32 1.0, %v2660_v5 }
 0xbd4   :  { %2661 = vrcp.f32 %v1317_v4 }
 0xbd5   :  { %1440 = vrot.lane.b32.xlu1 %v1431_v22, %s2727_s27  ;;  %2663 = vrcp.f32 %v1435_v6 }
 0xbe1   :  { %v2662_v7 = vpop.eup %2661 }
 0xbe2   :  { %v2664_v10 = vpop.eup %2663 }
 0xc3e   :  { %v1328_v8 = vpop.permute.xlu0 %1327 }
 0xc3f   :  { %v1330_v9 = vmul.f32 %v2662_v7, %v1328_v8 }
 0xc41   :  { %1332 = vrot.lane.b32.xlu0 %v1330_v9, %s2727_s27 }
 0xc42   :  { %v1323_v19 = vpop.permute.xlu0 %1322 }
 0xc43   :  { %v1446_v11 = vpop.permute.xlu1 %1445  ;;  %v1325_v21 = vmul.f32 %v2662_v7, %v1323_v19 }
 0xc44   :  { %v1448_v13 = vmul.f32 %v2664_v10, %v1446_v11 }
 0xc46   :  { %1450 = vrot.lane.b32.xlu1 %v1448_v13, %s2727_s27 }
 0xc47   :  { %v1441_v23 = vpop.permute.xlu1 %1440 }
 0xc48   :  { %v1443_v26 = vmul.f32 %v2664_v10, %v1441_v23 }
 0xcb3   :  { %v1333_v24 = vpop.permute.xlu0 %1332 }
 0xcb4   :  { %v1335_v25 = vadd.f32 %v1333_v24, %v1325_v21 }
 0xcb6   :  { %2665 = vtanh.f32 %v1335_v25 }
 0xcb8   :  { %v1451_v27 = vpop.permute.xlu1 %1450 }
 0xcb9   :  { %v1453_v28 = vadd.f32 %v1451_v27, %v1443_v26 }
 0xcbb   :  { %2667 = vtanh.f32 %v1453_v28 }
 0xcc3   :  { %v2666_v29 = vpop.eup %2665 }
 0xcc4   :  { %1338 = vrot.lane.b32.xlu0 %v2666_v29, %s2727_s27 }
 0xcc8   :  { %v2668_v30 = vpop.eup %2667 }
 0xcc9   :  { %1456 = vrot.lane.b32.xlu1 %v2668_v30, %s2727_s27 }
 0xd36   :  { %v1339_v31 = vpop.permute.xlu0 %1338 }
 0xd37   :  { %v1341_v32 = vmul.f32 %v2662_v7, %v1339_v31 }
 0xd39   :  { %1343 = vrot.lane.b32.xlu0 %v1341_v32, %s2728_s3 }
 0xd3b   :  { %v1457_v33 = vpop.permute.xlu1 %1456 }
 0xd3c   :  { %v1459_v34 = vmul.f32 %v2664_v10, %v1457_v33 }
 0xd3d   :  { %1348 = vrot.lane.b32.xlu0 %v1335_v25, %s2729_s6 }
 0xd3e   :  { %1461 = vrot.lane.b32.xlu1 %v1459_v34, %s2728_s3 }
 0xd42   :  { %1466 = vrot.lane.b32.xlu1 %v1453_v28, %s2729_s6 }
 0xdab   :  { %v1344_v35 = vpop.permute.xlu0 %1343 }
 0xdac   :  { %1346 = vst.msk [vmem:[#allocation5] sm:$0xf] %vm280_vm0, %v1344_v35  ;;  %2262 = vst.msk [vmem:[%s3297_s4 + $0x10] sm:$0xf] %vm280_vm0, %v1344_v35  ;;  %v2191_v35 = vld [vmem:[#allocation4 + $0x14] sm:$0xf] }
 0xdaf   :  { %v1349_v37 = vpop.permute.xlu0 %1348 }
 0xdb0   :  { %v1462_v36 = vpop.permute.xlu1 %1461  ;;  %1351 = vst.msk [vmem:[#allocation6] sm:$0xf] %vm280_vm0, %v1349_v37 }
 0xdb1   :  { %1464 = vst.msk [vmem:[#allocation7] sm:$0xf] %vm280_vm0, %v1462_v36  ;;  %1471 = vst.msk [vmem:[#allocation4 + $0xc] sm:$0xf] %vm280_vm0, %v1462_v36 }
 0xdb3   :  { %v2182_v39 = vld [vmem:[%s3297_s4 + $0x10] sm:$0xf]  ;;  %v1474_v41 = vld [vmem:[#allocation5] sm:$0xf] }
 0xdb4   :  { %v1467_v40 = vpop.permute.xlu1 %1466  ;;  %v2198_v42 = vadd.f32 %v2190_v38, %v2182_v39  ;;  %2523 = vmatmul.mubr.msk.f32.vlgmr.msra.gmra.mxu0 %vm48_vm1, %v1474_v41  ;;  %v2180_v41 = vld [vmem:[%s3297_s4 + $0x8] sm:$0xf] }
 0xdb5   :  { %1469 = vst.msk [vmem:[#allocation8] sm:$0xf] %vm280_vm0, %v1467_v40  ;;  %2537 = vmatpush3.msra.mxu0 %v3097_v43  ;;  %2544 = vmatprep.mubr.msk.f32.mxu0 %vm2726_vm2, %v2725_v3 }
 0xdb6   :  { %v2206_v44 = vmul.f32 0.5, %v2198_v42  ;;  %2538 = vmatprep.subr.mxu0 %v2725_v3 }
 0xdb7   :  { %2539 = vmatpush3.msra.mxu0 %v3109_v48  ;;  %v1549_v61 = vld [vmem:[#allocation6] sm:$0xf] }
 0xdb8   :  { %v2189_v46 = vld [vmem:[#allocation4 + $0xc] sm:$0xf]  ;;  %v1592_v47 = vld [vmem:[#allocation7] sm:$0xf]  ;;  %2214 = vst.msk [vmem:[%s3297_s4 + $0x10] sm:$0xf] %vm280_vm0, %v2206_v44  ;;  %2540 = vmatprep.subr.mxu0 %v2725_v3 }
 0xdb9   :  { %v2197_v49 = vadd.f32 %v2189_v46, %v2181_v45  ;;  %2534 = vmatmul.mubr.msk.f32.vlgmr.msra.gmra.mxu1 %vm48_vm1, %v1592_v47  ;;  %2541 = vmatpush3.msra.mxu0 %v3121_v50  ;;  %v1709_v46 = vld [vmem:[#allocation2 + $0x18] sm:$0xf] }
 0xdba   :  { %2548 = vmatpush3.msra.mxu1 %v3127_v51  ;;  %2542 = vmatprep.subr.mxu0 %v2725_v3 }
 0xdbb   :  { %v2205_v52 = vmul.f32 0.5, %v2197_v49  ;;  %2549 = vmatprep.subr.mxu1 %v2725_v3  ;;  %2543 = vmatpush3.msra.mxu0 %v3141_v54 }
 0xdbc   :  { %2550 = vmatpush3.msra.mxu1 %v3135_v53  ;;  %2555 = vmatprep.mubr.msk.f32.mxu1 %vm2726_vm2, %v2725_v3  ;;  %v1667_v62 = vld [vmem:[#allocation8] sm:$0xf] }
 0xdbd   :  { %2213 = vst.msk [vmem:[%s3297_s4 + $0xc] sm:$0xf] %vm280_vm0, %v2205_v52  ;;  %2551 = vmatprep.subr.mxu1 %v2725_v3  ;;  %2558 = vmatprep.subr.mxu0 %v2725_v3 }
 0xdbe   :  { %2552 = vmatpush3.msra.mxu1 %v3154_v55 }
 0xdbf   :  { %2553 = vmatprep.subr.mxu1 %v2725_v3 }
 0xdc0   :  { %2554 = vmatpush3.msra.mxu1 %v3162_v56 }
 0xdc1   :  { %2569 = vmatprep.subr.mxu1 %v2725_v3 }
 0xe74   :  { %v1544_v58 = vpop.f32.mrf.mxu0 }
 0xe75   :  { %v1548_v59 = vadd.f32 %v1544_v58, %v1473_v57 }
 0xe76   :  { %v2524_v12 = vpop.f32.mrf.mxu0 }
 0xe77   :  { %2669 = vtanh.f32 %v1548_v59  ;;  %v2266_v20 = vmul.f32 -1.442695, %v1548_v59 }
 0xe79   :  { %v1662_v15 = vpop.f32.mrf.mxu1 }
 0xe7a   :  { %v1666_v16 = vadd.f32 %v1662_v15, %v1591_v14 }
 0xe7b   :  { %v2535_v17 = vpop.f32.mrf.mxu1 }
 0xe7c   :  { %2671 = vtanh.f32 %v1666_v16  ;;  %v2269_v63 = vmul.f32 -1.442695, %v1666_v16 }
 0xe7d   :  { %2673 = vpow2.f32 %v2266_v20 }
 0xe7e   :  { %2675 = vpow2.f32 %v2269_v63 }
 0xe84   :  { %v2670_v18 = vpop.eup %2669 }
 0xe85   :  { %1563 = vrot.lane.b32.xlu0 %v2670_v18, %s2727_s27 }
 0xe89   :  { %v2672_v60 = vpop.eup %2671  ;;  %1558 = vrot.lane.b32.xlu0 %v1549_v61, %s2727_s27 }
 0xe8a   :  { %1681 = vrot.lane.b32.xlu1 %v2672_v60, %s2727_s27  ;;  %v2674_v22 = vpop.eup %2673 }
 0xe8b   :  { %v1553_v0 = vadd.f32 1.0, %v2674_v22  ;;  %v2676_v1 = vpop.eup %2675 }
 0xe8c   :  { %v1671_v2 = vadd.f32 1.0, %v2676_v1 }
 0xe8d   :  { %2677 = vrcp.f32 %v1553_v0 }
 0xe8e   :  { %1676 = vrot.lane.b32.xlu1 %v1667_v62, %s2727_s27  ;;  %2679 = vrcp.f32 %v1671_v2 }
 0xe9a   :  { %v2678_v4 = vpop.eup %2677 }
 0xe9b   :  { %v2680_v7 = vpop.eup %2679 }
 0xef7   :  { %v1564_v5 = vpop.permute.xlu0 %1563 }
 0xef8   :  { %v1566_v6 = vmul.f32 %v2678_v4, %v1564_v5 }
 0xefa   :  { %1568 = vrot.lane.b32.xlu0 %v1566_v6, %s2727_s27 }
 0xefb   :  { %v1559_v10 = vpop.permute.xlu0 %1558 }
 0xefc   :  { %v1682_v8 = vpop.permute.xlu1 %1681  ;;  %v1561_v11 = vmul.f32 %v2678_v4, %v1559_v10 }
 0xefd   :  { %v1684_v9 = vmul.f32 %v2680_v7, %v1682_v8 }
 0xeff   :  { %1686 = vrot.lane.b32.xlu1 %v1684_v9, %s2727_s27 }
 0xf00   :  { %v1677_v13 = vpop.permute.xlu1 %1676 }
 0xf01   :  { %v1679_v23 = vmul.f32 %v2680_v7, %v1677_v13 }
 0xf6c   :  { %v1569_v19 = vpop.permute.xlu0 %1568 }
 0xf6d   :  { %v1571_v21 = vadd.f32 %v1569_v19, %v1561_v11 }
 0xf6f   :  { %2681 = vtanh.f32 %v1571_v21 }
 0xf71   :  { %v1687_v24 = vpop.permute.xlu1 %1686 }
 0xf72   :  { %v1689_v25 = vadd.f32 %v1687_v24, %v1679_v23  ;;  %v2192_v23 = vld [vmem:[#allocation4 + $0x18] sm:$0xf] }
 0xf74   :  { %2683 = vtanh.f32 %v1689_v25 }
 0xf7c   :  { %v2682_v26 = vpop.eup %2681 }
 0xf7d   :  { %1574 = vrot.lane.b32.xlu0 %v2682_v26, %s2727_s27 }
 0xf81   :  { %v2684_v27 = vpop.eup %2683 }
 0xf82   :  { %1692 = vrot.lane.b32.xlu1 %v2684_v27, %s2727_s27 }
 0xfef   :  { %v1575_v28 = vpop.permute.xlu0 %1574 }
 0xff0   :  { %v1577_v29 = vmul.f32 %v2678_v4, %v1575_v28 }
 0xff2   :  { %1579 = vrot.lane.b32.xlu0 %v1577_v29, %s2728_s3  ;;  %v2179_v29 = vld [vmem:[%s3297_s4 + $0x4] sm:$0xf] }
 0xff4   :  { %v1693_v30 = vpop.permute.xlu1 %1692 }
 0xff5   :  { %v1695_v31 = vmul.f32 %v2680_v7, %v1693_v30 }
 0xff6   :  { %1584 = vrot.lane.b32.xlu0 %v1571_v21, %s2729_s6 }
 0xff7   :  { %1697 = vrot.lane.b32.xlu1 %v1695_v31, %s2728_s3 }
 0xffb   :  { %1702 = vrot.lane.b32.xlu1 %v1689_v25, %s2729_s6 }
0x1064   :  { %v1580_v32 = vpop.permute.xlu0 %1579 }
0x1065   :  { %1582 = vst.msk [vmem:[#allocation5] sm:$0xf] %vm280_vm0, %v1580_v32  ;;  %2267 = vst.msk [vmem:[%s3297_s4 + $0x14] sm:$0xf] %vm280_vm0, %v1580_v32 }
0x1068   :  { %v1585_v34 = vpop.permute.xlu0 %1584 }
0x1069   :  { %v1698_v33 = vpop.permute.xlu1 %1697  ;;  %1587 = vst.msk [vmem:[#allocation6] sm:$0xf] %vm280_vm0, %v1585_v34  ;;  %v1945_v34 = vld [vmem:[#allocation2 + $0x1c] sm:$0xf] }
0x106a   :  { %1700 = vst.msk [vmem:[#allocation7] sm:$0xf] %vm280_vm0, %v1698_v33  ;;  %1707 = vst.msk [vmem:[#allocation4 + $0x8] sm:$0xf] %vm280_vm0, %v1698_v33 }
0x106c   :  { %v2183_v36 = vld [vmem:[%s3297_s4 + $0x14] sm:$0xf]  ;;  %v1710_v38 = vld [vmem:[#allocation5] sm:$0xf] }
0x106d   :  { %v1703_v37 = vpop.permute.xlu1 %1702  ;;  %v2199_v39 = vadd.f32 %v2191_v35, %v2183_v36  ;;  %2545 = vmatmul.mubr.msk.f32.vlgmr.msra.gmra.mxu0 %vm48_vm1, %v1710_v38  ;;  %v2062_v38 = vld [vmem:[#allocation3] sm:$0xf] }
0x106e   :  { %1705 = vst.msk [vmem:[#allocation8] sm:$0xf] %vm280_vm0, %v1703_v37  ;;  %2559 = vmatpush3.msra.mxu0 %v3097_v43  ;;  %2566 = vmatprep.mubr.msk.f32.mxu0 %vm2726_vm2, %v2725_v3 }
0x106f   :  { %v2207_v40 = vmul.f32 0.5, %v2199_v39  ;;  %2560 = vmatprep.subr.mxu0 %v2725_v3 }
0x1070   :  { %2561 = vmatpush3.msra.mxu0 %v3109_v48  ;;  %v1785_v58 = vld [vmem:[#allocation6] sm:$0xf] }
0x1071   :  { %v2188_v42 = vld [vmem:[#allocation4 + $0x8] sm:$0xf]  ;;  %2215 = vst.msk [vmem:[%s3297_s4 + $0x14] sm:$0xf] %vm280_vm0, %v2207_v40  ;;  %2562 = vmatprep.subr.mxu0 %v2725_v3 }
0x1072   :  { %v1828_v44 = vld [vmem:[#allocation7] sm:$0xf]  ;;  %v2196_v43 = vadd.f32 %v2188_v42, %v2180_v41  ;;  %2563 = vmatpush3.msra.mxu0 %v3121_v50  ;;  %v1827_v50 = vld [vmem:[#allocation3 + $0x4] sm:$0xf] }
0x1073   :  { %2556 = vmatmul.mubr.msk.f32.vlgmr.msra.gmra.mxu1 %vm48_vm1, %v1828_v44  ;;  %2564 = vmatprep.subr.mxu0 %v2725_v3 }
0x1074   :  { %2570 = vmatpush3.msra.mxu1 %v3127_v51  ;;  %v2204_v45 = vmul.f32 0.5, %v2196_v43  ;;  %2565 = vmatpush3.msra.mxu0 %v3141_v54 }
0x1075   :  { %2571 = vmatprep.subr.mxu1 %v2725_v3  ;;  %2577 = vmatprep.mubr.msk.f32.mxu1 %vm2726_vm2, %v2725_v3 }
0x1076   :  { %2572 = vmatpush3.msra.mxu1 %v3135_v53  ;;  %2212 = vst.msk [vmem:[%s3297_s4 + $0x8] sm:$0xf] %vm280_vm0, %v2204_v45 }
0x1077   :  { %2573 = vmatprep.subr.mxu1 %v2725_v3 }
0x1078   :  { %2574 = vmatpush3.msra.mxu1 %v3154_v55 }
0x1079   :  { %2575 = vmatprep.subr.mxu1 %v2725_v3  ;;  %v1903_v3 = vld [vmem:[#allocation8] sm:$0xf] }
0x107a   :  { %2576 = vmatpush3.msra.mxu1 %v3162_v56 }
0x112d   :  { %v1780_v47 = vpop.f32.mrf.mxu0 }
0x112e   :  { %v1784_v48 = vadd.f32 %v1780_v47, %v1709_v46 }
0x112f   :  { %v2546_v49 = vpop.f32.mrf.mxu0 }
0x1130   :  { %2685 = vtanh.f32 %v1784_v48  ;;  %v2271_v55 = vmul.f32 -1.442695, %v1784_v48 }
0x1133   :  { %v1898_v51 = vpop.f32.mrf.mxu1 }
0x1134   :  { %v1902_v52 = vadd.f32 %v1898_v51, %v1827_v50 }
0x1135   :  { %v2557_v53 = vpop.f32.mrf.mxu1 }
0x1136   :  { %2687 = vtanh.f32 %v1902_v52  ;;  %v2274_v56 = vmul.f32 -1.442695, %v1902_v52 }
0x1137   :  { %2689 = vpow2.f32 %v2271_v55 }
0x1138   :  { %2691 = vpow2.f32 %v2274_v56 }
0x113d   :  { %v2686_v54 = vpop.eup %2685 }
0x113e   :  { %1799 = vrot.lane.b32.xlu0 %v2686_v54, %s2727_s27 }
0x1142   :  { %1794 = vrot.lane.b32.xlu0 %v1785_v58, %s2727_s27 }
0x1143   :  { %v2688_v57 = vpop.eup %2687 }
0x1144   :  { %1917 = vrot.lane.b32.xlu1 %v2688_v57, %s2727_s27  ;;  %v2690_v59 = vpop.eup %2689 }
0x1145   :  { %v1789_v12 = vadd.f32 1.0, %v2690_v59  ;;  %v2692_v14 = vpop.eup %2691 }
0x1146   :  { %v1907_v15 = vadd.f32 1.0, %v2692_v14 }
0x1147   :  { %2693 = vrcp.f32 %v1789_v12 }
0x1148   :  { %1912 = vrot.lane.b32.xlu1 %v1903_v3, %s2727_s27  ;;  %2695 = vrcp.f32 %v1907_v15 }
0x1154   :  { %v2694_v16 = vpop.eup %2693 }
0x1155   :  { %v2696_v60 = vpop.eup %2695 }
0x11b0   :  { %v1800_v17 = vpop.permute.xlu0 %1799 }
0x11b1   :  { %v1802_v18 = vmul.f32 %v2694_v16, %v1800_v17 }
0x11b3   :  { %1804 = vrot.lane.b32.xlu0 %v1802_v18, %s2727_s27 }
0x11b4   :  { %v1795_v20 = vpop.permute.xlu0 %1794 }
0x11b5   :  { %v1797_v63 = vmul.f32 %v2694_v16, %v1795_v20 }
0x11b6   :  { %v1918_v61 = vpop.permute.xlu1 %1917 }
0x11b7   :  { %v1920_v62 = vmul.f32 %v2696_v60, %v1918_v61 }
0x11b9   :  { %1922 = vrot.lane.b32.xlu1 %v1920_v62, %s2727_s27 }
0x11ba   :  { %v1913_v22 = vpop.permute.xlu1 %1912 }
0x11bb   :  { %v1915_v2 = vmul.f32 %v2696_v60, %v1913_v22 }
0x1225   :  { %v1805_v0 = vpop.permute.xlu0 %1804 }
0x1226   :  { %v1807_v1 = vadd.f32 %v1805_v0, %v1797_v63 }
0x1228   :  { %2697 = vtanh.f32 %v1807_v1 }
0x122b   :  { %v1923_v4 = vpop.permute.xlu1 %1922 }
0x122c   :  { %v1925_v5 = vadd.f32 %v1923_v4, %v1915_v2  ;;  %v2193_v2 = vld [vmem:[#allocation4 + $0x1c] sm:$0xf] }
0x122e   :  { %2699 = vtanh.f32 %v1925_v5 }
0x1235   :  { %v2698_v6 = vpop.eup %2697 }
0x1236   :  { %1810 = vrot.lane.b32.xlu0 %v2698_v6, %s2727_s27 }
0x123b   :  { %v2700_v7 = vpop.eup %2699 }
0x123c   :  { %1928 = vrot.lane.b32.xlu1 %v2700_v7, %s2727_s27 }
0x12a8   :  { %v1811_v8 = vpop.permute.xlu0 %1810 }
0x12a9   :  { %v1813_v9 = vmul.f32 %v2694_v16, %v1811_v8  ;;  %v2178_v8 = vld [vmem:[%s3297_s4] sm:$0xf] }
0x12ab   :  { %1815 = vrot.lane.b32.xlu0 %v1813_v9, %s2728_s3 }
0x12ae   :  { %v1929_v10 = vpop.permute.xlu1 %1928 }
0x12af   :  { %v1931_v11 = vmul.f32 %v2696_v60, %v1929_v10  ;;  %1820 = vrot.lane.b32.xlu0 %v1807_v1, %s2729_s6 }
0x12b1   :  { %1933 = vrot.lane.b32.xlu1 %v1931_v11, %s2728_s3 }
0x12b5   :  { %1938 = vrot.lane.b32.xlu1 %v1925_v5, %s2729_s6 }
0x131d   :  { %v1816_v13 = vpop.permute.xlu0 %1815 }
0x131e   :  { %1818 = vst.msk [vmem:[#allocation5] sm:$0xf] %vm280_vm0, %v1816_v13  ;;  %2272 = vst.msk [vmem:[%s3297_s4 + $0x18] sm:$0xf] %vm280_vm0, %v1816_v13 }
0x1321   :  { %v1821_v21 = vpop.permute.xlu0 %1820 }
0x1322   :  { %1823 = vst.msk [vmem:[#allocation6] sm:$0xf] %vm280_vm0, %v1821_v21 }
0x1323   :  { %v1934_v19 = vpop.permute.xlu1 %1933 }
0x1324   :  { %1936 = vst.msk [vmem:[#allocation7] sm:$0xf] %vm280_vm0, %v1934_v19  ;;  %1943 = vst.msk [vmem:[#allocation4 + $0x4] sm:$0xf] %vm280_vm0, %v1934_v19 }
0x1325   :  { %v2184_v24 = vld [vmem:[%s3297_s4 + $0x18] sm:$0xf]  ;;  %v1946_v26 = vld [vmem:[#allocation5] sm:$0xf] }
0x1326   :  { %v2200_v27 = vadd.f32 %v2192_v23, %v2184_v24  ;;  %2567 = vmatmul.mubr.msk.f32.vlgmr.msra.gmra.mxu0 %vm48_vm1, %v1946_v26 }
0x1327   :  { %v1939_v25 = vpop.permute.xlu1 %1938 }
0x1328   :  { %1941 = vst.msk [vmem:[#allocation8] sm:$0xf] %vm280_vm0, %v1939_v25  ;;  %v2208_v28 = vmul.f32 0.5, %v2200_v27 }
0x1329   :  { %v2021_v43 = vld [vmem:[#allocation6] sm:$0xf] }
0x132a   :  { %2216 = vst.msk [vmem:[%s3297_s4 + $0x18] sm:$0xf] %vm280_vm0, %v2208_v28 }
0x132b   :  { %v2187_v30 = vld [vmem:[#allocation4 + $0x4] sm:$0xf]  ;;  %v2063_v31 = vld [vmem:[#allocation7] sm:$0xf] }
0x132c   :  { %v2195_v32 = vadd.f32 %v2187_v30, %v2179_v29  ;;  %2578 = vmatmul.mubr.msk.f32.vlgmr.msra.gmra.mxu1 %vm48_vm1, %v2063_v31 }
0x132e   :  { %v2203_v33 = vmul.f32 0.5, %v2195_v32 }
0x132f   :  { %v2138_v45 = vld [vmem:[#allocation8] sm:$0xf] }
0x1330   :  { %2211 = vst.msk [vmem:[%s3297_s4 + $0x4] sm:$0xf] %vm280_vm0, %v2203_v33 }
0x13e6   :  { %v2016_v35 = vpop.f32.mrf.mxu0 }
0x13e7   :  { %v2020_v36 = vadd.f32 %v2016_v35, %v1945_v34 }
0x13e8   :  { %v2568_v37 = vpop.f32.mrf.mxu0 }
0x13e9   :  { %2701 = vtanh.f32 %v2020_v36  ;;  %v2276_v46 = vmul.f32 -1.442695, %v2020_v36 }
0x13ec   :  { %v2133_v39 = vpop.f32.mrf.mxu1 }
0x13ed   :  { %v2137_v40 = vadd.f32 %v2133_v39, %v2062_v38 }
0x13ee   :  { %v2579_v41 = vpop.f32.mrf.mxu1 }
0x13ef   :  { %2703 = vtanh.f32 %v2137_v40  ;;  %v2279_v47 = vmul.f32 -1.442695, %v2137_v40 }
0x13f0   :  { %2705 = vpow2.f32 %v2276_v46 }
0x13f1   :  { %2707 = vpow2.f32 %v2279_v47 }
0x13f6   :  { %v2702_v42 = vpop.eup %2701 }
0x13f7   :  { %2035 = vrot.lane.b32.xlu0 %v2702_v42, %s2727_s27 }
0x13fb   :  { %2030 = vrot.lane.b32.xlu0 %v2021_v43, %s2727_s27 }
0x13fc   :  { %v2704_v44 = vpop.eup %2703 }
0x13fd   :  { %2152 = vrot.lane.b32.xlu1 %v2704_v44, %s2727_s27  ;;  %v2706_v48 = vpop.eup %2705 }
0x13fe   :  { %v2025_v49 = vadd.f32 1.0, %v2706_v48  ;;  %v2708_v50 = vpop.eup %2707 }
0x13ff   :  { %v2142_v51 = vadd.f32 1.0, %v2708_v50 }
0x1400   :  { %2709 = vrcp.f32 %v2025_v49 }
0x1401   :  { %2147 = vrot.lane.b32.xlu1 %v2138_v45, %s2727_s27  ;;  %2711 = vrcp.f32 %v2142_v51 }
0x140d   :  { %v2710_v52 = vpop.eup %2709 }
0x140e   :  { %v2712_v57 = vpop.eup %2711 }
0x1469   :  { %v2036_v53 = vpop.permute.xlu0 %2035 }
0x146a   :  { %v2038_v54 = vmul.f32 %v2710_v52, %v2036_v53 }
0x146c   :  { %2040 = vrot.lane.b32.xlu0 %v2038_v54, %s2727_s27 }
0x146d   :  { %v2031_v55 = vpop.permute.xlu0 %2030 }
0x146e   :  { %v2033_v56 = vmul.f32 %v2710_v52, %v2031_v55 }
0x146f   :  { %v2153_v58 = vpop.permute.xlu1 %2152 }
0x1470   :  { %v2155_v3 = vmul.f32 %v2712_v57, %v2153_v58 }
0x1472   :  { %2157 = vrot.lane.b32.xlu1 %v2155_v3, %s2727_s27 }
0x1473   :  { %v2148_v59 = vpop.permute.xlu1 %2147 }
0x1474   :  { %v2150_v15 = vmul.f32 %v2712_v57, %v2148_v59 }
0x14de   :  { %v2041_v12 = vpop.permute.xlu0 %2040 }
0x14df   :  { %v2043_v14 = vadd.f32 %v2041_v12, %v2033_v56 }
0x14e1   :  { %2713 = vtanh.f32 %v2043_v14 }
0x14e4   :  { %v2158_v16 = vpop.permute.xlu1 %2157 }
0x14e5   :  { %v2160_v17 = vadd.f32 %v2158_v16, %v2150_v15 }
0x14e7   :  { %2715 = vtanh.f32 %v2160_v17 }
0x14ee   :  { %v2714_v18 = vpop.eup %2713 }
0x14ef   :  { %2046 = vrot.lane.b32.xlu0 %v2714_v18, %s2727_s27 }
0x14f4   :  { %v2716_v60 = vpop.eup %2715 }
0x14f5   :  { %2163 = vrot.lane.b32.xlu1 %v2716_v60, %s2727_s27 }
0x1561   :  { %v2047_v61 = vpop.permute.xlu0 %2046 }
0x1562   :  { %v2049_v62 = vmul.f32 %v2710_v52, %v2047_v61 }
0x1564   :  { %2051 = vrot.lane.b32.xlu0 %v2049_v62, %s2728_s3 }
0x1567   :  { %v2164_v20 = vpop.permute.xlu1 %2163 }
0x1568   :  { %v2166_v63 = vmul.f32 %v2712_v57, %v2164_v20  ;;  %2056 = vrot.lane.b32.xlu0 %v2043_v14, %s2729_s6 }
0x156a   :  { %2168 = vrot.lane.b32.xlu1 %v2166_v63, %s2728_s3 }
0x156e   :  { %2173 = vrot.lane.b32.xlu1 %v2160_v17, %s2729_s6 }
0x15d6   :  { %v2052_v22 = vpop.permute.xlu0 %2051 }
0x15d7   :  { %2054 = vst.msk [vmem:[#allocation5] sm:$0xf] %vm280_vm0, %v2052_v22  ;;  %2277 = vst.msk [vmem:[%s3297_s4 + $0x1c] sm:$0xf] %vm280_vm0, %v2052_v22 }
0x15da   :  { %v2057_v1 = vpop.permute.xlu0 %2056 }
0x15db   :  { %2059 = vst.msk [vmem:[#allocation6] sm:$0xf] %vm280_vm0, %v2057_v1 }
0x15dc   :  { %v2169_v0 = vpop.permute.xlu1 %2168 }
0x15dd   :  { %2171 = vst.msk [vmem:[#allocation7] sm:$0xf] %vm280_vm0, %v2169_v0  ;;  %2177 = vst.msk [vmem:[#allocation4] sm:$0xf] %vm280_vm0, %v2169_v0 }
0x15de   :  { %v2185_v4 = vld [vmem:[%s3297_s4 + $0x1c] sm:$0xf] }
0x15df   :  { %v2201_v6 = vadd.f32 %v2193_v2, %v2185_v4 }
0x15e0   :  { %v2174_v5 = vpop.permute.xlu1 %2173 }
0x15e1   :  { %2176 = vst.msk [vmem:[#allocation8] sm:$0xf] %vm280_vm0, %v2174_v5  ;;  %v2209_v7 = vmul.f32 0.5, %v2201_v6 }
0x15e3   :  { %2217 = vst.msk [vmem:[%s3297_s4 + $0x1c] sm:$0xf] %vm280_vm0, %v2209_v7 }
0x15e4   :  { %v2186_v9 = vld [vmem:[#allocation4] sm:$0xf] }
0x15e5   :  { %v2194_v10 = vadd.f32 %v2186_v9, %v2178_v8 }
0x15e7   :  { %v2202_v11 = vmul.f32 0.5, %v2194_v10 }
0x15e9   :  { %2210 = vst.msk [vmem:[%s3297_s4] sm:$0xf] %vm280_vm0, %v2202_v11 }

</bundles_post_ra>
